<compile_context>
chip_gen: v7x
topology: tpu7x:2x2x1
jax: 0.10.0
libtpu: 0.0.40
codegen_flags: <defaults>
</compile_context>

<pallas_src>
import jax
import jax.numpy as jnp
from jax.experimental import pallas as pl
from jax.experimental.pallas import tpu as pltpu


def _vmem_spec():
    # whole-array block resident in VMEM (all operands here are tiny; no grid needed)
    return pl.BlockSpec(memory_space=pltpu.MemorySpace.VMEM)


# --------------------------------------------------------------------------------------
# Fused forward builder
# --------------------------------------------------------------------------------------

def make_fused_forward(N, D, T, kernel_sizes, out_channels, hidden, num_class):
    """Returns forward(x, params) implemented as a single fused Pallas TPU kernel."""
    n_conv = len(kernel_sizes)

    # static per-layer config: (Cin, Cout, K, T_in)
    layer_cfg = []
    cin, t = D, T
    for K, cout in zip(kernel_sizes, out_channels):
        assert K % 2 == 1, "odd kernel sizes only (PyTorch padding=K//2 'same')"
        assert t % 2 == 0, "time length must stay even at every MaxPool1d(2) stage"
        layer_cfg.append((cin, cout, K, t))
        cin, t = cout, t // 2

    S = out_channels[-1]        # LSTM sequence length == last conv channel count
    F = t                       # LSTM input feature size == pooled time length
    H = hidden
    H4 = 4 * H
    NC = num_class

    def kernel(*refs):
        x_ref = refs[0]                                        # (N, D, T) - PyTorch layout
        conv_refs = refs[1:1 + 3 * n_conv]                     # (w_flat, scale, shift) x layers
        wih_ref, whh_ref, bl_ref, wfc_ref, bfc_ref = refs[1 + 3 * n_conv: 6 + 3 * n_conv]
        o_ref = refs[6 + 3 * n_conv]
        scratch = refs[7 + 3 * n_conv:]
        col_refs = scratch[:n_conv]                            # im2col buffers per layer
        xg_ref = scratch[n_conv]                               # (N, S, 4H) LSTM input gates

        # -------- in-kernel NCW -> NWC: per-batch 2-D transposes (stay in VMEM) --------
        x_t = [x_ref[n].T for n in range(N)]                   # each (T, D), channels-last

        # ------------------------- CNN stack (im2col + 1 matmul) ------------------------
        acts = None                                            # (N, Tl, Cin) channels-last
        for li, (Cin, Cout, K, Tl) in enumerate(layer_cfg):
            w_ref, sc_ref, sh_ref = conv_refs[3 * li: 3 * li + 3]
            col_ref = col_refs[li]
            p = K // 2
            # zero fill == conv zero padding at the boundaries
            col_ref[...] = jnp.zeros(col_ref.shape, jnp.float32)
            for k in range(K):                                 # K is small & static
                d = k - p
                t0 = max(0, -d)
                t1 = Tl - max(0, d)
                if li == 0:
                    for n in range(N):
                        col_ref[n, t0:t1, k * Cin:(k + 1) * Cin] = x_t[n][t0 + d:t1 + d, :]
                else:
                    col_ref[:, t0:t1, k * Cin:(k + 1) * Cin] = acts[:, t0 + d:t1 + d, :]
            xcol = col_ref[...].reshape(N * Tl, K * Cin)
            # single MXU matmul for the whole layer (contraction K*Cin)
            y = jnp.dot(xcol, w_ref[...], preferred_element_type=jnp.float32)
            y = jnp.maximum(y * sc_ref[...] + sh_ref[...], 0.0)       # folded bias+BN, ReLU
            acts = y.reshape(N, Tl // 2, 2, Cout).max(axis=2)          # MaxPool1d(2)

        # ---------------- LSTM (single layer, batch_first, zero initial state) ----------
        # PyTorch feeds the (N, C, T') conv output as (batch, seq=C, feat=T').
        # `acts` is channels-last (N, T'=F, C=S); project all time steps at once.
        for n in range(N):
            xg_ref[n] = (jnp.dot(acts[n].T, wih_ref[...],
                                 preferred_element_type=jnp.float32)
                         + bl_ref[...])                                # (S, 4H)

        h = jnp.zeros((N, H), jnp.float32)
        c = jnp.zeros((N, H), jnp.float32)
        logits = jnp.zeros((N, NC), jnp.float32)
        for s in range(S):                                             # short static recurrence
            g = xg_ref[:, s, :] + jnp.dot(h, whh_ref[...],
                                          preferred_element_type=jnp.float32)
            sg = jax.nn.sigmoid(g)                                     # full-width EUP, slice after
            tg = jnp.tanh(g)
            i_g = sg[:, 0:H]                                           # PyTorch gate order i,f,g,o
            f_g = sg[:, H:2 * H]
            g_g = tg[:, 2 * H:3 * H]
            o_g = sg[:, 3 * H:4 * H]
            c = f_g * c + i_g * g_g
            h = o_g * jnp.tanh(c)
            # fused nn.Flatten + Linear: accumulate this step's slice of the FC weight
            logits = logits + jnp.dot(h, wfc_ref[s * H:(s + 1) * H, :],
                                      preferred_element_type=jnp.float32)

        # --------------------------- FC bias + Softmax(dim=1) ---------------------------
        logits = logits + bfc_ref[...]
        m = jnp.max(logits, axis=1, keepdims=True)
        e = jnp.exp(logits - m)
        denom = jnp.sum(e, axis=1, keepdims=True)
        o_ref[...] = e * pl.reciprocal(denom, approx=True)

    # scratch: im2col buffers + LSTM input-projection buffer (all tiny, VMEM resident)
    scratch_shapes = [pltpu.VMEM((N, Tl, K * Cin), jnp.float32)
                      for (Cin, Cout, K, Tl) in layer_cfg]
    scratch_shapes.append(pltpu.VMEM((N, S, H4), jnp.float32))

    # rough cost hint for the XLA scheduler
    flops = 0
    bytes_accessed = 4 * N * D * T + 4 * N * NC
    for (Cin, Cout, K, Tl) in layer_cfg:
        flops += 2 * N * Tl * (K * Cin) * Cout
        bytes_accessed += 4 * (K * Cin * Cout + 2 * Cout)
    flops += 2 * N * S * F * H4          # LSTM input projection
    flops += S * 2 * N * H * H4          # recurrence h @ W_hh
    flops += S * 2 * N * H * NC          # fused FC
    bytes_accessed += 4 * (F * H4 + H * H4 + H4 + S * H * NC + NC)
    transcendentals = S * (2 * N * H4 + N * H) + 2 * N * NC

    n_inputs = 1 + 3 * n_conv + 5
    fused = pl.pallas_call(
        kernel,
        out_shape=jax.ShapeDtypeStruct((N, NC), jnp.float32),
        in_specs=[_vmem_spec()] * n_inputs,
        out_specs=_vmem_spec(),
        scratch_shapes=scratch_shapes,
        cost_estimate=pl.CostEstimate(flops=int(flops),
                                      transcendentals=int(transcendentals),
                                      bytes_accessed=int(bytes_accessed)),
    )

    def forward(x_ndt, params):
        """x_ndt: (N, D, T) — same layout as the PyTorch module's input."""
        args = [x_ndt]
        for w_flat, scale, shift in params["cnn"]:
            args += [w_flat, scale, shift]
        args += [params["wih_t"], params["whh_t"], params["b_lstm"],
                 params["w_fc"], params["b_fc"]]
        return fused(*args)

    return forward


# --------------------------------------------------------------------------------------
# Deterministic parameter init (eval-mode BN folded into scale/shift)
# --------------------------------------------------------------------------------------

def init_params(key, features_dim, time_dim, kernel_sizes, out_channels, hidden, num_class):
    eps = 1e-5
    params = {"cnn": []}
    cin, t = features_dim, time_dim
    for k_sz, cout in zip(kernel_sizes, out_channels):
        key, k1, k2 = jax.random.split(key, 3)
        w = 0.1 * jax.random.normal(k1, (k_sz, cin, cout), jnp.float32)   # (K, Cin, Cout)
        b = 0.1 * jax.random.normal(k2, (cout,), jnp.float32)
        gamma = jnp.ones((cout,), jnp.float32)                            # BN default init
        beta = jnp.zeros((cout,), jnp.float32)
        run_mean = jnp.zeros((cout,), jnp.float32)
        run_var = jnp.ones((cout,), jnp.float32)
        scale = gamma / jnp.sqrt(run_var + eps)
        shift = (b - run_mean) * scale + beta
        params["cnn"].append((w.reshape(k_sz * cin, cout),                # im2col layout (K*Cin, Cout)
                              scale.reshape(1, cout), shift.reshape(1, cout)))
        cin, t = cout, t // 2

    rnn_in_size = t                    # = test_tensor.shape[2] in the PyTorch __init__
    seq_len = out_channels[-1]         # LSTM sequence axis == last conv channel count
    H = hidden
    key, k1, k2, k3, k4 = jax.random.split(key, 5)
    w_ih = 0.1 * jax.random.normal(k1, (4 * H, rnn_in_size), jnp.float32)
    w_hh = 0.1 * jax.random.normal(k2, (4 * H, H), jnp.float32)
    b_ih = 0.1 * jax.random.normal(k3, (4 * H,), jnp.float32)
    b_hh = 0.1 * jax.random.normal(k4, (4 * H,), jnp.float32)
    params["wih_t"] = w_ih.T                                              # (F, 4H)
    params["whh_t"] = w_hh.T                                              # (H, 4H)
    params["b_lstm"] = (b_ih + b_hh).reshape(1, 4 * H)

    fc_in = seq_len * H
    key, k1, k2 = jax.random.split(key, 3)
    params["w_fc"] = 0.1 * jax.random.normal(k1, (fc_in, num_class), jnp.float32)
    params["b_fc"] = 0.1 * jax.random.normal(k2, (1, num_class), jnp.float32)
    return params


# --------------------------------------------------------------------------------------

if __name__ == "__main__":
    # small shapes: batch=2, features_dim(D)=8, time_dim(T)=64
    N, D, T = 2, 8, 64
    num_class = 4
    kernel_sizes = [5, 3, 3]
    out_channels = [8, 16, 8]
    hidden = 32

    key = jax.random.PRNGKey(0)
    key, kx, kp = jax.random.split(key, 3)
    x = jax.random.normal(kx, (N, D, T), jnp.float32)
    params = init_params(kp, D, T, kernel_sizes, out_channels, hidden, num_class)

    forward = jax.jit(make_fused_forward(N, D, T, kernel_sizes, out_channels,
                                         hidden, num_class))
    out = jax.block_until_ready(forward(x, params))

    assert out.shape == (N, num_class), out.shape
    assert bool(jnp.all(jnp.isfinite(out)))
    row_sums = jnp.sum(out, axis=1)
    # approx reciprocal in the softmax -> allow a slightly looser tolerance
    assert bool(jnp.all(jnp.abs(row_sums - 1.0) < 5e-3)), row_sums
    print("KERNEL_OK")
</pallas_src>

<mosaic_0001>
module attributes {stable_mosaic.version = 11 : i64} {
  func.func @kernel(%arg0: memref<2x8x64xf32, #tpu.memory_space<vmem>>, %arg1: memref<40x8xf32, #tpu.memory_space<vmem>>, %arg2: memref<1x8xf32, #tpu.memory_space<vmem>>, %arg3: memref<1x8xf32, #tpu.memory_space<vmem>>, %arg4: memref<24x16xf32, #tpu.memory_space<vmem>>, %arg5: memref<1x16xf32, #tpu.memory_space<vmem>>, %arg6: memref<1x16xf32, #tpu.memory_space<vmem>>, %arg7: memref<48x8xf32, #tpu.memory_space<vmem>>, %arg8: memref<1x8xf32, #tpu.memory_space<vmem>>, %arg9: memref<1x8xf32, #tpu.memory_space<vmem>>, %arg10: memref<8x128xf32, #tpu.memory_space<vmem>>, %arg11: memref<32x128xf32, #tpu.memory_space<vmem>>, %arg12: memref<1x128xf32, #tpu.memory_space<vmem>>, %arg13: memref<256x4xf32, #tpu.memory_space<vmem>>, %arg14: memref<1x4xf32, #tpu.memory_space<vmem>>, %arg15: memref<2x4xf32, #tpu.memory_space<vmem>>, %arg16: memref<2x64x40xf32, #tpu.memory_space<vmem>>, %arg17: memref<2x32x24xf32, #tpu.memory_space<vmem>>, %arg18: memref<2x16x48xf32, #tpu.memory_space<vmem>>, %arg19: memref<2x8x128xf32, #tpu.memory_space<vmem>>) attributes {dimension_semantics = [], scalar_prefetch = 0 : i64, scratch_operands = 4 : i64, tpu.core_type = #tpu.core_type<tc>} {
    %c0 = arith.constant 0 : index
    %c0_0 = arith.constant 0 : index
    %c0_1 = arith.constant 0 : index
    %0 = vector.load %arg0[%c0, %c0_0, %c0_1] : memref<2x8x64xf32, #tpu.memory_space<vmem>>, vector<1x8x64xf32>
    %1 = vector.shape_cast %0 : vector<1x8x64xf32> to vector<8x64xf32>
    %2 = tpu.transpose %1, [1, 0] : vector<8x64xf32> -> vector<64x8xf32>
    %c1 = arith.constant 1 : index
    %c0_2 = arith.constant 0 : index
    %c0_3 = arith.constant 0 : index
    %3 = vector.load %arg0[%c1, %c0_2, %c0_3] : memref<2x8x64xf32, #tpu.memory_space<vmem>>, vector<1x8x64xf32>
    %4 = vector.shape_cast %3 : vector<1x8x64xf32> to vector<8x64xf32>
    %5 = tpu.transpose %4, [1, 0] : vector<8x64xf32> -> vector<64x8xf32>
    %cst = arith.constant 0.000000e+00 : f32
    %6 = vector.broadcast %cst : f32 to vector<2x64x40xf32>
    %c0_4 = arith.constant 0 : index
    %c0_5 = arith.constant 0 : index
    %c0_6 = arith.constant 0 : index
    %7 = vector.load %arg16[%c0_4, %c0_5, %c0_6] : memref<2x64x40xf32, #tpu.memory_space<vmem>>, vector<2x64x40xf32>
    tpu.vector_store %arg16[%c0_4, %c0_5, %c0_6], %6 {strides = array<i32>} : memref<2x64x40xf32, #tpu.memory_space<vmem>>, vector<2x64x40xf32>,
    %8 = vector.extract_strided_slice %2 {offsets = [0, 0], sizes = [62, 8], strides = [1, 1]} : vector<64x8xf32> to vector<62x8xf32>
    %c0_7 = arith.constant 0 : index
    %c2 = arith.constant 2 : index
    %c0_8 = arith.constant 0 : index
    %9 = vector.load %arg16[%c0_7, %c2, %c0_8] : memref<2x64x40xf32, #tpu.memory_space<vmem>>, vector<1x62x8xf32>
    %10 = vector.shape_cast %9 : vector<1x62x8xf32> to vector<62x8xf32>
    %11 = vector.shape_cast %8 : vector<62x8xf32> to vector<1x62x8xf32>
    tpu.vector_store %arg16[%c0_7, %c2, %c0_8], %11 {strides = array<i32>} : memref<2x64x40xf32, #tpu.memory_space<vmem>>, vector<1x62x8xf32>,
    %12 = vector.extract_strided_slice %5 {offsets = [0, 0], sizes = [62, 8], strides = [1, 1]} : vector<64x8xf32> to vector<62x8xf32>
    %c1_9 = arith.constant 1 : index
    %c2_10 = arith.constant 2 : index
    %c0_11 = arith.constant 0 : index
    %13 = vector.load %arg16[%c1_9, %c2_10, %c0_11] : memref<2x64x40xf32, #tpu.memory_space<vmem>>, vector<1x62x8xf32>
    %14 = vector.shape_cast %13 : vector<1x62x8xf32> to vector<62x8xf32>
    %15 = vector.shape_cast %12 : vector<62x8xf32> to vector<1x62x8xf32>
    tpu.vector_store %arg16[%c1_9, %c2_10, %c0_11], %15 {strides = array<i32>} : memref<2x64x40xf32, #tpu.memory_space<vmem>>, vector<1x62x8xf32>,
    %16 = vector.extract_strided_slice %2 {offsets = [0, 0], sizes = [63, 8], strides = [1, 1]} : vector<64x8xf32> to vector<63x8xf32>
    %c0_12 = arith.constant 0 : index
    %c1_13 = arith.constant 1 : index
    %c8 = arith.constant 8 : index
    %17 = vector.load %arg16[%c0_12, %c1_13, %c8] : memref<2x64x40xf32, #tpu.memory_space<vmem>>, vector<1x63x8xf32>
    %18 = vector.shape_cast %17 : vector<1x63x8xf32> to vector<63x8xf32>
    %19 = vector.shape_cast %16 : vector<63x8xf32> to vector<1x63x8xf32>
    tpu.vector_store %arg16[%c0_12, %c1_13, %c8], %19 {strides = array<i32>} : memref<2x64x40xf32, #tpu.memory_space<vmem>>, vector<1x63x8xf32>,
    %20 = vector.extract_strided_slice %5 {offsets = [0, 0], sizes = [63, 8], strides = [1, 1]} : vector<64x8xf32> to vector<63x8xf32>
    %c1_14 = arith.constant 1 : index
    %c1_15 = arith.constant 1 : index
    %c8_16 = arith.constant 8 : index
    %21 = vector.load %arg16[%c1_14, %c1_15, %c8_16] : memref<2x64x40xf32, #tpu.memory_space<vmem>>, vector<1x63x8xf32>
    %22 = vector.shape_cast %21 : vector<1x63x8xf32> to vector<63x8xf32>
    %23 = vector.shape_cast %20 : vector<63x8xf32> to vector<1x63x8xf32>
    tpu.vector_store %arg16[%c1_14, %c1_15, %c8_16], %23 {strides = array<i32>} : memref<2x64x40xf32, #tpu.memory_space<vmem>>, vector<1x63x8xf32>,
    %c0_17 = arith.constant 0 : index
    %c0_18 = arith.constant 0 : index
    %c16 = arith.constant 16 : index
    %24 = vector.load %arg16[%c0_17, %c0_18, %c16] : memref<2x64x40xf32, #tpu.memory_space<vmem>>, vector<1x64x8xf32>
    %25 = vector.shape_cast %24 : vector<1x64x8xf32> to vector<64x8xf32>
    %26 = vector.shape_cast %2 : vector<64x8xf32> to vector<1x64x8xf32>
    tpu.vector_store %arg16[%c0_17, %c0_18, %c16], %26 {strides = array<i32>} : memref<2x64x40xf32, #tpu.memory_space<vmem>>, vector<1x64x8xf32>,
    %c1_19 = arith.constant 1 : index
    %c0_20 = arith.constant 0 : index
    %c16_21 = arith.constant 16 : index
    %27 = vector.load %arg16[%c1_19, %c0_20, %c16_21] : memref<2x64x40xf32, #tpu.memory_space<vmem>>, vector<1x64x8xf32>
    %28 = vector.shape_cast %27 : vector<1x64x8xf32> to vector<64x8xf32>
    %29 = vector.shape_cast %5 : vector<64x8xf32> to vector<1x64x8xf32>
    tpu.vector_store %arg16[%c1_19, %c0_20, %c16_21], %29 {strides = array<i32>} : memref<2x64x40xf32, #tpu.memory_space<vmem>>, vector<1x64x8xf32>,
    %30 = vector.extract_strided_slice %2 {offsets = [1, 0], sizes = [63, 8], strides = [1, 1]} : vector<64x8xf32> to vector<63x8xf32>
    %c0_22 = arith.constant 0 : index
    %c0_23 = arith.constant 0 : index
    %c24 = arith.constant 24 : index
    %31 = vector.load %arg16[%c0_22, %c0_23, %c24] : memref<2x64x40xf32, #tpu.memory_space<vmem>>, vector<1x63x8xf32>
    %32 = vector.shape_cast %31 : vector<1x63x8xf32> to vector<63x8xf32>
    %33 = vector.shape_cast %30 : vector<63x8xf32> to vector<1x63x8xf32>
    tpu.vector_store %arg16[%c0_22, %c0_23, %c24], %33 {strides = array<i32>} : memref<2x64x40xf32, #tpu.memory_space<vmem>>, vector<1x63x8xf32>,
    %34 = vector.extract_strided_slice %5 {offsets = [1, 0], sizes = [63, 8], strides = [1, 1]} : vector<64x8xf32> to vector<63x8xf32>
    %c1_24 = arith.constant 1 : index
    %c0_25 = arith.constant 0 : index
    %c24_26 = arith.constant 24 : index
    %35 = vector.load %arg16[%c1_24, %c0_25, %c24_26] : memref<2x64x40xf32, #tpu.memory_space<vmem>>, vector<1x63x8xf32>
    %36 = vector.shape_cast %35 : vector<1x63x8xf32> to vector<63x8xf32>
    %37 = vector.shape_cast %34 : vector<63x8xf32> to vector<1x63x8xf32>
    tpu.vector_store %arg16[%c1_24, %c0_25, %c24_26], %37 {strides = array<i32>} : memref<2x64x40xf32, #tpu.memory_space<vmem>>, vector<1x63x8xf32>,
    %38 = vector.extract_strided_slice %2 {offsets = [2, 0], sizes = [62, 8], strides = [1, 1]} : vector<64x8xf32> to vector<62x8xf32>
    %c0_27 = arith.constant 0 : index
    %c0_28 = arith.constant 0 : index
    %c32 = arith.constant 32 : index
    %39 = vector.load %arg16[%c0_27, %c0_28, %c32] : memref<2x64x40xf32, #tpu.memory_space<vmem>>, vector<1x62x8xf32>
    %40 = vector.shape_cast %39 : vector<1x62x8xf32> to vector<62x8xf32>
    %41 = vector.shape_cast %38 : vector<62x8xf32> to vector<1x62x8xf32>
    tpu.vector_store %arg16[%c0_27, %c0_28, %c32], %41 {strides = array<i32>} : memref<2x64x40xf32, #tpu.memory_space<vmem>>, vector<1x62x8xf32>,
    %42 = vector.extract_strided_slice %5 {offsets = [2, 0], sizes = [62, 8], strides = [1, 1]} : vector<64x8xf32> to vector<62x8xf32>
    %c1_29 = arith.constant 1 : index
    %c0_30 = arith.constant 0 : index
    %c32_31 = arith.constant 32 : index
    %43 = vector.load %arg16[%c1_29, %c0_30, %c32_31] : memref<2x64x40xf32, #tpu.memory_space<vmem>>, vector<1x62x8xf32>
    %44 = vector.shape_cast %43 : vector<1x62x8xf32> to vector<62x8xf32>
    %45 = vector.shape_cast %42 : vector<62x8xf32> to vector<1x62x8xf32>
    tpu.vector_store %arg16[%c1_29, %c0_30, %c32_31], %45 {strides = array<i32>} : memref<2x64x40xf32, #tpu.memory_space<vmem>>, vector<1x62x8xf32>,
    %c0_32 = arith.constant 0 : index
    %c0_33 = arith.constant 0 : index
    %c0_34 = arith.constant 0 : index
    %46 = vector.load %arg16[%c0_32, %c0_33, %c0_34] : memref<2x64x40xf32, #tpu.memory_space<vmem>>, vector<2x64x40xf32>
    %47 = vector.shape_cast %46 : vector<2x64x40xf32> to vector<128x40xf32>
    %c0_35 = arith.constant 0 : index
    %c0_36 = arith.constant 0 : index
    %48 = vector.load %arg1[%c0_35, %c0_36] : memref<40x8xf32, #tpu.memory_space<vmem>>, vector<40x8xf32>
    %cst_37 = arith.constant dense<0.000000e+00> : vector<128x8xf32>
    %49 = tpu.matmul %47, %48, %cst_37 {dimension_numbers = #tpu.dot_dimension_numbers<[1], [0], [0], [1], [0, 0, 1, 1], [], []>} : vector<128x40xf32>, vector<40x8xf32>, vector<128x8xf32> -> vector<128x8xf32>
    %c0_38 = arith.constant 0 : index
    %c0_39 = arith.constant 0 : index
    %50 = vector.load %arg2[%c0_38, %c0_39] : memref<1x8xf32, #tpu.memory_space<vmem>>, vector<1x8xf32>
    %51 = vector.broadcast %50 : vector<1x8xf32> to vector<128x8xf32>
    %52 = arith.mulf %49, %51 : vector<128x8xf32>
    %c0_40 = arith.constant 0 : index
    %c0_41 = arith.constant 0 : index
    %53 = vector.load %arg3[%c0_40, %c0_41] : memref<1x8xf32, #tpu.memory_space<vmem>>, vector<1x8xf32>
    %54 = vector.broadcast %53 : vector<1x8xf32> to vector<128x8xf32>
    %55 = arith.addf %52, %54 : vector<128x8xf32>
    %cst_42 = arith.constant 0.000000e+00 : f32
    %56 = vector.broadcast %cst_42 : f32 to vector<128x8xf32>
    %57 = arith.maximumf %55, %56 : vector<128x8xf32>
    %58 = vector.shape_cast %57 : vector<128x8xf32> to vector<2x32x2x8xf32>
    %cst_43 = arith.constant dense<0xFF800000> : vector<2x32x8xf32>
    %59 = vector.multi_reduction <maximumf>, %58, %cst_43 [2] : vector<2x32x2x8xf32> to vector<2x32x8xf32>
    %cst_44 = arith.constant 0.000000e+00 : f32
    %60 = vector.broadcast %cst_44 : f32 to vector<2x32x24xf32>
    %c0_45 = arith.constant 0 : index
    %c0_46 = arith.constant 0 : index
    %c0_47 = arith.constant 0 : index
    %61 = vector.load %arg17[%c0_45, %c0_46, %c0_47] : memref<2x32x24xf32, #tpu.memory_space<vmem>>, vector<2x32x24xf32>
    tpu.vector_store %arg17[%c0_45, %c0_46, %c0_47], %60 {strides = array<i32>} : memref<2x32x24xf32, #tpu.memory_space<vmem>>, vector<2x32x24xf32>,
    %62 = vector.extract_strided_slice %59 {offsets = [0, 0, 0], sizes = [2, 31, 8], strides = [1, 1, 1]} : vector<2x32x8xf32> to vector<2x31x8xf32>
    %c0_48 = arith.constant 0 : index
    %c1_49 = arith.constant 1 : index
    %c0_50 = arith.constant 0 : index
    %63 = vector.load %arg17[%c0_48, %c1_49, %c0_50] : memref<2x32x24xf32, #tpu.memory_space<vmem>>, vector<2x31x8xf32>
    tpu.vector_store %arg17[%c0_48, %c1_49, %c0_50], %62 {strides = array<i32>} : memref<2x32x24xf32, #tpu.memory_space<vmem>>, vector<2x31x8xf32>,
    %c0_51 = arith.constant 0 : index
    %c0_52 = arith.constant 0 : index
    %c8_53 = arith.constant 8 : index
    %64 = vector.load %arg17[%c0_51, %c0_52, %c8_53] : memref<2x32x24xf32, #tpu.memory_space<vmem>>, vector<2x32x8xf32>
    tpu.vector_store %arg17[%c0_51, %c0_52, %c8_53], %59 {strides = array<i32>} : memref<2x32x24xf32, #tpu.memory_space<vmem>>, vector<2x32x8xf32>,
    %65 = vector.extract_strided_slice %59 {offsets = [0, 1, 0], sizes = [2, 31, 8], strides = [1, 1, 1]} : vector<2x32x8xf32> to vector<2x31x8xf32>
    %c0_54 = arith.constant 0 : index
    %c0_55 = arith.constant 0 : index
    %c16_56 = arith.constant 16 : index
    %66 = vector.load %arg17[%c0_54, %c0_55, %c16_56] : memref<2x32x24xf32, #tpu.memory_space<vmem>>, vector<2x31x8xf32>
    tpu.vector_store %arg17[%c0_54, %c0_55, %c16_56], %65 {strides = array<i32>} : memref<2x32x24xf32, #tpu.memory_space<vmem>>, vector<2x31x8xf32>,
    %c0_57 = arith.constant 0 : index
    %c0_58 = arith.constant 0 : index
    %c0_59 = arith.constant 0 : index
    %67 = vector.load %arg17[%c0_57, %c0_58, %c0_59] : memref<2x32x24xf32, #tpu.memory_space<vmem>>, vector<2x32x24xf32>
    %68 = vector.shape_cast %67 : vector<2x32x24xf32> to vector<64x24xf32>
    %c0_60 = arith.constant 0 : index
    %c0_61 = arith.constant 0 : index
    %69 = vector.load %arg4[%c0_60, %c0_61] : memref<24x16xf32, #tpu.memory_space<vmem>>, vector<24x16xf32>
    %cst_62 = arith.constant dense<0.000000e+00> : vector<64x16xf32>
    %70 = tpu.matmul %68, %69, %cst_62 {dimension_numbers = #tpu.dot_dimension_numbers<[1], [0], [0], [1], [0, 0, 1, 1], [], []>} : vector<64x24xf32>, vector<24x16xf32>, vector<64x16xf32> -> vector<64x16xf32>
    %c0_63 = arith.constant 0 : index
    %c0_64 = arith.constant 0 : index
    %71 = vector.load %arg5[%c0_63, %c0_64] : memref<1x16xf32, #tpu.memory_space<vmem>>, vector<1x16xf32>
    %72 = vector.broadcast %71 : vector<1x16xf32> to vector<64x16xf32>
    %73 = arith.mulf %70, %72 : vector<64x16xf32>
    %c0_65 = arith.constant 0 : index
    %c0_66 = arith.constant 0 : index
    %74 = vector.load %arg6[%c0_65, %c0_66] : memref<1x16xf32, #tpu.memory_space<vmem>>, vector<1x16xf32>
    %75 = vector.broadcast %74 : vector<1x16xf32> to vector<64x16xf32>
    %76 = arith.addf %73, %75 : vector<64x16xf32>
    %cst_67 = arith.constant 0.000000e+00 : f32
    %77 = vector.broadcast %cst_67 : f32 to vector<64x16xf32>
    %78 = arith.maximumf %76, %77 : vector<64x16xf32>
    %79 = vector.shape_cast %78 : vector<64x16xf32> to vector<2x16x2x16xf32>
    %cst_68 = arith.constant dense<0xFF800000> : vector<2x16x16xf32>
    %80 = vector.multi_reduction <maximumf>, %79, %cst_68 [2] : vector<2x16x2x16xf32> to vector<2x16x16xf32>
    %cst_69 = arith.constant 0.000000e+00 : f32
    %81 = vector.broadcast %cst_69 : f32 to vector<2x16x48xf32>
    %c0_70 = arith.constant 0 : index
    %c0_71 = arith.constant 0 : index
    %c0_72 = arith.constant 0 : index
    %82 = vector.load %arg18[%c0_70, %c0_71, %c0_72] : memref<2x16x48xf32, #tpu.memory_space<vmem>>, vector<2x16x48xf32>
    tpu.vector_store %arg18[%c0_70, %c0_71, %c0_72], %81 {strides = array<i32>} : memref<2x16x48xf32, #tpu.memory_space<vmem>>, vector<2x16x48xf32>,
    %83 = vector.extract_strided_slice %80 {offsets = [0, 0, 0], sizes = [2, 15, 16], strides = [1, 1, 1]} : vector<2x16x16xf32> to vector<2x15x16xf32>
    %c0_73 = arith.constant 0 : index
    %c1_74 = arith.constant 1 : index
    %c0_75 = arith.constant 0 : index
    %84 = vector.load %arg18[%c0_73, %c1_74, %c0_75] : memref<2x16x48xf32, #tpu.memory_space<vmem>>, vector<2x15x16xf32>
    tpu.vector_store %arg18[%c0_73, %c1_74, %c0_75], %83 {strides = array<i32>} : memref<2x16x48xf32, #tpu.memory_space<vmem>>, vector<2x15x16xf32>,
    %c0_76 = arith.constant 0 : index
    %c0_77 = arith.constant 0 : index
    %c16_78 = arith.constant 16 : index
    %85 = vector.load %arg18[%c0_76, %c0_77, %c16_78] : memref<2x16x48xf32, #tpu.memory_space<vmem>>, vector<2x16x16xf32>
    tpu.vector_store %arg18[%c0_76, %c0_77, %c16_78], %80 {strides = array<i32>} : memref<2x16x48xf32, #tpu.memory_space<vmem>>, vector<2x16x16xf32>,
    %86 = vector.extract_strided_slice %80 {offsets = [0, 1, 0], sizes = [2, 15, 16], strides = [1, 1, 1]} : vector<2x16x16xf32> to vector<2x15x16xf32>
    %c0_79 = arith.constant 0 : index
    %c0_80 = arith.constant 0 : index
    %c32_81 = arith.constant 32 : index
    %87 = vector.load %arg18[%c0_79, %c0_80, %c32_81] : memref<2x16x48xf32, #tpu.memory_space<vmem>>, vector<2x15x16xf32>
    tpu.vector_store %arg18[%c0_79, %c0_80, %c32_81], %86 {strides = array<i32>} : memref<2x16x48xf32, #tpu.memory_space<vmem>>, vector<2x15x16xf32>,
    %c0_82 = arith.constant 0 : index
    %c0_83 = arith.constant 0 : index
    %c0_84 = arith.constant 0 : index
    %88 = vector.load %arg18[%c0_82, %c0_83, %c0_84] : memref<2x16x48xf32, #tpu.memory_space<vmem>>, vector<2x16x48xf32>
    %89 = vector.shape_cast %88 : vector<2x16x48xf32> to vector<32x48xf32>
    %c0_85 = arith.constant 0 : index
    %c0_86 = arith.constant 0 : index
    %90 = vector.load %arg7[%c0_85, %c0_86] : memref<48x8xf32, #tpu.memory_space<vmem>>, vector<48x8xf32>
    %cst_87 = arith.constant dense<0.000000e+00> : vector<32x8xf32>
    %91 = tpu.matmul %89, %90, %cst_87 {dimension_numbers = #tpu.dot_dimension_numbers<[1], [0], [0], [1], [0, 0, 1, 1], [], []>} : vector<32x48xf32>, vector<48x8xf32>, vector<32x8xf32> -> vector<32x8xf32>
    %c0_88 = arith.constant 0 : index
    %c0_89 = arith.constant 0 : index
    %92 = vector.load %arg8[%c0_88, %c0_89] : memref<1x8xf32, #tpu.memory_space<vmem>>, vector<1x8xf32>
    %93 = vector.broadcast %92 : vector<1x8xf32> to vector<32x8xf32>
    %94 = arith.mulf %91, %93 : vector<32x8xf32>
    %c0_90 = arith.constant 0 : index
    %c0_91 = arith.constant 0 : index
    %95 = vector.load %arg9[%c0_90, %c0_91] : memref<1x8xf32, #tpu.memory_space<vmem>>, vector<1x8xf32>
    %96 = vector.broadcast %95 : vector<1x8xf32> to vector<32x8xf32>
    %97 = arith.addf %94, %96 : vector<32x8xf32>
    %cst_92 = arith.constant 0.000000e+00 : f32
    %98 = vector.broadcast %cst_92 : f32 to vector<32x8xf32>
    %99 = arith.maximumf %97, %98 : vector<32x8xf32>
    %100 = vector.shape_cast %99 : vector<32x8xf32> to vector<2x8x2x8xf32>
    %cst_93 = arith.constant dense<0xFF800000> : vector<2x8x8xf32>
    %101 = vector.multi_reduction <maximumf>, %100, %cst_93 [2] : vector<2x8x2x8xf32> to vector<2x8x8xf32>
    %102 = vector.extract_strided_slice %101 {offsets = [0, 0, 0], sizes = [1, 8, 8], strides = [1, 1, 1]} : vector<2x8x8xf32> to vector<1x8x8xf32>
    %103 = vector.shape_cast %102 : vector<1x8x8xf32> to vector<8x8xf32>
    %104 = tpu.transpose %103, [1, 0] : vector<8x8xf32> -> vector<8x8xf32>
    %c0_94 = arith.constant 0 : index
    %c0_95 = arith.constant 0 : index
    %105 = vector.load %arg10[%c0_94, %c0_95] : memref<8x128xf32, #tpu.memory_space<vmem>>, vector<8x128xf32>
    %cst_96 = arith.constant dense<0.000000e+00> : vector<8x128xf32>
    %106 = tpu.matmul %104, %105, %cst_96 {dimension_numbers = #tpu.dot_dimension_numbers<[1], [0], [0], [1], [0, 0, 1, 1], [], []>} : vector<8x8xf32>, vector<8x128xf32>, vector<8x128xf32> -> vector<8x128xf32>
    %c0_97 = arith.constant 0 : index
    %c0_98 = arith.constant 0 : index
    %107 = vector.load %arg12[%c0_97, %c0_98] : memref<1x128xf32, #tpu.memory_space<vmem>>, vector<1x128xf32>
    %108 = vector.broadcast %107 : vector<1x128xf32> to vector<8x128xf32>
    %109 = arith.addf %106, %108 : vector<8x128xf32>
    %c0_99 = arith.constant 0 : index
    %c0_100 = arith.constant 0 : index
    %c0_101 = arith.constant 0 : index
    %110 = vector.load %arg19[%c0_99, %c0_100, %c0_101] : memref<2x8x128xf32, #tpu.memory_space<vmem>>, vector<1x8x128xf32>
    %111 = vector.shape_cast %110 : vector<1x8x128xf32> to vector<8x128xf32>
    %112 = vector.shape_cast %109 : vector<8x128xf32> to vector<1x8x128xf32>
    tpu.vector_store %arg19[%c0_99, %c0_100, %c0_101], %112 {strides = array<i32>} : memref<2x8x128xf32, #tpu.memory_space<vmem>>, vector<1x8x128xf32>,
    %113 = vector.extract_strided_slice %101 {offsets = [1, 0, 0], sizes = [1, 8, 8], strides = [1, 1, 1]} : vector<2x8x8xf32> to vector<1x8x8xf32>
    %114 = vector.shape_cast %113 : vector<1x8x8xf32> to vector<8x8xf32>
    %115 = tpu.transpose %114, [1, 0] : vector<8x8xf32> -> vector<8x8xf32>
    %c0_102 = arith.constant 0 : index
    %c0_103 = arith.constant 0 : index
    %116 = vector.load %arg10[%c0_102, %c0_103] : memref<8x128xf32, #tpu.memory_space<vmem>>, vector<8x128xf32>
    %cst_104 = arith.constant dense<0.000000e+00> : vector<8x128xf32>
    %117 = tpu.matmul %115, %116, %cst_104 {dimension_numbers = #tpu.dot_dimension_numbers<[1], [0], [0], [1], [0, 0, 1, 1], [], []>} : vector<8x8xf32>, vector<8x128xf32>, vector<8x128xf32> -> vector<8x128xf32>
    %c0_105 = arith.constant 0 : index
    %c0_106 = arith.constant 0 : index
    %118 = vector.load %arg12[%c0_105, %c0_106] : memref<1x128xf32, #tpu.memory_space<vmem>>, vector<1x128xf32>
    %119 = vector.broadcast %118 : vector<1x128xf32> to vector<8x128xf32>
    %120 = arith.addf %117, %119 : vector<8x128xf32>
    %c1_107 = arith.constant 1 : index
    %c0_108 = arith.constant 0 : index
    %c0_109 = arith.constant 0 : index
    %121 = vector.load %arg19[%c1_107, %c0_108, %c0_109] : memref<2x8x128xf32, #tpu.memory_space<vmem>>, vector<1x8x128xf32>
    %122 = vector.shape_cast %121 : vector<1x8x128xf32> to vector<8x128xf32>
    %123 = vector.shape_cast %120 : vector<8x128xf32> to vector<1x8x128xf32>
    tpu.vector_store %arg19[%c1_107, %c0_108, %c0_109], %123 {strides = array<i32>} : memref<2x8x128xf32, #tpu.memory_space<vmem>>, vector<1x8x128xf32>,
    %cst_110 = arith.constant 0.000000e+00 : f32
    %124 = vector.broadcast %cst_110 : f32 to vector<2x32xf32>
    %cst_111 = arith.constant 0.000000e+00 : f32
    %125 = vector.broadcast %cst_111 : f32 to vector<2x32xf32>
    %cst_112 = arith.constant 0.000000e+00 : f32
    %126 = vector.broadcast %cst_112 : f32 to vector<2x4xf32>
    %c0_113 = arith.constant 0 : index
    %c0_114 = arith.constant 0 : index
    %c0_115 = arith.constant 0 : index
    %127 = vector.load %arg19[%c0_113, %c0_114, %c0_115] : memref<2x8x128xf32, #tpu.memory_space<vmem>>, vector<2x1x128xf32>
    %128 = vector.shape_cast %127 : vector<2x1x128xf32> to vector<2x128xf32>
    %c0_116 = arith.constant 0 : index
    %c0_117 = arith.constant 0 : index
    %129 = vector.load %arg11[%c0_116, %c0_117] : memref<32x128xf32, #tpu.memory_space<vmem>>, vector<32x128xf32>
    %cst_118 = arith.constant dense<0.000000e+00> : vector<2x128xf32>
    %130 = tpu.matmul %124, %129, %cst_118 {dimension_numbers = #tpu.dot_dimension_numbers<[1], [0], [0], [1], [0, 0, 1, 1], [], []>} : vector<2x32xf32>, vector<32x128xf32>, vector<2x128xf32> -> vector<2x128xf32>
    %131 = arith.addf %128, %130 : vector<2x128xf32>
    %132 = arith.negf %131 : vector<2x128xf32>
    %133 = math.exp %132 : vector<2x128xf32>
    %cst_119 = arith.constant 1.000000e+00 : f32
    %134 = vector.broadcast %cst_119 : f32 to vector<2x128xf32>
    %135 = arith.addf %134, %133 : vector<2x128xf32>
    %136 = arith.divf %134, %135 : vector<2x128xf32>
    %137 = math.tanh %131 : vector<2x128xf32>
    %138 = vector.extract_strided_slice %136 {offsets = [0, 0], sizes = [2, 32], strides = [1, 1]} : vector<2x128xf32> to vector<2x32xf32>
    %139 = vector.extract_strided_slice %136 {offsets = [0, 32], sizes = [2, 32], strides = [1, 1]} : vector<2x128xf32> to vector<2x32xf32>
    %140 = vector.extract_strided_slice %137 {offsets = [0, 64], sizes = [2, 32], strides = [1, 1]} : vector<2x128xf32> to vector<2x32xf32>
    %141 = vector.extract_strided_slice %136 {offsets = [0, 96], sizes = [2, 32], strides = [1, 1]} : vector<2x128xf32> to vector<2x32xf32>
    %142 = arith.mulf %139, %125 : vector<2x32xf32>
    %143 = arith.mulf %138, %140 : vector<2x32xf32>
    %144 = arith.addf %142, %143 : vector<2x32xf32>
    %145 = math.tanh %144 : vector<2x32xf32>
    %146 = arith.mulf %141, %145 : vector<2x32xf32>
    %c0_120 = arith.constant 0 : index
    %c0_121 = arith.constant 0 : index
    %147 = vector.load %arg13[%c0_120, %c0_121] : memref<256x4xf32, #tpu.memory_space<vmem>>, vector<32x4xf32>
    %cst_122 = arith.constant dense<0.000000e+00> : vector<2x4xf32>
    %148 = tpu.matmul %146, %147, %cst_122 {dimension_numbers = #tpu.dot_dimension_numbers<[1], [0], [0], [1], [0, 0, 1, 1], [], []>} : vector<2x32xf32>, vector<32x4xf32>, vector<2x4xf32> -> vector<2x4xf32>
    %149 = arith.addf %126, %148 : vector<2x4xf32>
    %c0_123 = arith.constant 0 : index
    %c1_124 = arith.constant 1 : index
    %c0_125 = arith.constant 0 : index
    %150 = vector.load %arg19[%c0_123, %c1_124, %c0_125] : memref<2x8x128xf32, #tpu.memory_space<vmem>>, vector<2x1x128xf32>
    %151 = vector.shape_cast %150 : vector<2x1x128xf32> to vector<2x128xf32>
    %c0_126 = arith.constant 0 : index
    %c0_127 = arith.constant 0 : index
    %152 = vector.load %arg11[%c0_126, %c0_127] : memref<32x128xf32, #tpu.memory_space<vmem>>, vector<32x128xf32>
    %cst_128 = arith.constant dense<0.000000e+00> : vector<2x128xf32>
    %153 = tpu.matmul %146, %152, %cst_128 {dimension_numbers = #tpu.dot_dimension_numbers<[1], [0], [0], [1], [0, 0, 1, 1], [], []>} : vector<2x32xf32>, vector<32x128xf32>, vector<2x128xf32> -> vector<2x128xf32>
    %154 = arith.addf %151, %153 : vector<2x128xf32>
    %155 = arith.negf %154 : vector<2x128xf32>
    %156 = math.exp %155 : vector<2x128xf32>
    %cst_129 = arith.constant 1.000000e+00 : f32
    %157 = vector.broadcast %cst_129 : f32 to vector<2x128xf32>
    %158 = arith.addf %157, %156 : vector<2x128xf32>
    %159 = arith.divf %157, %158 : vector<2x128xf32>
    %160 = math.tanh %154 : vector<2x128xf32>
    %161 = vector.extract_strided_slice %159 {offsets = [0, 0], sizes = [2, 32], strides = [1, 1]} : vector<2x128xf32> to vector<2x32xf32>
    %162 = vector.extract_strided_slice %159 {offsets = [0, 32], sizes = [2, 32], strides = [1, 1]} : vector<2x128xf32> to vector<2x32xf32>
    %163 = vector.extract_strided_slice %160 {offsets = [0, 64], sizes = [2, 32], strides = [1, 1]} : vector<2x128xf32> to vector<2x32xf32>
    %164 = vector.extract_strided_slice %159 {offsets = [0, 96], sizes = [2, 32], strides = [1, 1]} : vector<2x128xf32> to vector<2x32xf32>
    %165 = arith.mulf %162, %144 : vector<2x32xf32>
    %166 = arith.mulf %161, %163 : vector<2x32xf32>
    %167 = arith.addf %165, %166 : vector<2x32xf32>
    %168 = math.tanh %167 : vector<2x32xf32>
    %169 = arith.mulf %164, %168 : vector<2x32xf32>
    %c32_130 = arith.constant 32 : index
    %c0_131 = arith.constant 0 : index
    %170 = vector.load %arg13[%c32_130, %c0_131] : memref<256x4xf32, #tpu.memory_space<vmem>>, vector<32x4xf32>
    %cst_132 = arith.constant dense<0.000000e+00> : vector<2x4xf32>
    %171 = tpu.matmul %169, %170, %cst_132 {dimension_numbers = #tpu.dot_dimension_numbers<[1], [0], [0], [1], [0, 0, 1, 1], [], []>} : vector<2x32xf32>, vector<32x4xf32>, vector<2x4xf32> -> vector<2x4xf32>
    %172 = arith.addf %149, %171 : vector<2x4xf32>
    %c0_133 = arith.constant 0 : index
    %c2_134 = arith.constant 2 : index
    %c0_135 = arith.constant 0 : index
    %173 = vector.load %arg19[%c0_133, %c2_134, %c0_135] : memref<2x8x128xf32, #tpu.memory_space<vmem>>, vector<2x1x128xf32>
    %174 = vector.shape_cast %173 : vector<2x1x128xf32> to vector<2x128xf32>
    %c0_136 = arith.constant 0 : index
    %c0_137 = arith.constant 0 : index
    %175 = vector.load %arg11[%c0_136, %c0_137] : memref<32x128xf32, #tpu.memory_space<vmem>>, vector<32x128xf32>
    %cst_138 = arith.constant dense<0.000000e+00> : vector<2x128xf32>
    %176 = tpu.matmul %169, %175, %cst_138 {dimension_numbers = #tpu.dot_dimension_numbers<[1], [0], [0], [1], [0, 0, 1, 1], [], []>} : vector<2x32xf32>, vector<32x128xf32>, vector<2x128xf32> -> vector<2x128xf32>
    %177 = arith.addf %174, %176 : vector<2x128xf32>
    %178 = arith.negf %177 : vector<2x128xf32>
    %179 = math.exp %178 : vector<2x128xf32>
    %cst_139 = arith.constant 1.000000e+00 : f32
    %180 = vector.broadcast %cst_139 : f32 to vector<2x128xf32>
    %181 = arith.addf %180, %179 : vector<2x128xf32>
    %182 = arith.divf %180, %181 : vector<2x128xf32>
    %183 = math.tanh %177 : vector<2x128xf32>
    %184 = vector.extract_strided_slice %182 {offsets = [0, 0], sizes = [2, 32], strides = [1, 1]} : vector<2x128xf32> to vector<2x32xf32>
    %185 = vector.extract_strided_slice %182 {offsets = [0, 32], sizes = [2, 32], strides = [1, 1]} : vector<2x128xf32> to vector<2x32xf32>
    %186 = vector.extract_strided_slice %183 {offsets = [0, 64], sizes = [2, 32], strides = [1, 1]} : vector<2x128xf32> to vector<2x32xf32>
    %187 = vector.extract_strided_slice %182 {offsets = [0, 96], sizes = [2, 32], strides = [1, 1]} : vector<2x128xf32> to vector<2x32xf32>
    %188 = arith.mulf %185, %167 : vector<2x32xf32>
    %189 = arith.mulf %184, %186 : vector<2x32xf32>
    %190 = arith.addf %188, %189 : vector<2x32xf32>
    %191 = math.tanh %190 : vector<2x32xf32>
    %192 = arith.mulf %187, %191 : vector<2x32xf32>
    %c64 = arith.constant 64 : index
    %c0_140 = arith.constant 0 : index
    %193 = vector.load %arg13[%c64, %c0_140] : memref<256x4xf32, #tpu.memory_space<vmem>>, vector<32x4xf32>
    %cst_141 = arith.constant dense<0.000000e+00> : vector<2x4xf32>
    %194 = tpu.matmul %192, %193, %cst_141 {dimension_numbers = #tpu.dot_dimension_numbers<[1], [0], [0], [1], [0, 0, 1, 1], [], []>} : vector<2x32xf32>, vector<32x4xf32>, vector<2x4xf32> -> vector<2x4xf32>
    %195 = arith.addf %172, %194 : vector<2x4xf32>
    %c0_142 = arith.constant 0 : index
    %c3 = arith.constant 3 : index
    %c0_143 = arith.constant 0 : index
    %196 = vector.load %arg19[%c0_142, %c3, %c0_143] : memref<2x8x128xf32, #tpu.memory_space<vmem>>, vector<2x1x128xf32>
    %197 = vector.shape_cast %196 : vector<2x1x128xf32> to vector<2x128xf32>
    %c0_144 = arith.constant 0 : index
    %c0_145 = arith.constant 0 : index
    %198 = vector.load %arg11[%c0_144, %c0_145] : memref<32x128xf32, #tpu.memory_space<vmem>>, vector<32x128xf32>
    %cst_146 = arith.constant dense<0.000000e+00> : vector<2x128xf32>
    %199 = tpu.matmul %192, %198, %cst_146 {dimension_numbers = #tpu.dot_dimension_numbers<[1], [0], [0], [1], [0, 0, 1, 1], [], []>} : vector<2x32xf32>, vector<32x128xf32>, vector<2x128xf32> -> vector<2x128xf32>
    %200 = arith.addf %197, %199 : vector<2x128xf32>
    %201 = arith.negf %200 : vector<2x128xf32>
    %202 = math.exp %201 : vector<2x128xf32>
    %cst_147 = arith.constant 1.000000e+00 : f32
    %203 = vector.broadcast %cst_147 : f32 to vector<2x128xf32>
    %204 = arith.addf %203, %202 : vector<2x128xf32>
    %205 = arith.divf %203, %204 : vector<2x128xf32>
    %206 = math.tanh %200 : vector<2x128xf32>
    %207 = vector.extract_strided_slice %205 {offsets = [0, 0], sizes = [2, 32], strides = [1, 1]} : vector<2x128xf32> to vector<2x32xf32>
    %208 = vector.extract_strided_slice %205 {offsets = [0, 32], sizes = [2, 32], strides = [1, 1]} : vector<2x128xf32> to vector<2x32xf32>
    %209 = vector.extract_strided_slice %206 {offsets = [0, 64], sizes = [2, 32], strides = [1, 1]} : vector<2x128xf32> to vector<2x32xf32>
    %210 = vector.extract_strided_slice %205 {offsets = [0, 96], sizes = [2, 32], strides = [1, 1]} : vector<2x128xf32> to vector<2x32xf32>
    %211 = arith.mulf %208, %190 : vector<2x32xf32>
    %212 = arith.mulf %207, %209 : vector<2x32xf32>
    %213 = arith.addf %211, %212 : vector<2x32xf32>
    %214 = math.tanh %213 : vector<2x32xf32>
    %215 = arith.mulf %210, %214 : vector<2x32xf32>
    %c96 = arith.constant 96 : index
    %c0_148 = arith.constant 0 : index
    %216 = vector.load %arg13[%c96, %c0_148] : memref<256x4xf32, #tpu.memory_space<vmem>>, vector<32x4xf32>
    %cst_149 = arith.constant dense<0.000000e+00> : vector<2x4xf32>
    %217 = tpu.matmul %215, %216, %cst_149 {dimension_numbers = #tpu.dot_dimension_numbers<[1], [0], [0], [1], [0, 0, 1, 1], [], []>} : vector<2x32xf32>, vector<32x4xf32>, vector<2x4xf32> -> vector<2x4xf32>
    %218 = arith.addf %195, %217 : vector<2x4xf32>
    %c0_150 = arith.constant 0 : index
    %c4 = arith.constant 4 : index
    %c0_151 = arith.constant 0 : index
    %219 = vector.load %arg19[%c0_150, %c4, %c0_151] : memref<2x8x128xf32, #tpu.memory_space<vmem>>, vector<2x1x128xf32>
    %220 = vector.shape_cast %219 : vector<2x1x128xf32> to vector<2x128xf32>
    %c0_152 = arith.constant 0 : index
    %c0_153 = arith.constant 0 : index
    %221 = vector.load %arg11[%c0_152, %c0_153] : memref<32x128xf32, #tpu.memory_space<vmem>>, vector<32x128xf32>
    %cst_154 = arith.constant dense<0.000000e+00> : vector<2x128xf32>
    %222 = tpu.matmul %215, %221, %cst_154 {dimension_numbers = #tpu.dot_dimension_numbers<[1], [0], [0], [1], [0, 0, 1, 1], [], []>} : vector<2x32xf32>, vector<32x128xf32>, vector<2x128xf32> -> vector<2x128xf32>
    %223 = arith.addf %220, %222 : vector<2x128xf32>
    %224 = arith.negf %223 : vector<2x128xf32>
    %225 = math.exp %224 : vector<2x128xf32>
    %cst_155 = arith.constant 1.000000e+00 : f32
    %226 = vector.broadcast %cst_155 : f32 to vector<2x128xf32>
    %227 = arith.addf %226, %225 : vector<2x128xf32>
    %228 = arith.divf %226, %227 : vector<2x128xf32>
    %229 = math.tanh %223 : vector<2x128xf32>
    %230 = vector.extract_strided_slice %228 {offsets = [0, 0], sizes = [2, 32], strides = [1, 1]} : vector<2x128xf32> to vector<2x32xf32>
    %231 = vector.extract_strided_slice %228 {offsets = [0, 32], sizes = [2, 32], strides = [1, 1]} : vector<2x128xf32> to vector<2x32xf32>
    %232 = vector.extract_strided_slice %229 {offsets = [0, 64], sizes = [2, 32], strides = [1, 1]} : vector<2x128xf32> to vector<2x32xf32>
    %233 = vector.extract_strided_slice %228 {offsets = [0, 96], sizes = [2, 32], strides = [1, 1]} : vector<2x128xf32> to vector<2x32xf32>
    %234 = arith.mulf %231, %213 : vector<2x32xf32>
    %235 = arith.mulf %230, %232 : vector<2x32xf32>
    %236 = arith.addf %234, %235 : vector<2x32xf32>
    %237 = math.tanh %236 : vector<2x32xf32>
    %238 = arith.mulf %233, %237 : vector<2x32xf32>
    %c128 = arith.constant 128 : index
    %c0_156 = arith.constant 0 : index
    %239 = vector.load %arg13[%c128, %c0_156] : memref<256x4xf32, #tpu.memory_space<vmem>>, vector<32x4xf32>
    %cst_157 = arith.constant dense<0.000000e+00> : vector<2x4xf32>
    %240 = tpu.matmul %238, %239, %cst_157 {dimension_numbers = #tpu.dot_dimension_numbers<[1], [0], [0], [1], [0, 0, 1, 1], [], []>} : vector<2x32xf32>, vector<32x4xf32>, vector<2x4xf32> -> vector<2x4xf32>
    %241 = arith.addf %218, %240 : vector<2x4xf32>
    %c0_158 = arith.constant 0 : index
    %c5 = arith.constant 5 : index
    %c0_159 = arith.constant 0 : index
    %242 = vector.load %arg19[%c0_158, %c5, %c0_159] : memref<2x8x128xf32, #tpu.memory_space<vmem>>, vector<2x1x128xf32>
    %243 = vector.shape_cast %242 : vector<2x1x128xf32> to vector<2x128xf32>
    %c0_160 = arith.constant 0 : index
    %c0_161 = arith.constant 0 : index
    %244 = vector.load %arg11[%c0_160, %c0_161] : memref<32x128xf32, #tpu.memory_space<vmem>>, vector<32x128xf32>
    %cst_162 = arith.constant dense<0.000000e+00> : vector<2x128xf32>
    %245 = tpu.matmul %238, %244, %cst_162 {dimension_numbers = #tpu.dot_dimension_numbers<[1], [0], [0], [1], [0, 0, 1, 1], [], []>} : vector<2x32xf32>, vector<32x128xf32>, vector<2x128xf32> -> vector<2x128xf32>
    %246 = arith.addf %243, %245 : vector<2x128xf32>
    %247 = arith.negf %246 : vector<2x128xf32>
    %248 = math.exp %247 : vector<2x128xf32>
    %cst_163 = arith.constant 1.000000e+00 : f32
    %249 = vector.broadcast %cst_163 : f32 to vector<2x128xf32>
    %250 = arith.addf %249, %248 : vector<2x128xf32>
    %251 = arith.divf %249, %250 : vector<2x128xf32>
    %252 = math.tanh %246 : vector<2x128xf32>
    %253 = vector.extract_strided_slice %251 {offsets = [0, 0], sizes = [2, 32], strides = [1, 1]} : vector<2x128xf32> to vector<2x32xf32>
    %254 = vector.extract_strided_slice %251 {offsets = [0, 32], sizes = [2, 32], strides = [1, 1]} : vector<2x128xf32> to vector<2x32xf32>
    %255 = vector.extract_strided_slice %252 {offsets = [0, 64], sizes = [2, 32], strides = [1, 1]} : vector<2x128xf32> to vector<2x32xf32>
    %256 = vector.extract_strided_slice %251 {offsets = [0, 96], sizes = [2, 32], strides = [1, 1]} : vector<2x128xf32> to vector<2x32xf32>
    %257 = arith.mulf %254, %236 : vector<2x32xf32>
    %258 = arith.mulf %253, %255 : vector<2x32xf32>
    %259 = arith.addf %257, %258 : vector<2x32xf32>
    %260 = math.tanh %259 : vector<2x32xf32>
    %261 = arith.mulf %256, %260 : vector<2x32xf32>
    %c160 = arith.constant 160 : index
    %c0_164 = arith.constant 0 : index
    %262 = vector.load %arg13[%c160, %c0_164] : memref<256x4xf32, #tpu.memory_space<vmem>>, vector<32x4xf32>
    %cst_165 = arith.constant dense<0.000000e+00> : vector<2x4xf32>
    %263 = tpu.matmul %261, %262, %cst_165 {dimension_numbers = #tpu.dot_dimension_numbers<[1], [0], [0], [1], [0, 0, 1, 1], [], []>} : vector<2x32xf32>, vector<32x4xf32>, vector<2x4xf32> -> vector<2x4xf32>
    %264 = arith.addf %241, %263 : vector<2x4xf32>
    %c0_166 = arith.constant 0 : index
    %c6 = arith.constant 6 : index
    %c0_167 = arith.constant 0 : index
    %265 = vector.load %arg19[%c0_166, %c6, %c0_167] : memref<2x8x128xf32, #tpu.memory_space<vmem>>, vector<2x1x128xf32>
    %266 = vector.shape_cast %265 : vector<2x1x128xf32> to vector<2x128xf32>
    %c0_168 = arith.constant 0 : index
    %c0_169 = arith.constant 0 : index
    %267 = vector.load %arg11[%c0_168, %c0_169] : memref<32x128xf32, #tpu.memory_space<vmem>>, vector<32x128xf32>
    %cst_170 = arith.constant dense<0.000000e+00> : vector<2x128xf32>
    %268 = tpu.matmul %261, %267, %cst_170 {dimension_numbers = #tpu.dot_dimension_numbers<[1], [0], [0], [1], [0, 0, 1, 1], [], []>} : vector<2x32xf32>, vector<32x128xf32>, vector<2x128xf32> -> vector<2x128xf32>
    %269 = arith.addf %266, %268 : vector<2x128xf32>
    %270 = arith.negf %269 : vector<2x128xf32>
    %271 = math.exp %270 : vector<2x128xf32>
    %cst_171 = arith.constant 1.000000e+00 : f32
    %272 = vector.broadcast %cst_171 : f32 to vector<2x128xf32>
    %273 = arith.addf %272, %271 : vector<2x128xf32>
    %274 = arith.divf %272, %273 : vector<2x128xf32>
    %275 = math.tanh %269 : vector<2x128xf32>
    %276 = vector.extract_strided_slice %274 {offsets = [0, 0], sizes = [2, 32], strides = [1, 1]} : vector<2x128xf32> to vector<2x32xf32>
    %277 = vector.extract_strided_slice %274 {offsets = [0, 32], sizes = [2, 32], strides = [1, 1]} : vector<2x128xf32> to vector<2x32xf32>
    %278 = vector.extract_strided_slice %275 {offsets = [0, 64], sizes = [2, 32], strides = [1, 1]} : vector<2x128xf32> to vector<2x32xf32>
    %279 = vector.extract_strided_slice %274 {offsets = [0, 96], sizes = [2, 32], strides = [1, 1]} : vector<2x128xf32> to vector<2x32xf32>
    %280 = arith.mulf %277, %259 : vector<2x32xf32>
    %281 = arith.mulf %276, %278 : vector<2x32xf32>
    %282 = arith.addf %280, %281 : vector<2x32xf32>
    %283 = math.tanh %282 : vector<2x32xf32>
    %284 = arith.mulf %279, %283 : vector<2x32xf32>
    %c192 = arith.constant 192 : index
    %c0_172 = arith.constant 0 : index
    %285 = vector.load %arg13[%c192, %c0_172] : memref<256x4xf32, #tpu.memory_space<vmem>>, vector<32x4xf32>
    %cst_173 = arith.constant dense<0.000000e+00> : vector<2x4xf32>
    %286 = tpu.matmul %284, %285, %cst_173 {dimension_numbers = #tpu.dot_dimension_numbers<[1], [0], [0], [1], [0, 0, 1, 1], [], []>} : vector<2x32xf32>, vector<32x4xf32>, vector<2x4xf32> -> vector<2x4xf32>
    %287 = arith.addf %264, %286 : vector<2x4xf32>
    %c0_174 = arith.constant 0 : index
    %c7 = arith.constant 7 : index
    %c0_175 = arith.constant 0 : index
    %288 = vector.load %arg19[%c0_174, %c7, %c0_175] : memref<2x8x128xf32, #tpu.memory_space<vmem>>, vector<2x1x128xf32>
    %289 = vector.shape_cast %288 : vector<2x1x128xf32> to vector<2x128xf32>
    %c0_176 = arith.constant 0 : index
    %c0_177 = arith.constant 0 : index
    %290 = vector.load %arg11[%c0_176, %c0_177] : memref<32x128xf32, #tpu.memory_space<vmem>>, vector<32x128xf32>
    %cst_178 = arith.constant dense<0.000000e+00> : vector<2x128xf32>
    %291 = tpu.matmul %284, %290, %cst_178 {dimension_numbers = #tpu.dot_dimension_numbers<[1], [0], [0], [1], [0, 0, 1, 1], [], []>} : vector<2x32xf32>, vector<32x128xf32>, vector<2x128xf32> -> vector<2x128xf32>
    %292 = arith.addf %289, %291 : vector<2x128xf32>
    %293 = arith.negf %292 : vector<2x128xf32>
    %294 = math.exp %293 : vector<2x128xf32>
    %cst_179 = arith.constant 1.000000e+00 : f32
    %295 = vector.broadcast %cst_179 : f32 to vector<2x128xf32>
    %296 = arith.addf %295, %294 : vector<2x128xf32>
    %297 = arith.divf %295, %296 : vector<2x128xf32>
    %298 = math.tanh %292 : vector<2x128xf32>
    %299 = vector.extract_strided_slice %297 {offsets = [0, 0], sizes = [2, 32], strides = [1, 1]} : vector<2x128xf32> to vector<2x32xf32>
    %300 = vector.extract_strided_slice %297 {offsets = [0, 32], sizes = [2, 32], strides = [1, 1]} : vector<2x128xf32> to vector<2x32xf32>
    %301 = vector.extract_strided_slice %298 {offsets = [0, 64], sizes = [2, 32], strides = [1, 1]} : vector<2x128xf32> to vector<2x32xf32>
    %302 = vector.extract_strided_slice %297 {offsets = [0, 96], sizes = [2, 32], strides = [1, 1]} : vector<2x128xf32> to vector<2x32xf32>
    %303 = arith.mulf %300, %282 : vector<2x32xf32>
    %304 = arith.mulf %299, %301 : vector<2x32xf32>
    %305 = arith.addf %303, %304 : vector<2x32xf32>
    %306 = math.tanh %305 : vector<2x32xf32>
    %307 = arith.mulf %302, %306 : vector<2x32xf32>
    %c224 = arith.constant 224 : index
    %c0_180 = arith.constant 0 : index
    %308 = vector.load %arg13[%c224, %c0_180] : memref<256x4xf32, #tpu.memory_space<vmem>>, vector<32x4xf32>
    %cst_181 = arith.constant dense<0.000000e+00> : vector<2x4xf32>
    %309 = tpu.matmul %307, %308, %cst_181 {dimension_numbers = #tpu.dot_dimension_numbers<[1], [0], [0], [1], [0, 0, 1, 1], [], []>} : vector<2x32xf32>, vector<32x4xf32>, vector<2x4xf32> -> vector<2x4xf32>
    %310 = arith.addf %287, %309 : vector<2x4xf32>
    %c0_182 = arith.constant 0 : index
    %c0_183 = arith.constant 0 : index
    %311 = vector.load %arg14[%c0_182, %c0_183] : memref<1x4xf32, #tpu.memory_space<vmem>>, vector<1x4xf32>
    %312 = vector.broadcast %311 : vector<1x4xf32> to vector<2x4xf32>
    %313 = arith.addf %310, %312 : vector<2x4xf32>
    %cst_184 = arith.constant dense<0xFF800000> : vector<2xf32>
    %314 = vector.multi_reduction <maximumf>, %313, %cst_184 [1] : vector<2x4xf32> to vector<2xf32>
    %315 = vector.shape_cast %314 : vector<2xf32> to vector<2x1xf32>
    %316 = vector.broadcast %315 : vector<2x1xf32> to vector<2x4xf32>
    %317 = arith.subf %313, %316 : vector<2x4xf32>
    %318 = math.exp %317 : vector<2x4xf32>
    %cst_185 = arith.constant dense<0.000000e+00> : vector<2xf32>
    %319 = vector.multi_reduction <add>, %318, %cst_185 [1] : vector<2x4xf32> to vector<2xf32>
    %320 = vector.shape_cast %319 : vector<2xf32> to vector<2x1xf32>
    %321 = tpu.reciprocal %320 {approx = true} : vector<2x1xf32> -> vector<2x1xf32>
    %322 = vector.broadcast %321 : vector<2x1xf32> to vector<2x4xf32>
    %323 = arith.mulf %318, %322 : vector<2x4xf32>
    %c0_186 = arith.constant 0 : index
    %c0_187 = arith.constant 0 : index
    %324 = vector.load %arg15[%c0_186, %c0_187] : memref<2x4xf32, #tpu.memory_space<vmem>>, vector<2x4xf32>
    tpu.vector_store %arg15[%c0_186, %c0_187], %323 {strides = array<i32>} : memref<2x4xf32, #tpu.memory_space<vmem>>, vector<2x4xf32>,
    return
  }
}

</mosaic_0001>

<bundles_post_ra>
// kernel: forward.1
= control target key start
LH: loop header
LB: loop body
LE: loop exit
PB: predicated region body
PF: predicated region fallthrough
CT: control target
= control target key end

     0   :  { %vm118_vm0 = vcmask 326656   ;;  %s7099_s0 = inlined_call_operand.vmem [shape: f32[2,8,64], index: 0, kind: input, shape index: {}]   ;;  %s7100_s1 = inlined_call_operand.vmem [shape: f32[40,8], index: 1, kind: input, shape index: {}]   ;;  %s7101_s2 = inlined_call_operand.vmem [shape: f32[1,8], index: 2, kind: input, shape index: {}]   ;;  %s7102_s3 = inlined_call_operand.vmem [shape: f32[1,8], index: 3, kind: input, shape index: {}]   ;;  %s7103_s4 = inlined_call_operand.vmem [shape: f32[24,16], index: 4, kind: input, shape index: {}]   ;;  %s7104_s5 = inlined_call_operand.vmem [shape: f32[1,16], index: 5, kind: input, shape index: {}]   ;;  %s7105_s6 = inlined_call_operand.vmem [shape: f32[1,16], index: 6, kind: input, shape index: {}]   ;;  %s7106_s7 = inlined_call_operand.vmem [shape: f32[48,8], index: 7, kind: input, shape index: {}]   ;;  %s7107_s8 = inlined_call_operand.vmem [shape: f32[1,8], index: 8, kind: input, shape index: {}]   ;;  %s7108_s9 = inlined_call_operand.vmem [shape: f32[1,8], index: 9, kind: input, shape index: {}]   ;;  %s7109_s10 = inlined_call_operand.vmem [shape: f32[8,128], index: 10, kind: input, shape index: {}]   ;;  %s7110_s11 = inlined_call_operand.vmem [shape: f32[32,128], index: 11, kind: input, shape index: {}]   ;;  %s7111_s12 = inlined_call_operand.vmem [shape: f32[1,128], index: 12, kind: input, shape index: {}]   ;;  %s7112_s13 = inlined_call_operand.vmem [shape: f32[256,4], index: 13, kind: input, shape index: {}]   ;;  %s7113_s14 = inlined_call_operand.vmem [shape: f32[1,4], index: 14, kind: input, shape index: {}]   ;;  %s7114_s15 = inlined_call_operand.hbm [shape: f32[2,4], index: 15, kind: output, shape index: {}]  }
   0x1   :  { %v51_v0 = vld [vmem:[%s7099_s0] sm:$0xff] }
   0x2   :  { %20 = vsyncpa [#allocation7], 0  ;;  %52 = vxpose.xlu0.b32.start.end [1/1] (short) (narrow) %v51_v0, 64  ;;  %v5545_v1 = vmov 0.0   ;;  %v4804_v2 = vld [vmem:[%s7099_s0 + $0x8] sm:$0xff]  ;;  %vm135_vm1 = vcmask 64512  }
   0x3   :  { %119 = vst.msk [vmem:[#allocation2] sm:$0xff] %vm118_vm0, %v5545_v1  ;;  %120 = vst.msk [vmem:[#allocation2 + $0x8] sm:$0xff] %vm118_vm0, %v5545_v1  ;;  %s5546_s22 = smov 32   ;;  %s5547_s23 = smov 8   ;;  %v449_v9 = vld [vmem:[%s7100_s1] sm:$0xff]  ;;  %v450_v10 = vld [vmem:[%s7100_s1 + $0x8] sm:$0xff] }
   0x4   :  { %121 = vst.msk [vmem:[#allocation2 + $0x10] sm:$0xff] %vm118_vm0, %v5545_v1  ;;  %122 = vst.msk [vmem:[#allocation2 + $0x18] sm:$0xff] %vm118_vm0, %v5545_v1  ;;  %s5548_s24 = smov 16   ;;  %s5549_s25 = smov 24   ;;  %v5257_v12 = vpack.c.bf16 %v450_v10, %v449_v9  ;;  %vm143_vm2 = vcmask 62464   ;;  %v451_v13 = vld [vmem:[%s7100_s1 + $0x10] sm:$0xff] }
   0x5   :  { %123 = vst.msk [vmem:[#allocation2 + $0x20] sm:$0xff] %vm118_vm0, %v5545_v1  ;;  %124 = vst.msk [vmem:[#allocation2 + $0x28] sm:$0xff] %vm118_vm0, %v5545_v1  ;;  %v452_v14 = vld [vmem:[%s7100_s1 + $0x18] sm:$0xff]  ;;  %v453_v18 = vld [vmem:[%s7100_s1 + $0x20] sm:$0xff]  ;;  %vm186_vm3 = vcmask 130112   ;;  %vm260_vm4 = vcmask 195712  }
   0x6   :  { %125 = vst.msk [vmem:[#allocation2 + $0x30] sm:$0xff] %vm118_vm0, %v5545_v1  ;;  %126 = vst.msk [vmem:[#allocation2 + $0x38] sm:$0xff] %vm118_vm0, %v5545_v1  ;;  %5258 = vmatprep.subr.bf16.mxu0 %v5257_v12  ;;  %v5261_v16 = vpack.c.bf16 %v452_v14, %v451_v13  ;;  %vm325_vm5 = vcmask 261313   ;;  %vm391_vm6 = vcmask 326914   ;;  %vm327_vm7 = vcmask 261312   ;;  %s5553_s1 = smov 64  }
   0x7   :  { %127 = vst.msk [vmem:[#allocation2 + $0x40] sm:$0xff] %vm118_vm0, %v5545_v1  ;;  %128 = vst.msk [vmem:[#allocation2 + $0x48] sm:$0xff] %vm118_vm0, %v5545_v1  ;;  %5260 = vmatpush3.bf16.msra.mxu0 %v5257_v12  ;;  %vm393_vm8 = vcmask 326912   ;;  %vm194_vm9 = vcmask 129088   ;;  %vm1510_vm10 = vcmask 195584   ;;  %vm1061_vm11 = vcmask 58368  }
   0x8   :  { %129 = vst.msk [vmem:[#allocation2 + $0x50] sm:$0xff] %vm118_vm0, %v5545_v1  ;;  %130 = vst.msk [vmem:[#allocation2 + $0x58] sm:$0xff] %vm118_vm0, %v5545_v1  ;;  %5262 = vmatprep.subr.bf16.mxu0 %v5261_v16  ;;  %vm1581_vm12 = vcmask 1041409   ;;  %vm1583_vm13 = vcmask 1042434   ;;  %vm1585_vm14 = vcmask 1043459   ;;  %vm1587_vm15 = vcmask 1044484  }
   0x9   :  { %131 = vst.msk [vmem:[#allocation2 + $0x60] sm:$0xff] %vm118_vm0, %v5545_v1  ;;  %132 = vst.msk [vmem:[#allocation2 + $0x68] sm:$0xff] %vm118_vm0, %v5545_v1 }
   0xa   :  { %133 = vst.msk [vmem:[#allocation2 + $0x70] sm:$0xff] %vm118_vm0, %v5545_v1  ;;  %134 = vst.msk [vmem:[#allocation2 + $0x78] sm:$0xff] %vm118_vm0, %v5545_v1 }
   0xb   :  { %5264 = vmatpush3.bf16.msra.mxu0 %v5261_v16  ;;  %1511 = vst.msk [vmem:[#allocation3] sm:$0xff] %vm1510_vm10, %v5545_v1  ;;  %1512 = vst.msk [vmem:[#allocation3 + $0x8] sm:$0xff] %vm1510_vm10, %v5545_v1 }
   0xc   :  { %5009 = vmatprep.subr.mxu0 %v453_v18  ;;  %1513 = vst.msk [vmem:[#allocation3 + $0x10] sm:$0xff] %vm1510_vm10, %v5545_v1  ;;  %1514 = vst.msk [vmem:[#allocation3 + $0x18] sm:$0xff] %vm1510_vm10, %v5545_v1 }
   0xd   :  { %1515 = vst.msk [vmem:[#allocation3 + $0x20] sm:$0xff] %vm1510_vm10, %v5545_v1  ;;  %1516 = vst.msk [vmem:[#allocation3 + $0x28] sm:$0xff] %vm1510_vm10, %v5545_v1 }
   0xe   :  { %1517 = vst.msk [vmem:[#allocation3 + $0x30] sm:$0xff] %vm1510_vm10, %v5545_v1  ;;  %1518 = vst.msk [vmem:[#allocation3 + $0x38] sm:$0xff] %vm1510_vm10, %v5545_v1 }
   0xf   :  { %5010 = vmatpush3.msra.mxu0 %v453_v18 }
  0x1f   :  { %86 = vxpose.xlu0.b32.start.end [1/1] (short) (narrow) %v4804_v2, 64 }
  0x82   :  { %v68_v3 = vpop.trf.xlu0 }
  0x83   :  { %367 = vrot.lane.b32.xlu0 %v68_v3, %s5546_s22  ;;  %162 = vrot.lane.b32.xlu1 %v68_v3, %s5547_s23  ;;  %136 = vst.msk [vmem:[#allocation2 + $0x2] sm:$0xff] %vm135_vm1, %v68_v3 }
  0x86   :  { %v69_v4 = vpop.trf.xlu0 }
  0x87   :  { %236 = vrot.lane.b32.xlu1 %v68_v3, %s5548_s24  ;;  %137 = vst.msk [vmem:[#allocation2 + $0xa] sm:$0xff] %vm135_vm1, %v69_v4 }
  0x8a   :  { %v70_v5 = vpop.trf.xlu0 }
  0x8b   :  { %301 = vrot.lane.b32.xlu1 %v68_v3, %s5549_s25  ;;  %138 = vst.msk [vmem:[#allocation2 + $0x12] sm:$0xff] %vm135_vm1, %v70_v5 }
  0x8e   :  { %v71_v6 = vpop.trf.xlu0 }
  0x8f   :  { %164 = vrot.lane.b32.xlu1 %v69_v4, %s5547_s23  ;;  %139 = vst.msk [vmem:[#allocation2 + $0x1a] sm:$0xff] %vm135_vm1, %v71_v6 }
  0x92   :  { %v72_v7 = vpop.trf.xlu0 }
  0x93   :  { %238 = vrot.lane.b32.xlu1 %v69_v4, %s5548_s24  ;;  %140 = vst.msk [vmem:[#allocation2 + $0x22] sm:$0xff] %vm135_vm1, %v72_v7 }
  0x96   :  { %v5684_v8 = vpop.trf.xlu0 }
  0x97   :  { %303 = vrot.lane.b32.xlu1 %v69_v4, %s5549_s25  ;;  %141 = vst.msk [vmem:[#allocation2 + $0x2a] sm:$0xff] %vm135_vm1, %v5684_v8 }
  0x9a   :  { %v5695_v11 = vpop.trf.xlu0 }
  0x9b   :  { %369 = vrot.lane.b32.xlu1 %v69_v4, %s5546_s22  ;;  %142 = vst.msk [vmem:[#allocation2 + $0x32] sm:$0xff] %vm135_vm1, %v5695_v11 }
  0x9e   :  { %v75_v15 = vpop.trf.xlu0 }
  0x9f   :  { %166 = vrot.lane.b32.xlu1 %v70_v5, %s5547_s23  ;;  %176 = vrot.lane.b32.xlu0 %v75_v15, %s5547_s23  ;;  %144 = vst.msk [vmem:[#allocation2 + $0x3a] sm:$0x3f] %vm143_vm2, %v75_v15 }
  0xa2   :  { %v5709_v17 = vpop.trf.xlu0 }
  0xa3   :  { %240 = vrot.lane.b32.xlu1 %v70_v5, %s5548_s24  ;;  %250 = vrot.lane.b32.xlu0 %v75_v15, %s5548_s24  ;;  %146 = vst.msk [vmem:[#allocation2 + $0x42] sm:$0xff] %vm135_vm1, %v5709_v17 }
  0xa6   :  { %v5718_v19 = vpop.trf.xlu0 }
  0xa7   :  { %305 = vrot.lane.b32.xlu1 %v70_v5, %s5549_s25  ;;  %381 = vrot.lane.b32.xlu0 %v75_v15, %s5546_s22  ;;  %147 = vst.msk [vmem:[#allocation2 + $0x4a] sm:$0xff] %vm135_vm1, %v5718_v19 }
  0xaa   :  { %v5724_v20 = vpop.trf.xlu0 }
  0xab   :  { %371 = vrot.lane.b32.xlu1 %v70_v5, %s5546_s22  ;;  %206 = vrot.lane.b32.xlu0 %v5718_v19, %s5547_s23  ;;  %148 = vst.msk [vmem:[#allocation2 + $0x52] sm:$0xff] %vm135_vm1, %v5724_v20 }
  0xae   :  { %v5731_v21 = vpop.trf.xlu0 }
  0xaf   :  { %168 = vrot.lane.b32.xlu1 %v71_v6, %s5547_s23  ;;  %269 = vrot.lane.b32.xlu0 %v5709_v17, %s5548_s24  ;;  %149 = vst.msk [vmem:[#allocation2 + $0x5a] sm:$0xff] %vm135_vm1, %v5731_v21 }
  0xb2   :  { %v5738_v22 = vpop.trf.xlu0 }
  0xb3   :  { %242 = vrot.lane.b32.xlu1 %v71_v6, %s5548_s24  ;;  %273 = vrot.lane.b32.xlu0 %v5724_v20, %s5548_s24  ;;  %150 = vst.msk [vmem:[#allocation2 + $0x62] sm:$0xff] %vm135_vm1, %v5738_v22 }
  0xb6   :  { %v5745_v23 = vpop.trf.xlu0 }
  0xb7   :  { %307 = vrot.lane.b32.xlu1 %v71_v6, %s5549_s25  ;;  %337 = vrot.lane.b32.xlu0 %v5718_v19, %s5549_s25  ;;  %151 = vst.msk [vmem:[#allocation2 + $0x6a] sm:$0xff] %vm135_vm1, %v5745_v23 }
  0xba   :  { %v5752_v24 = vpop.trf.xlu0 }
  0xbb   :  { %373 = vrot.lane.b32.xlu1 %v71_v6, %s5546_s22  ;;  %401 = vrot.lane.b32.xlu0 %v5709_v17, %s5546_s22  ;;  %152 = vst.msk [vmem:[#allocation2 + $0x72] sm:$0xff] %vm135_vm1, %v5752_v24 }
  0xbe   :  { %v5759_v25 = vpop.trf.xlu0 }
  0xbf   :  { %170 = vrot.lane.b32.xlu1 %v72_v7, %s5547_s23  ;;  %210 = vrot.lane.b32.xlu0 %v5731_v21, %s5547_s23  ;;  %153 = vst.msk [vmem:[#allocation2 + $0x7a] sm:$0x3f] %vm143_vm2, %v5759_v25  ;;  %vm1591_vm2 = vcmask 1046534  }
  0xc3   :  { %244 = vrot.lane.b32.xlu1 %v72_v7, %s5548_s24  ;;  %212 = vrot.lane.b32.xlu0 %v5738_v22, %s5547_s23 }
  0xc7   :  { %309 = vrot.lane.b32.xlu1 %v72_v7, %s5549_s25  ;;  %277 = vrot.lane.b32.xlu0 %v5738_v22, %s5548_s24 }
  0xcb   :  { %375 = vrot.lane.b32.xlu1 %v72_v7, %s5546_s22  ;;  %343 = vrot.lane.b32.xlu0 %v5738_v22, %s5549_s25 }
  0xcf   :  { %172 = vrot.lane.b32.xlu1 %v5684_v8, %s5547_s23  ;;  %214 = vrot.lane.b32.xlu0 %v5745_v23, %s5547_s23 }
  0xd3   :  { %246 = vrot.lane.b32.xlu1 %v5684_v8, %s5548_s24  ;;  %216 = vrot.lane.b32.xlu0 %v5752_v24, %s5547_s23 }
  0xd7   :  { %311 = vrot.lane.b32.xlu1 %v5684_v8, %s5549_s25  ;;  %281 = vrot.lane.b32.xlu0 %v5752_v24, %s5548_s24 }
  0xdb   :  { %174 = vrot.lane.b32.xlu1 %v5695_v11, %s5547_s23  ;;  %347 = vrot.lane.b32.xlu0 %v5752_v24, %s5549_s25 }
  0xdf   :  { %248 = vrot.lane.b32.xlu1 %v5695_v11, %s5548_s24  ;;  %218 = vrot.lane.b32.xlu0 %v5759_v25, %s5547_s23 }
  0xe3   :  { %313 = vrot.lane.b32.xlu1 %v5695_v11, %s5549_s25  ;;  %283 = vrot.lane.b32.xlu0 %v5759_v25, %s5548_s24 }
  0xe7   :  { %377 = vrot.lane.b32.xlu1 %v5684_v8, %s5546_s22  ;;  %415 = vrot.lane.b32.xlu0 %v5759_v25, %s5546_s22 }
  0xeb   :  { %379 = vrot.lane.b32.xlu1 %v5695_v11, %s5546_s22 }
  0xef   :  { %315 = vrot.lane.b32.xlu1 %v75_v15, %s5549_s25 }
  0xf3   :  { %204 = vrot.lane.b32.xlu1 %v5709_v17, %s5547_s23 }
  0xf5   :  { %v163_v26 = vpop.permute.xlu1 %162  ;;  %v368_v29 = vpop.permute.xlu0 %367 }
  0xf6   :  { %187 = vst.msk [vmem:[#allocation2 + $0x1] sm:$0xff] %vm186_vm3, %v163_v26 }
  0xf7   :  { %208 = vrot.lane.b32.xlu1 %v5724_v20, %s5547_s23 }
  0xf9   :  { %v237_v27 = vpop.permute.xlu1 %236 }
  0xfa   :  { %261 = vst.msk [vmem:[#allocation2] sm:$0xff] %vm260_vm4, %v237_v27 }
  0xfb   :  { %271 = vrot.lane.b32.xlu1 %v5718_v19, %s5548_s24 }
  0xfd   :  { %v302_v28 = vpop.permute.xlu1 %301 }
  0xfe   :  { %326 = vst.msk [vmem:[#allocation2 - $0x1] sm:$0xfe] %vm325_vm5, %v302_v28 }
  0xff   :  { %392 = vst.msk [vmem:[#allocation2 - $0x2] sm:$0xfc] %vm391_vm6, %v368_v29  ;;  %335 = vrot.lane.b32.xlu1 %v5709_v17, %s5549_s25 }
 0x101   :  { %v165_v30 = vpop.permute.xlu1 %164 }
 0x102   :  { %188 = vst.msk [vmem:[#allocation2 + $0x9] sm:$0xff] %vm186_vm3, %v165_v30 }
 0x103   :  { %339 = vrot.lane.b32.xlu1 %v5724_v20, %s5549_s25 }
 0x105   :  { %v239_v31 = vpop.permute.xlu1 %238 }
 0x106   :  { %262 = vst.msk [vmem:[#allocation2 + $0x8] sm:$0xff] %vm260_vm4, %v239_v31 }
 0x107   :  { %403 = vrot.lane.b32.xlu1 %v5718_v19, %s5546_s22 }
 0x109   :  { %v304_v32 = vpop.permute.xlu1 %303 }
 0x10a   :  { %328 = vst.msk [vmem:[#allocation2 + $0x7] sm:$0xff] %vm327_vm7, %v304_v32 }
 0x10b   :  { %405 = vrot.lane.b32.xlu1 %v5724_v20, %s5546_s22 }
 0x10d   :  { %v370_v33 = vpop.permute.xlu1 %369 }
 0x10e   :  { %394 = vst.msk [vmem:[#allocation2 + $0x6] sm:$0xff] %vm393_vm8, %v370_v33 }
 0x10f   :  { %275 = vrot.lane.b32.xlu1 %v5731_v21, %s5548_s24 }
 0x111   :  { %v167_v34 = vpop.permute.xlu1 %166  ;;  %v177_v35 = vpop.permute.xlu0 %176 }
 0x112   :  { %189 = vst.msk [vmem:[#allocation2 + $0x11] sm:$0xff] %vm186_vm3, %v167_v34 }
 0x113   :  { %195 = vst.msk [vmem:[#allocation2 + $0x39] sm:$0x7f] %vm194_vm9, %v177_v35  ;;  %341 = vrot.lane.b32.xlu1 %v5731_v21, %s5549_s25 }
 0x115   :  { %v241_v36 = vpop.permute.xlu1 %240  ;;  %v433_v37 = vld [vmem:[#allocation2] sm:$0xff]  ;;  %v5834_v38 = vpop.permute.xlu0 %250 }
 0x116   :  { %263 = vst.msk [vmem:[#allocation2 + $0x10] sm:$0xff] %vm260_vm4, %v241_v36  ;;  %5011 = vmatprep.mubr.msk.f32.mxu0 %vm118_vm0, %v433_v37 }
 0x117   :  { %407 = vrot.lane.b32.xlu1 %v5731_v21, %s5546_s22 }
 0x119   :  { %v306_v39 = vpop.permute.xlu1 %305  ;;  %v5840_v40 = vpop.permute.xlu0 %381 }
 0x11a   :  { %329 = vst.msk [vmem:[#allocation2 + $0xf] sm:$0xff] %vm327_vm7, %v306_v39 }
 0x11b   :  { %409 = vrot.lane.b32.xlu1 %v5738_v22, %s5546_s22 }
 0x11d   :  { %v372_v41 = vpop.permute.xlu1 %371  ;;  %v207_v42 = vpop.permute.xlu0 %206 }
 0x11e   :  { %395 = vst.msk [vmem:[#allocation2 + $0xe] sm:$0xff] %vm393_vm8, %v372_v41 }
 0x11f   :  { %229 = vst.msk [vmem:[#allocation2 + $0x49] sm:$0xff] %vm186_vm3, %v207_v42  ;;  %279 = vrot.lane.b32.xlu1 %v5745_v23, %s5548_s24 }
 0x121   :  { %v169_v43 = vpop.permute.xlu1 %168  ;;  %v5849_v44 = vpop.permute.xlu0 %269 }
 0x122   :  { %190 = vst.msk [vmem:[#allocation2 + $0x19] sm:$0xff] %vm186_vm3, %v169_v43  ;;  %v5550_v43 = vmov 1983009808  }
 0x123   :  { %345 = vrot.lane.b32.xlu1 %v5745_v23, %s5549_s25 }
 0x125   :  { %v243_v45 = vpop.permute.xlu1 %242  ;;  %v434_v46 = vld [vmem:[#allocation2 + $0x8] sm:$0xff]  ;;  %v5854_v47 = vpop.permute.xlu0 %273 }
 0x126   :  { %264 = vst.msk [vmem:[#allocation2 + $0x18] sm:$0xff] %vm260_vm4, %v243_v45  ;;  %5012 = vmatmul.mubr.msk.f32.vlgmr.msra.gmra.mrb[0].mxu0 %vm118_vm0, %v434_v46  ;;  %v729_v45 = vlaneseq  ;;  %v5958_v46 = vld [vmem:[%s7101_s2] ss:$0 sm:$0xff] }
 0x127   :  { %411 = vrot.lane.b32.xlu1 %v5745_v23, %s5546_s22 }
 0x129   :  { %v308_v48 = vpop.permute.xlu1 %307  ;;  %v5860_v49 = vpop.permute.xlu0 %337 }
 0x12a   :  { %330 = vst.msk [vmem:[#allocation2 + $0x17] sm:$0xff] %vm327_vm7, %v308_v48  ;;  %v730_v48 = vshrl.u32 %v729_v45, 7 }
 0x12b   :  { %413 = vrot.lane.b32.xlu1 %v5752_v24, %s5546_s22 }
 0x12d   :  { %v374_v50 = vpop.permute.xlu1 %373  ;;  %v5865_v51 = vpop.permute.xlu0 %401 }
 0x12e   :  { %396 = vst.msk [vmem:[#allocation2 + $0x16] sm:$0xff] %vm393_vm8, %v374_v50  ;;  %v5963_v50 = vld [vmem:[%s7102_s3] ss:$0 sm:$0xff] }
 0x12f   :  { %349 = vrot.lane.b32.xlu1 %v5759_v25, %s5549_s25 }
 0x131   :  { %v171_v52 = vpop.permute.xlu1 %170  ;;  %v211_v53 = vpop.permute.xlu0 %210 }
 0x132   :  { %191 = vst.msk [vmem:[#allocation2 + $0x21] sm:$0xff] %vm186_vm3, %v171_v52  ;;  %231 = vst.msk [vmem:[#allocation2 + $0x59] sm:$0xff] %vm186_vm3, %v211_v53 }
 0x135   :  { %v245_v54 = vpop.permute.xlu1 %244  ;;  %v435_v55 = vld [vmem:[#allocation2 + $0x10] sm:$0xff]  ;;  %v213_v56 = vpop.permute.xlu0 %212 }
 0x136   :  { %265 = vst.msk [vmem:[#allocation2 + $0x20] sm:$0xff] %vm260_vm4, %v245_v54  ;;  %5014 = vmatprep.mubr.msk.f32.mxu0 %vm118_vm0, %v435_v55 }
 0x137   :  { %232 = vst.msk [vmem:[#allocation2 + $0x61] sm:$0xff] %vm186_vm3, %v213_v56 }
 0x139   :  { %v310_v57 = vpop.permute.xlu1 %309  ;;  %v278_v58 = vpop.permute.xlu0 %277 }
 0x13a   :  { %331 = vst.msk [vmem:[#allocation2 + $0x1f] sm:$0xff] %vm327_vm7, %v310_v57 }
 0x13b   :  { %297 = vst.msk [vmem:[#allocation2 + $0x60] sm:$0xff] %vm260_vm4, %v278_v58 }
 0x13d   :  { %v376_v59 = vpop.permute.xlu1 %375  ;;  %v5877_v60 = vpop.permute.xlu0 %343 }
 0x13e   :  { %397 = vst.msk [vmem:[#allocation2 + $0x1e] sm:$0xff] %vm393_vm8, %v376_v59 }
 0x141   :  { %v173_v61 = vpop.permute.xlu1 %172  ;;  %v215_v62 = vpop.permute.xlu0 %214 }
 0x142   :  { %192 = vst.msk [vmem:[#allocation2 + $0x29] sm:$0xff] %vm186_vm3, %v173_v61  ;;  %233 = vst.msk [vmem:[#allocation2 + $0x69] sm:$0xff] %vm186_vm3, %v215_v62 }
 0x145   :  { %v247_v63 = vpop.permute.xlu1 %246  ;;  %v436_v0 = vld [vmem:[#allocation2 + $0x18] sm:$0xff]  ;;  %v217_v2 = vpop.permute.xlu0 %216 }
 0x146   :  { %266 = vst.msk [vmem:[#allocation2 + $0x28] sm:$0xff] %vm260_vm4, %v247_v63  ;;  %5015 = vmatmul.mubr.msk.f32.gmra.mrb[2].mxu0 %vm118_vm0, %v436_v0 }
 0x147   :  { %234 = vst.msk [vmem:[#allocation2 + $0x71] sm:$0xff] %vm186_vm3, %v217_v2 }
 0x149   :  { %v312_v3 = vpop.permute.xlu1 %311  ;;  %v282_v4 = vpop.permute.xlu0 %281 }
 0x14a   :  { %332 = vst.msk [vmem:[#allocation2 + $0x27] sm:$0xff] %vm327_vm7, %v312_v3 }
 0x14b   :  { %299 = vst.msk [vmem:[#allocation2 + $0x70] sm:$0xff] %vm260_vm4, %v282_v4 }
 0x14d   :  { %v175_v5 = vpop.permute.xlu1 %174  ;;  %v348_v6 = vpop.permute.xlu0 %347 }
 0x14e   :  { %193 = vst.msk [vmem:[#allocation2 + $0x31] sm:$0xff] %vm186_vm3, %v175_v5 }
 0x14f   :  { %268 = vst.msk [vmem:[#allocation2 + $0x38] sm:$0xff] %vm260_vm4, %v5834_v38 }
 0x151   :  { %v249_v7 = vpop.permute.xlu1 %248  ;;  %v219_v8 = vpop.permute.xlu0 %218 }
 0x152   :  { %267 = vst.msk [vmem:[#allocation2 + $0x30] sm:$0xff] %vm260_vm4, %v249_v7 }
 0x153   :  { %235 = vst.msk [vmem:[#allocation2 + $0x79] sm:$0x7f] %vm194_vm9, %v219_v8  ;;  %vm2428_vm9 = vcmask 129024  }
 0x155   :  { %v314_v9 = vpop.permute.xlu1 %313  ;;  %v284_v10 = vpop.permute.xlu0 %283 }
 0x156   :  { %333 = vst.msk [vmem:[#allocation2 + $0x2f] sm:$0xff] %vm327_vm7, %v314_v9 }
 0x157   :  { %300 = vst.msk [vmem:[#allocation2 + $0x78] sm:$0xff] %vm260_vm4, %v284_v10 }
 0x159   :  { %v378_v11 = vpop.permute.xlu1 %377  ;;  %v416_v39 = vpop.permute.xlu0 %415 }
 0x15a   :  { %398 = vst.msk [vmem:[#allocation2 + $0x26] sm:$0xff] %vm393_vm8, %v378_v11 }
 0x15d   :  { %v380_v12 = vpop.permute.xlu1 %379 }
 0x15e   :  { %399 = vst.msk [vmem:[#allocation2 + $0x2e] sm:$0xff] %vm393_vm8, %v380_v12 }
 0x161   :  { %v316_v13 = vpop.permute.xlu1 %315  ;;  %v437_v14 = vld [vmem:[#allocation2 + $0x20] sm:$0xff] }
 0x162   :  { %334 = vst.msk [vmem:[#allocation2 + $0x37] sm:$0xff] %vm327_vm7, %v316_v13  ;;  %5017 = vmatprep.mubr.msk.f32.mxu0 %vm118_vm0, %v437_v14 }
 0x163   :  { %400 = vst.msk [vmem:[#allocation2 + $0x36] sm:$0xff] %vm393_vm8, %v5840_v40 }
 0x165   :  { %v205_v15 = vpop.permute.xlu1 %204  ;;  %v438_v16 = vld [vmem:[#allocation2 + $0x28] sm:$0xff] }
 0x166   :  { %228 = vst.msk [vmem:[#allocation2 + $0x41] sm:$0xff] %vm186_vm3, %v205_v15  ;;  %5018 = vmatmul.mubr.msk.f32.gmra.mrb[4].mxu0 %vm118_vm0, %v438_v16 }
 0x167   :  { %293 = vst.msk [vmem:[#allocation2 + $0x40] sm:$0xff] %vm260_vm4, %v5849_v44  ;;  %v727_v44 = vunpack.c.l.s4 %v5550_v43 }
 0x169   :  { %v209_v17 = vpop.permute.xlu1 %208 }
 0x16a   :  { %230 = vst.msk [vmem:[#allocation2 + $0x51] sm:$0xff] %vm186_vm3, %v209_v17  ;;  %v439_v18 = vld [vmem:[#allocation2 + $0x30] sm:$0xff]  ;;  %v440_v19 = vld [vmem:[#allocation2 + $0x38] sm:$0xff] }
 0x16b   :  { %295 = vst.msk [vmem:[#allocation2 + $0x50] sm:$0xff] %vm260_vm4, %v5854_v47  ;;  %5020 = vmatprep.mubr.msk.f32.mxu0 %vm118_vm0, %v439_v18  ;;  %v728_v47 = vunpack.c.0.s8 %v727_v44 }
 0x16c   :  { %5021 = vmatmul.mubr.msk.f32.gmra.mrb[6].mxu0 %vm118_vm0, %v440_v19 }
 0x16d   :  { %v272_v20 = vpop.permute.xlu1 %271  ;;  %v5968_v55 = vsub.s32 %v728_v47, %v730_v48 }
 0x16e   :  { %294 = vst.msk [vmem:[#allocation2 + $0x48] sm:$0xff] %vm260_vm4, %v272_v20 }
 0x16f   :  { %360 = vst.msk [vmem:[#allocation2 + $0x47] sm:$0xff] %vm327_vm7, %v5860_v49 }
 0x171   :  { %v336_v21 = vpop.permute.xlu1 %335 }
 0x172   :  { %359 = vst.msk [vmem:[#allocation2 + $0x3f] sm:$0xfe] %vm325_vm5, %v336_v21  ;;  %vm1593_vm5 = vcmask 1047559  }
 0x173   :  { %425 = vst.msk [vmem:[#allocation2 + $0x3e] sm:$0xfc] %vm391_vm6, %v5865_v51  ;;  %vm1653_vm6 = vcmask 63488  }
 0x175   :  { %v340_v22 = vpop.permute.xlu1 %339 }
 0x176   :  { %361 = vst.msk [vmem:[#allocation2 + $0x4f] sm:$0xff] %vm327_vm7, %v340_v22 }
 0x179   :  { %v404_v23 = vpop.permute.xlu1 %403 }
 0x17a   :  { %426 = vst.msk [vmem:[#allocation2 + $0x46] sm:$0xff] %vm393_vm8, %v404_v23 }
 0x17d   :  { %v406_v24 = vpop.permute.xlu1 %405 }
 0x17e   :  { %427 = vst.msk [vmem:[#allocation2 + $0x4e] sm:$0xff] %vm393_vm8, %v406_v24 }
 0x181   :  { %v276_v25 = vpop.permute.xlu1 %275  ;;  %v441_v26 = vld [vmem:[#allocation2 + $0x40] sm:$0xff] }
 0x182   :  { %296 = vst.msk [vmem:[#allocation2 + $0x58] sm:$0xff] %vm260_vm4, %v276_v25  ;;  %5023 = vmatprep.mubr.msk.f32.mxu0 %vm118_vm0, %v441_v26 }
 0x183   :  { %363 = vst.msk [vmem:[#allocation2 + $0x5f] sm:$0xff] %vm327_vm7, %v5877_v60 }
 0x185   :  { %v342_v27 = vpop.permute.xlu1 %341  ;;  %v442_v28 = vld [vmem:[#allocation2 + $0x48] sm:$0xff] }
 0x186   :  { %362 = vst.msk [vmem:[#allocation2 + $0x57] sm:$0xff] %vm327_vm7, %v342_v27  ;;  %5024 = vmatmul.mubr.msk.f32.gmra.mrb[8].mxu0 %vm118_vm0, %v442_v28 }
 0x189   :  { %v408_v29 = vpop.permute.xlu1 %407 }
 0x18a   :  { %428 = vst.msk [vmem:[#allocation2 + $0x56] sm:$0xff] %vm393_vm8, %v408_v29 }
 0x18d   :  { %v410_v30 = vpop.permute.xlu1 %409 }
 0x18e   :  { %429 = vst.msk [vmem:[#allocation2 + $0x5e] sm:$0xff] %vm393_vm8, %v410_v30 }
 0x191   :  { %v280_v31 = vpop.permute.xlu1 %279  ;;  %v443_v32 = vld [vmem:[#allocation2 + $0x50] sm:$0xff] }
 0x192   :  { %298 = vst.msk [vmem:[#allocation2 + $0x68] sm:$0xff] %vm260_vm4, %v280_v31  ;;  %5026 = vmatprep.mubr.msk.f32.mxu0 %vm118_vm0, %v443_v32 }
 0x193   :  { %365 = vst.msk [vmem:[#allocation2 + $0x6f] sm:$0xff] %vm327_vm7, %v348_v6 }
 0x195   :  { %v346_v33 = vpop.permute.xlu1 %345  ;;  %v444_v34 = vld [vmem:[#allocation2 + $0x58] sm:$0xff] }
 0x196   :  { %364 = vst.msk [vmem:[#allocation2 + $0x67] sm:$0xff] %vm327_vm7, %v346_v33  ;;  %5027 = vmatmul.mubr.msk.f32.gmra.mrb[10].mxu0 %vm118_vm0, %v444_v34 }
 0x199   :  { %v412_v35 = vpop.permute.xlu1 %411 }
 0x19a   :  { %430 = vst.msk [vmem:[#allocation2 + $0x66] sm:$0xff] %vm393_vm8, %v412_v35 }
 0x19d   :  { %v414_v36 = vpop.permute.xlu1 %413 }
 0x19e   :  { %431 = vst.msk [vmem:[#allocation2 + $0x6e] sm:$0xff] %vm393_vm8, %v414_v36 }
 0x1a1   :  { %v350_v37 = vpop.permute.xlu1 %349  ;;  %v445_v38 = vld [vmem:[#allocation2 + $0x60] sm:$0xff] }
 0x1a2   :  { %366 = vst.msk [vmem:[#allocation2 + $0x77] sm:$0xff] %vm327_vm7, %v350_v37  ;;  %5029 = vmatprep.mubr.msk.f32.mxu0 %vm118_vm0, %v445_v38  ;;  %vm1776_vm7 = vcmask 194688  }
 0x1a3   :  { %432 = vst.msk [vmem:[#allocation2 + $0x76] sm:$0xff] %vm393_vm8, %v416_v39  ;;  %vm2361_vm8 = vcmask 392192  }
 0x1a4   :  { %2363 = vst.msk [vmem:[#allocation4 + $0x8] sm:$0xff] %vm2361_vm8, %v5545_v1  ;;  %2362 = vst.msk [vmem:[#allocation4] sm:$0xff] %vm2361_vm8, %v5545_v1 }
 0x1a5   :  { %v446_v40 = vld [vmem:[#allocation2 + $0x68] sm:$0xff]  ;;  %2364 = vst.msk [vmem:[#allocation4 + $0x10] sm:$0xff] %vm2361_vm8, %v5545_v1  ;;  %2365 = vst.msk [vmem:[#allocation4 + $0x18] sm:$0xff] %vm2361_vm8, %v5545_v1 }
 0x1a6   :  { %5030 = vmatmul.mubr.msk.f32.gmra.mrb[12].mxu0 %vm118_vm0, %v446_v40 }
 0x1aa   :  { %v447_v41 = vld [vmem:[#allocation2 + $0x70] sm:$0xff]  ;;  %v448_v42 = vld [vmem:[#allocation2 + $0x78] sm:$0xff] }
 0x1ab   :  { %5032 = vmatprep.mubr.msk.f32.mxu0 %vm118_vm0, %v447_v41 }
 0x1ac   :  { %5033 = vmatmul.mubr.msk.f32.gmra.mrb[14].mxu0 %vm118_vm0, %v448_v42  ;;  %vm1589_vm0 = vcmask 1045509  }
 0x1f9   :  { %v5013_v49 = vpop.f32.mrb[0].mxu0 }
 0x1fa   :  { %v655_v51 = vmul.f32 %v5013_v49, %v5958_v46  ;;  %v568_v52 = vpop.f32.mrb[1].mxu0 }
 0x1fb   :  { %v654_v53 = vmul.f32 %v5958_v46, %v568_v52 }
 0x1fc   :  { %v678_v54 = vadd.f32 %v5963_v50, %v655_v51 }
 0x1fd   :  { %v677_v56 = vadd.f32 %v5963_v50, %v654_v53 }
 0x1fe   :  { %v694_v57 = vmax.f32 %v678_v54, 0.0 }
 0x1ff   :  { %v693_v58 = vmax.f32 %v677_v56, 0.0 }
 0x200   :  { %v742_v59 = vcombine.high %v694_v57, %v694_v57  ;;  %v749_v60 = vrot.slane %v694_v57, %v5968_v55 }
 0x201   :  { %v725_v61 = vcombine.high %v693_v58, %v693_v58  ;;  %v732_v62 = vrot.slane %v693_v58, %v5968_v55 }
 0x202   :  { %v756_v63 = vrot.slane %v742_v59, %v5968_v55  ;;  %v757_v0 = vcombine.high %v749_v60, %v749_v60  ;;  %v1090_v2 = vsel %vm1061_vm11, %v749_v60, -inf }
 0x203   :  { %v1091_v3 = vrot.slane %v1090_v2, 4  ;;  %v739_v4 = vrot.slane %v725_v61, %v5968_v55  ;;  %v740_v5 = vcombine.high %v732_v62, %v732_v62  ;;  %v1062_v6 = vsel %vm1061_vm11, %v732_v62, -inf }
 0x204   :  { %v758_v7 = vcombine.high %v756_v63, %v756_v63  ;;  %v1097_v8 = vsel %vm1061_vm11, %v757_v0, -inf  ;;  %v1104_v9 = vsel %vm1061_vm11, %v756_v63, -inf  ;;  %v1063_v10 = vrot.slane %v1062_v6, 4 }
 0x205   :  { %v1092_v11 = vmax.f32 %v1090_v2, %v1091_v3  ;;  %v1098_v12 = vrot.slane %v1097_v8, 4  ;;  %v1105_v13 = vrot.slane %v1104_v9, 4  ;;  %v741_v14 = vcombine.high %v739_v4, %v739_v4 }
 0x206   :  { %v1111_v15 = vsel %vm1061_vm11, %v758_v7, -inf  ;;  %v1064_v16 = vmax.f32 %v1062_v6, %v1063_v10  ;;  %v1069_v17 = vsel %vm1061_vm11, %v740_v5, -inf  ;;  %v1076_v18 = vsel %vm1061_vm11, %v739_v4, -inf }
 0x207   :  { %v1093_v19 = vrot.slane %v1092_v11, 2  ;;  %v1099_v20 = vmax.f32 %v1097_v8, %v1098_v12  ;;  %v1106_v21 = vmax.f32 %v1104_v9, %v1105_v13  ;;  %v1112_v22 = vrot.slane %v1111_v15, 4 }
 0x208   :  { %v1065_v23 = vrot.slane %v1064_v16, 2  ;;  %v1070_v24 = vrot.slane %v1069_v17, 4  ;;  %v1077_v25 = vrot.slane %v1076_v18, 4  ;;  %v1083_v26 = vsel %vm1061_vm11, %v741_v14, -inf }
 0x209   :  { %v1100_v27 = vrot.slane %v1099_v20, 2  ;;  %v1107_v28 = vrot.slane %v1106_v21, 2  ;;  %v1084_v29 = vrot.slane %v1083_v26, 4  ;;  %v1113_v33 = vmax.f32 %v1111_v15, %v1112_v22 }
 0x20a   :  { %v1066_v30 = vmax.f32 %v1064_v16, %v1065_v23  ;;  %v1071_v31 = vmax.f32 %v1069_v17, %v1070_v24  ;;  %v1078_v32 = vmax.f32 %v1076_v18, %v1077_v25  ;;  %v1094_v35 = vmax.f32 %v1092_v11, %v1093_v19 }
 0x20b   :  { %v1085_v34 = vmax.f32 %v1083_v26, %v1084_v29  ;;  %v1114_v38 = vrot.slane %v1113_v33, 2  ;;  %v1101_v39 = vmax.f32 %v1099_v20, %v1100_v27  ;;  %v1108_v44 = vmax.f32 %v1106_v21, %v1107_v28 }
 0x20c   :  { %v1072_v36 = vrot.slane %v1071_v31, 2  ;;  %v1079_v37 = vrot.slane %v1078_v32, 2  ;;  %v1067_v41 = vrot.slane %v1066_v30, 1  ;;  %v1095_v48 = vrot.slane %v1094_v35, 1 }
 0x20d   :  { %v1086_v40 = vrot.slane %v1085_v34, 2  ;;  %v1115_v47 = vmax.f32 %v1113_v33, %v1114_v38  ;;  %v1102_v53 = vrot.slane %v1101_v39, 1  ;;  %v1109_v58 = vrot.slane %v1108_v44, 1 }
 0x20e   :  { %v1073_v42 = vmax.f32 %v1071_v31, %v1072_v36  ;;  %v1080_v43 = vmax.f32 %v1078_v32, %v1079_v37  ;;  %v1068_v54 = vmax.f32 %v1066_v30, %v1067_v41  ;;  %v1096_v61 = vmax.f32 %v1094_v35, %v1095_v48 }
 0x20f   :  { %v1087_v45 = vmax.f32 %v1085_v34, %v1086_v40  ;;  %v1116_v60 = vrot.slane %v1115_v47, 1  ;;  %v1103_v0 = vmax.f32 %v1101_v39, %v1102_v53  ;;  %v1110_v4 = vmax.f32 %v1108_v44, %v1109_v58 }
 0x210   :  { %v1074_v49 = vrot.slane %v1073_v42, 1  ;;  %v1081_v51 = vrot.slane %v1080_v43, 1 }
 0x211   :  { %v1088_v52 = vrot.slane %v1087_v45, 1  ;;  %v1117_v7 = vmax.f32 %v1115_v47, %v1116_v60 }
 0x212   :  { %v1075_v56 = vmax.f32 %v1073_v42, %v1074_v49  ;;  %v1082_v57 = vmax.f32 %v1080_v43, %v1081_v51 }
 0x213   :  { %v1089_v59 = vmax.f32 %v1087_v45, %v1088_v52 }
 0x214   :  { %v1582_v62 = vsel %vm1581_vm12, %v1075_v56, %v1068_v54  ;;  %v1695_v63 = vsel %vm1581_vm12, %v1082_v57, %v1075_v56 }
 0x215   :  { %v1584_v2 = vsel %vm1583_vm13, %v1082_v57, %v1582_v62  ;;  %v1696_v3 = vsel %vm1583_vm13, %v1089_v59, %v1695_v63 }
 0x216   :  { %v1586_v5 = vsel %vm1585_vm14, %v1089_v59, %v1584_v2  ;;  %v1697_v6 = vsel %vm1585_vm14, %v1096_v61, %v1696_v3 }
 0x217   :  { %v1588_v8 = vsel %vm1587_vm15, %v1096_v61, %v1586_v5  ;;  %v1698_v9 = vsel %vm1587_vm15, %v1103_v0, %v1697_v6 }
 0x218   :  { %v1590_v10 = vsel %vm1589_vm0, %v1103_v0, %v1588_v8  ;;  %v1699_v11 = vsel %vm1589_vm0, %v1110_v4, %v1698_v9 }
 0x219   :  { %v1592_v12 = vsel %vm1591_vm2, %v1110_v4, %v1590_v10  ;;  %v5016_v13 = vpop.f32.mrb[2].mxu0  ;;  %v5995_v14 = vsel %vm1591_vm2, %v1117_v7, %v1699_v11 }
 0x21a   :  { %v1594_v15 = vsel %vm1593_vm5, %v1117_v7, %v1592_v12  ;;  %v657_v16 = vmul.f32 %v5016_v13, %v5958_v46  ;;  %v578_v17 = vpop.f32.mrb[3].mxu0 }
 0x21b   :  { %1663 = vrot.lane.b32.xlu1 %v1594_v15, %s5547_s23  ;;  %1650 = vst.msk [vmem:[#allocation3 + $0x1] sm:$0xff] %vm135_vm1, %v1594_v15  ;;  %v656_v18 = vmul.f32 %v5958_v46, %v578_v17 }
 0x21c   :  { %v680_v19 = vadd.f32 %v5963_v50, %v657_v16 }
 0x21d   :  { %v679_v20 = vadd.f32 %v5963_v50, %v656_v18 }
 0x21e   :  { %v696_v21 = vmax.f32 %v680_v19, 0.0 }
 0x21f   :  { %v695_v22 = vmax.f32 %v679_v20, 0.0 }
 0x220   :  { %v776_v23 = vcombine.high %v696_v21, %v696_v21  ;;  %v783_v24 = vrot.slane %v696_v21, %v5968_v55 }
 0x221   :  { %v759_v25 = vcombine.high %v695_v22, %v695_v22  ;;  %v766_v26 = vrot.slane %v695_v22, %v5968_v55 }
 0x222   :  { %v790_v27 = vrot.slane %v776_v23, %v5968_v55  ;;  %v791_v28 = vcombine.high %v783_v24, %v783_v24  ;;  %v1146_v29 = vsel %vm1061_vm11, %v783_v24, -inf }
 0x223   :  { %v1147_v30 = vrot.slane %v1146_v29, 4  ;;  %v773_v31 = vrot.slane %v759_v25, %v5968_v55  ;;  %v774_v32 = vcombine.high %v766_v26, %v766_v26  ;;  %v1118_v33 = vsel %vm1061_vm11, %v766_v26, -inf }
 0x224   :  { %v792_v34 = vcombine.high %v790_v27, %v790_v27  ;;  %v1153_v35 = vsel %vm1061_vm11, %v791_v28, -inf  ;;  %v1160_v36 = vsel %vm1061_vm11, %v790_v27, -inf  ;;  %v1119_v37 = vrot.slane %v1118_v33, 4 }
 0x225   :  { %v1148_v38 = vmax.f32 %v1146_v29, %v1147_v30  ;;  %v1154_v39 = vrot.slane %v1153_v35, 4  ;;  %v1161_v40 = vrot.slane %v1160_v36, 4  ;;  %v775_v41 = vcombine.high %v773_v31, %v773_v31 }
 0x226   :  { %v1167_v42 = vsel %vm1061_vm11, %v792_v34, -inf  ;;  %v1120_v43 = vmax.f32 %v1118_v33, %v1119_v37  ;;  %v1125_v44 = vsel %vm1061_vm11, %v774_v32, -inf  ;;  %v1132_v45 = vsel %vm1061_vm11, %v773_v31, -inf }
 0x227   :  { %v1149_v47 = vrot.slane %v1148_v38, 2  ;;  %v1155_v48 = vmax.f32 %v1153_v35, %v1154_v39  ;;  %v1162_v49 = vmax.f32 %v1160_v36, %v1161_v40  ;;  %v1168_v51 = vrot.slane %v1167_v42, 4 }
 0x228   :  { %v1121_v52 = vrot.slane %v1120_v43, 2  ;;  %v1126_v53 = vrot.slane %v1125_v44, 4  ;;  %v1133_v54 = vrot.slane %v1132_v45, 4  ;;  %v1139_v56 = vsel %vm1061_vm11, %v775_v41, -inf }
 0x229   :  { %v1156_v57 = vrot.slane %v1155_v48, 2  ;;  %v1163_v58 = vrot.slane %v1162_v49, 2  ;;  %v1140_v59 = vrot.slane %v1139_v56, 4  ;;  %v1169_v63 = vmax.f32 %v1167_v42, %v1168_v51 }
 0x22a   :  { %v1127_v60 = vmax.f32 %v1125_v44, %v1126_v53  ;;  %v1134_v61 = vmax.f32 %v1132_v45, %v1133_v54  ;;  %v1122_v62 = vmax.f32 %v1120_v43, %v1121_v52  ;;  %v1150_v0 = vmax.f32 %v1148_v38, %v1149_v47 }
 0x22b   :  { %v1141_v2 = vmax.f32 %v1139_v56, %v1140_v59  ;;  %v1170_v6 = vrot.slane %v1169_v63, 2  ;;  %v1157_v7 = vmax.f32 %v1155_v48, %v1156_v57  ;;  %v1164_v12 = vmax.f32 %v1162_v49, %v1163_v58 }
 0x22c   :  { %v1128_v3 = vrot.slane %v1127_v60, 2  ;;  %v1135_v4 = vrot.slane %v1134_v61, 2  ;;  %v1123_v5 = vrot.slane %v1122_v62, 1  ;;  %v1151_v16 = vrot.slane %v1150_v0, 1 }
 0x22d   :  { %v1142_v8 = vrot.slane %v1141_v2, 2  ;;  %v1171_v15 = vmax.f32 %v1169_v63, %v1170_v6  ;;  %v1158_v21 = vrot.slane %v1157_v7, 1  ;;  %v1165_v24 = vrot.slane %v1164_v12, 1 }
 0x22e   :  { %v1129_v9 = vmax.f32 %v1127_v60, %v1128_v3  ;;  %v1136_v10 = vmax.f32 %v1134_v61, %v1135_v4  ;;  %v1124_v11 = vmax.f32 %v1122_v62, %v1123_v5  ;;  %v1152_v27 = vmax.f32 %v1150_v0, %v1151_v16 }
 0x22f   :  { %v1143_v13 = vmax.f32 %v1141_v2, %v1142_v8  ;;  %v1172_v26 = vrot.slane %v1171_v15, 1  ;;  %v1159_v30 = vmax.f32 %v1157_v7, %v1158_v21 }
 0x230   :  { %v1130_v17 = vrot.slane %v1129_v9, 1  ;;  %v1137_v18 = vrot.slane %v1136_v10, 1  ;;  %v1701_v19 = vsel %vm1593_vm5, %v1124_v11, %v5995_v14  ;;  %v1166_v14 = vmax.f32 %v1164_v12, %v1165_v24 }
 0x231   :  { %v1144_v20 = vrot.slane %v1143_v13, 1  ;;  %1749 = vrot.lane.b32.xlu1 %v1701_v19, %s5548_s24  ;;  %v1173_v35 = vmax.f32 %v1171_v15, %v1172_v26 }
 0x232   :  { %v1131_v22 = vmax.f32 %v1129_v9, %v1130_v17  ;;  %v1138_v23 = vmax.f32 %v1136_v10, %v1137_v18 }
 0x233   :  { %v1145_v25 = vmax.f32 %v1143_v13, %v1144_v20 }
 0x234   :  { %v1595_v28 = vsel %vm1581_vm12, %v1131_v22, %v1124_v11  ;;  %v1702_v29 = vsel %vm1581_vm12, %v1138_v23, %v1131_v22 }
 0x235   :  { %v1596_v31 = vsel %vm1583_vm13, %v1138_v23, %v1595_v28  ;;  %v1703_v32 = vsel %vm1583_vm13, %v1145_v25, %v1702_v29 }
 0x236   :  { %v1597_v33 = vsel %vm1585_vm14, %v1145_v25, %v1596_v31  ;;  %v1704_v34 = vsel %vm1585_vm14, %v1152_v27, %v1703_v32 }
 0x237   :  { %v1598_v36 = vsel %vm1587_vm15, %v1152_v27, %v1597_v33  ;;  %v1705_v37 = vsel %vm1587_vm15, %v1159_v30, %v1704_v34 }
 0x238   :  { %v1599_v38 = vsel %vm1589_vm0, %v1159_v30, %v1598_v36  ;;  %v1706_v39 = vsel %vm1589_vm0, %v1166_v14, %v1705_v37 }
 0x239   :  { %v1600_v40 = vsel %vm1591_vm2, %v1166_v14, %v1599_v38  ;;  %v5019_v41 = vpop.f32.mrb[4].mxu0  ;;  %v6031_v42 = vsel %vm1591_vm2, %v1173_v35, %v1706_v39 }
 0x23a   :  { %v1601_v43 = vsel %vm1593_vm5, %v1173_v35, %v1600_v40  ;;  %v659_v44 = vmul.f32 %v5019_v41, %v5958_v46  ;;  %v588_v45 = vpop.f32.mrb[5].mxu0 }
 0x23b   :  { %1665 = vrot.lane.b32.xlu0 %v1601_v43, %s5547_s23  ;;  %1651 = vst.msk [vmem:[#allocation3 + $0x9] sm:$0xff] %vm135_vm1, %v1601_v43  ;;  %v658_v47 = vmul.f32 %v5958_v46, %v588_v45 }
 0x23c   :  { %v682_v48 = vadd.f32 %v5963_v50, %v659_v44 }
 0x23d   :  { %v681_v49 = vadd.f32 %v5963_v50, %v658_v47 }
 0x23e   :  { %v698_v51 = vmax.f32 %v682_v48, 0.0 }
 0x23f   :  { %v697_v52 = vmax.f32 %v681_v49, 0.0  ;;  %v5022_v53 = vpop.f32.mrb[6].mxu0 }
 0x240   :  { %v810_v54 = vcombine.high %v698_v51, %v698_v51  ;;  %v817_v56 = vrot.slane %v698_v51, %v5968_v55  ;;  %v661_v57 = vmul.f32 %v5022_v53, %v5958_v46  ;;  %v598_v58 = vpop.f32.mrb[7].mxu0 }
 0x241   :  { %v793_v59 = vcombine.high %v697_v52, %v697_v52  ;;  %v800_v60 = vrot.slane %v697_v52, %v5968_v55  ;;  %v660_v61 = vmul.f32 %v5958_v46, %v598_v58 }
 0x242   :  { %v824_v62 = vrot.slane %v810_v54, %v5968_v55  ;;  %v825_v63 = vcombine.high %v817_v56, %v817_v56  ;;  %v1202_v0 = vsel %vm1061_vm11, %v817_v56, -inf  ;;  %v684_v2 = vadd.f32 %v5963_v50, %v661_v57 }
 0x243   :  { %v1203_v3 = vrot.slane %v1202_v0, 4  ;;  %v807_v4 = vrot.slane %v793_v59, %v5968_v55  ;;  %v808_v5 = vcombine.high %v800_v60, %v800_v60  ;;  %v1174_v6 = vsel %vm1061_vm11, %v800_v60, -inf }
 0x244   :  { %v826_v7 = vcombine.high %v824_v62, %v824_v62  ;;  %v1209_v8 = vsel %vm1061_vm11, %v825_v63, -inf  ;;  %v1216_v9 = vsel %vm1061_vm11, %v824_v62, -inf  ;;  %v1175_v10 = vrot.slane %v1174_v6, 4 }
 0x245   :  { %v1204_v11 = vmax.f32 %v1202_v0, %v1203_v3  ;;  %v1210_v12 = vrot.slane %v1209_v8, 4  ;;  %v1217_v13 = vrot.slane %v1216_v9, 4  ;;  %v809_v15 = vcombine.high %v807_v4, %v807_v4 }
 0x246   :  { %v6052_v16 = vsel %vm1061_vm11, %v826_v7, -inf  ;;  %v1176_v17 = vmax.f32 %v1174_v6, %v1175_v10  ;;  %v1181_v18 = vsel %vm1061_vm11, %v808_v5, -inf  ;;  %v1188_v19 = vsel %vm1061_vm11, %v807_v4, -inf }
 0x247   :  { %v1205_v20 = vrot.slane %v1204_v11, 2  ;;  %v1211_v21 = vmax.f32 %v1209_v8, %v1210_v12  ;;  %v6056_v22 = vmax.f32 %v1216_v9, %v1217_v13  ;;  %v1224_v23 = vrot.slane %v6052_v16, 4 }
 0x248   :  { %v1177_v24 = vrot.slane %v1176_v17, 2  ;;  %v1182_v25 = vrot.slane %v1181_v18, 4  ;;  %v1189_v26 = vrot.slane %v1188_v19, 4  ;;  %v1195_v27 = vsel %vm1061_vm11, %v809_v15, -inf }
 0x249   :  { %v1206_v28 = vmax.f32 %v1204_v11, %v1205_v20  ;;  %v1212_v29 = vrot.slane %v1211_v21, 2  ;;  %v1219_v30 = vrot.slane %v6056_v22, 2  ;;  %v1196_v31 = vrot.slane %v1195_v27, 4 }
 0x24a   :  { %v1183_v32 = vmax.f32 %v1181_v18, %v1182_v25  ;;  %v1190_v14 = vmax.f32 %v1188_v19, %v1189_v26  ;;  %v700_v33 = vmax.f32 %v684_v2, 0.0  ;;  %v683_v34 = vadd.f32 %v5963_v50, %v660_v61 }
 0x24b   :  { %v1207_v35 = vrot.slane %v1206_v28, 1  ;;  %v6062_v36 = vmax.f32 %v1211_v21, %v1212_v29  ;;  %v1197_v37 = vmax.f32 %v1195_v27, %v1196_v31  ;;  %v1178_v38 = vmax.f32 %v1176_v17, %v1177_v24 }
 0x24c   :  { %v1184_v39 = vrot.slane %v1183_v32, 2  ;;  %v1191_v40 = vrot.slane %v1190_v14, 2  ;;  %v844_v41 = vcombine.high %v700_v33, %v700_v33  ;;  %v851_v43 = vrot.slane %v700_v33, %v5968_v55 }
 0x24d   :  { %v6065_v44 = vmax.f32 %v1206_v28, %v1207_v35  ;;  %v1198_v45 = vrot.slane %v1197_v37, 2  ;;  %v699_v47 = vmax.f32 %v683_v34, 0.0  ;;  %v1179_v48 = vrot.slane %v1178_v38, 1 }
 0x24e   :  { %v1185_v49 = vmax.f32 %v1183_v32, %v1184_v39  ;;  %v1192_v51 = vmax.f32 %v1190_v14, %v1191_v40  ;;  %v858_v52 = vrot.slane %v844_v41, %v5968_v55  ;;  %v859_v53 = vcombine.high %v851_v43, %v851_v43 }
 0x24f   :  { %v1199_v54 = vmax.f32 %v1197_v37, %v1198_v45  ;;  %v1258_v56 = vsel %vm1061_vm11, %v851_v43, -inf  ;;  %v827_v57 = vcombine.high %v699_v47, %v699_v47  ;;  %v834_v58 = vrot.slane %v699_v47, %v5968_v55 }
 0x250   :  { %v1186_v59 = vrot.slane %v1185_v49, 1  ;;  %v1193_v60 = vrot.slane %v1192_v51, 1  ;;  %v860_v61 = vcombine.high %v858_v52, %v858_v52  ;;  %v1259_v62 = vrot.slane %v1258_v56, 4 }
 0x251   :  { %v1200_v63 = vrot.slane %v1199_v54, 1  ;;  %v1265_v0 = vsel %vm1061_vm11, %v859_v53, -inf  ;;  %v1272_v2 = vsel %vm1061_vm11, %v858_v52, -inf  ;;  %v841_v3 = vrot.slane %v827_v57, %v5968_v55 }
 0x252   :  { %v6073_v4 = vmax.f32 %v1185_v49, %v1186_v59  ;;  %v6075_v5 = vmax.f32 %v1192_v51, %v1193_v60  ;;  %v1260_v6 = vmax.f32 %v1258_v56, %v1259_v62  ;;  %v1266_v7 = vrot.slane %v1265_v0, 4 }
 0x253   :  { %v1273_v8 = vrot.slane %v1272_v2, 4  ;;  %v6078_v9 = vsel %vm1061_vm11, %v860_v61, -inf  ;;  %v842_v10 = vcombine.high %v834_v58, %v834_v58  ;;  %v843_v11 = vcombine.high %v841_v3, %v841_v3 }
 0x254   :  { %v1261_v12 = vrot.slane %v1260_v6, 2  ;;  %v1267_v13 = vmax.f32 %v1265_v0, %v1266_v7  ;;  %v1280_v15 = vrot.slane %v6078_v9, 4  ;;  %v1230_v17 = vsel %vm1061_vm11, %v834_v58, -inf }
 0x255   :  { %v6082_v18 = vmax.f32 %v1272_v2, %v1273_v8  ;;  %v1231_v19 = vrot.slane %v1230_v17, 4  ;;  %v1237_v20 = vsel %vm1061_vm11, %v842_v10, -inf  ;;  %v1244_v21 = vsel %vm1061_vm11, %v841_v3, -inf }
 0x256   :  { %v1262_v24 = vmax.f32 %v1260_v6, %v1261_v12  ;;  %v1268_v25 = vrot.slane %v1267_v13, 2  ;;  %v1238_v26 = vrot.slane %v1237_v20, 4  ;;  %v1245_v27 = vrot.slane %v1244_v21, 4 }
 0x257   :  { %v1275_v28 = vrot.slane %v6082_v18, 2  ;;  %v1232_v29 = vmax.f32 %v1230_v17, %v1231_v19  ;;  %v1251_v31 = vsel %vm1061_vm11, %v843_v11, -inf  ;;  %v1180_v32 = vmax.f32 %v1178_v38, %v1179_v48 }
 0x258   :  { %v1263_v14 = vrot.slane %v1262_v24, 1  ;;  %v6088_v33 = vmax.f32 %v1267_v13, %v1268_v25  ;;  %v1239_v34 = vmax.f32 %v1237_v20, %v1238_v26  ;;  %v1246_v35 = vmax.f32 %v1244_v21, %v1245_v27 }
 0x259   :  { %v1233_v37 = vrot.slane %v1232_v29, 2  ;;  %v1252_v39 = vrot.slane %v1251_v31, 4  ;;  %v1708_v40 = vsel %vm1593_vm5, %v1180_v32, %v6031_v42  ;;  %v1602_v41 = vsel %vm1581_vm12, %v6073_v4, %v1180_v32  ;;  %v5025_v43 = vpop.f32.mrb[8].mxu0 }
 0x25a   :  { %v6094_v45 = vmax.f32 %v1262_v24, %v1263_v14  ;;  %v1240_v47 = vrot.slane %v1239_v34, 2  ;;  %v1247_v49 = vrot.slane %v1246_v35, 2  ;;  %1751 = vrot.lane.b32.xlu0 %v1708_v40, %s5548_s24  ;;  %v1201_v38 = vmax.f32 %v1199_v54, %v1200_v63  ;;  %v608_v48 = vpop.f32.mrb[9].mxu0 }
 0x25b   :  { %v1253_v51 = vmax.f32 %v1251_v31, %v1252_v39  ;;  %v1214_v52 = vrot.slane %v6062_v36, 1  ;;  %v1220_v53 = vmax.f32 %v6056_v22, %v1219_v30  ;;  %v1225_v42 = vmax.f32 %v6052_v16, %v1224_v23 }
 0x25c   :  { %v1241_v56 = vmax.f32 %v1239_v34, %v1240_v47  ;;  %v1248_v57 = vmax.f32 %v1246_v35, %v1247_v49  ;;  %v1603_v58 = vsel %vm1583_vm13, %v6075_v5, %v1602_v41  ;;  %v663_v59 = vmul.f32 %v5025_v43, %v5958_v46 }
 0x25d   :  { %v1254_v54 = vrot.slane %v1253_v51, 2  ;;  %v1215_v60 = vmax.f32 %v6062_v36, %v1214_v52  ;;  %v1221_v61 = vrot.slane %v1220_v53, 1  ;;  %v1226_v62 = vrot.slane %v1225_v42, 2 }
 0x25e   :  { %v1242_v63 = vrot.slane %v1241_v56, 1  ;;  %v1249_v0 = vrot.slane %v1248_v57, 1  ;;  %v1604_v22 = vsel %vm1585_vm14, %v1201_v38, %v1603_v58  ;;  %v686_v30 = vadd.f32 %v5963_v50, %v663_v59 }
 0x25f   :  { %v1255_v2 = vmax.f32 %v1253_v51, %v1254_v54  ;;  %v1222_v16 = vmax.f32 %v1220_v53, %v1221_v61  ;;  %v1227_v23 = vmax.f32 %v1225_v42, %v1226_v62  ;;  %v1605_v3 = vsel %vm1587_vm15, %v6065_v44, %v1604_v22 }
 0x260   :  { %v6112_v6 = vmax.f32 %v1241_v56, %v1242_v63  ;;  %v6114_v7 = vmax.f32 %v1248_v57, %v1249_v0  ;;  %v1606_v36 = vsel %vm1589_vm0, %v1215_v60, %v1605_v3  ;;  %v702_v8 = vmax.f32 %v686_v30, 0.0 }
 0x261   :  { %v1256_v10 = vrot.slane %v1255_v2, 1  ;;  %v1228_v11 = vrot.slane %v1227_v23, 1  ;;  %v1607_v12 = vsel %vm1591_vm2, %v1222_v16, %v1606_v36  ;;  %v662_v13 = vmul.f32 %v5958_v46, %v608_v48 }
 0x262   :  { %v878_v17 = vcombine.high %v702_v8, %v702_v8  ;;  %v885_v19 = vrot.slane %v702_v8, %v5968_v55  ;;  %v1234_v20 = vmax.f32 %v1232_v29, %v1233_v37  ;;  %v1709_v21 = vsel %vm1581_vm12, %v6075_v5, %v6073_v4 }
 0x263   :  { %v1229_v24 = vmax.f32 %v1227_v23, %v1228_v11  ;;  %v685_v25 = vadd.f32 %v5963_v50, %v662_v13  ;;  %v1710_v26 = vsel %vm1583_vm13, %v1201_v38, %v1709_v21  ;;  %v6125_v27 = vmax.f32 %v1255_v2, %v1256_v10 }
 0x264   :  { %v892_v31 = vrot.slane %v878_v17, %v5968_v55  ;;  %v893_v32 = vcombine.high %v885_v19, %v885_v19  ;;  %v1314_v14 = vsel %vm1061_vm11, %v885_v19, -inf  ;;  %v1235_v34 = vrot.slane %v1234_v20, 1 }
 0x265   :  { %v1608_v35 = vsel %vm1593_vm5, %v1229_v24, %v1607_v12  ;;  %v1315_v29 = vrot.slane %v1314_v14, 4  ;;  %v701_v37 = vmax.f32 %v685_v25, 0.0  ;;  %v1711_v4 = vsel %vm1585_vm14, %v6065_v44, %v1710_v26 }
 0x266   :  { %1667 = vrot.lane.b32.xlu1 %v1608_v35, %s5547_s23  ;;  %1652 = vst.msk [vmem:[#allocation3 + $0x11] sm:$0xff] %vm135_vm1, %v1608_v35  ;;  %v894_v5 = vcombine.high %v892_v31, %v892_v31  ;;  %v1321_v39 = vsel %vm1061_vm11, %v893_v32, -inf  ;;  %v1328_v40 = vsel %vm1061_vm11, %v892_v31, -inf  ;;  %v1236_v41 = vmax.f32 %v1234_v20, %v1235_v34 }
 0x267   :  { %v1316_v43 = vmax.f32 %v1314_v14, %v1315_v29  ;;  %v1322_v47 = vrot.slane %v1321_v39, 4  ;;  %v1329_v49 = vrot.slane %v1328_v40, 4  ;;  %v861_v38 = vcombine.high %v701_v37, %v701_v37 }
 0x268   :  { %v6137_v48 = vsel %vm1061_vm11, %v894_v5, -inf  ;;  %v868_v51 = vrot.slane %v701_v37, %v5968_v55  ;;  %v1712_v44 = vsel %vm1587_vm15, %v1215_v60, %v1711_v4  ;;  %v1609_v52 = vsel %vm1581_vm12, %v6112_v6, %v1236_v41 }
 0x269   :  { %v1317_v53 = vrot.slane %v1316_v43, 2  ;;  %v1323_v42 = vmax.f32 %v1321_v39, %v1322_v47  ;;  %v6143_v56 = vmax.f32 %v1328_v40, %v1329_v49  ;;  %v1336_v57 = vrot.slane %v6137_v48, 4  ;;  %v5028_v58 = vpop.f32.mrb[10].mxu0 }
 0x26a   :  { %v875_v59 = vrot.slane %v861_v38, %v5968_v55  ;;  %v876_v54 = vcombine.high %v868_v51, %v868_v51  ;;  %v1286_v61 = vsel %vm1061_vm11, %v868_v51, -inf  ;;  %v1713_v62 = vsel %vm1589_vm0, %v1222_v16, %v1712_v44  ;;  %v618_v63 = vpop.f32.mrb[11].mxu0 }
 0x26b   :  { %v1318_v0 = vmax.f32 %v1316_v43, %v1317_v53  ;;  %v1324_v60 = vrot.slane %v1323_v42, 2  ;;  %v1331_v22 = vrot.slane %v6143_v56, 2  ;;  %v1287_v30 = vrot.slane %v1286_v61, 4 }
 0x26c   :  { %v877_v2 = vcombine.high %v875_v59, %v875_v59  ;;  %v1293_v23 = vsel %vm1061_vm11, %v876_v54, -inf  ;;  %v1300_v3 = vsel %vm1061_vm11, %v875_v59, -inf  ;;  %v1714_v36 = vsel %vm1591_vm2, %v1229_v24, %v1713_v62 }
 0x26d   :  { %v1319_v8 = vrot.slane %v1318_v0, 1  ;;  %v1325_v10 = vmax.f32 %v1323_v42, %v1324_v60  ;;  %v1288_v11 = vmax.f32 %v1286_v61, %v1287_v30  ;;  %v1294_v12 = vrot.slane %v1293_v23, 4 }
 0x26e   :  { %v1301_v13 = vrot.slane %v1300_v3, 4  ;;  %v1307_v16 = vsel %vm1061_vm11, %v877_v2, -inf  ;;  %v1715_v17 = vsel %vm1593_vm5, %v1236_v41, %v1714_v36  ;;  %v1270_v19 = vrot.slane %v6088_v33, 1 }
 0x26f   :  { %v6156_v20 = vmax.f32 %v1318_v0, %v1319_v8  ;;  %v1289_v21 = vrot.slane %v1288_v11, 2  ;;  %v1295_v25 = vmax.f32 %v1293_v23, %v1294_v12  ;;  %v1308_v26 = vrot.slane %v1307_v16, 4  ;;  %1753 = vrot.lane.b32.xlu1 %v1715_v17, %s5548_s24 }
 0x270   :  { %v1302_v24 = vmax.f32 %v1300_v3, %v1301_v13  ;;  %v1271_v31 = vmax.f32 %v6088_v33, %v1270_v19  ;;  %v1276_v32 = vmax.f32 %v6082_v18, %v1275_v28  ;;  %v1281_v14 = vmax.f32 %v6078_v9, %v1280_v15 }
 0x271   :  { %v1290_v34 = vmax.f32 %v1288_v11, %v1289_v21  ;;  %v1296_v35 = vrot.slane %v1295_v25, 2  ;;  %v1309_v29 = vmax.f32 %v1307_v16, %v1308_v26  ;;  %v1610_v37 = vsel %vm1583_vm13, %v6114_v7, %v1609_v52 }
 0x272   :  { %v1303_v4 = vrot.slane %v1302_v24, 2  ;;  %v1277_v5 = vrot.slane %v1276_v32, 1  ;;  %v1282_v39 = vrot.slane %v1281_v14, 2  ;;  %v1611_v33 = vsel %vm1585_vm14, %v6125_v27, %v1610_v37 }
 0x273   :  { %v1291_v40 = vrot.slane %v1290_v34, 1  ;;  %v1297_v41 = vmax.f32 %v1295_v25, %v1296_v35  ;;  %v1310_v43 = vrot.slane %v1309_v29, 2  ;;  %v1612_v18 = vsel %vm1587_vm15, %v6094_v45, %v1611_v33 }
 0x274   :  { %v1304_v28 = vmax.f32 %v1302_v24, %v1303_v4  ;;  %v1278_v9 = vmax.f32 %v1276_v32, %v1277_v5  ;;  %v1283_v15 = vmax.f32 %v1281_v14, %v1282_v39  ;;  %v1613_v47 = vsel %vm1589_vm0, %v1271_v31, %v1612_v18 }
 0x275   :  { %v1292_v49 = vmax.f32 %v1290_v34, %v1291_v40  ;;  %v1298_v38 = vrot.slane %v1297_v41, 1  ;;  %v1311_v51 = vmax.f32 %v1309_v29, %v1310_v43  ;;  %v1716_v44 = vsel %vm1581_vm12, %v6114_v7, %v6112_v6 }
 0x276   :  { %v1305_v52 = vrot.slane %v1304_v28, 1  ;;  %v1284_v53 = vrot.slane %v1283_v15, 1  ;;  %v1614_v42 = vsel %vm1591_vm2, %v1278_v9, %v1613_v47  ;;  %v1717_v59 = vsel %vm1583_vm13, %v6125_v27, %v1716_v44 }
 0x277   :  { %v6179_v54 = vmax.f32 %v1297_v41, %v1298_v38  ;;  %v1312_v61 = vrot.slane %v1311_v51, 1  ;;  %1654 = vst.msk [vmem:[#allocation3 + $0x19] sm:$0x7f] %vm1653_vm6, %v1614_v42  ;;  %v1718_v62 = vsel %vm1585_vm14, %v6094_v45, %v1717_v59  ;;  %v665_v0 = vmul.f32 %v5028_v58, %v5958_v46 }
 0x278   :  { %v6185_v60 = vmax.f32 %v1304_v28, %v1305_v52  ;;  %v1285_v6 = vmax.f32 %v1283_v15, %v1284_v53  ;;  %v1719_v7 = vsel %vm1587_vm15, %v1271_v31, %v1718_v62  ;;  %v664_v30 = vmul.f32 %v5958_v46, %v618_v63 }
 0x279   :  { %v1720_v2 = vsel %vm1589_vm0, %v1278_v9, %v1719_v7  ;;  %v688_v27 = vadd.f32 %v5963_v50, %v665_v0  ;;  %v6191_v23 = vmax.f32 %v1311_v51, %v1312_v61  ;;  %v1326_v3 = vrot.slane %v1325_v10, 1  ;;  %v5031_v36 = vpop.f32.mrb[12].mxu0 }
 0x27a   :  { %v1661_v8 = vsel %vm1593_vm5, %v1285_v6, %v1614_v42  ;;  %v1721_v45 = vsel %vm1591_vm2, %v1285_v6, %v1720_v2  ;;  %v687_v58 = vadd.f32 %v5963_v50, %v664_v30  ;;  %v1332_v11 = vmax.f32 %v6143_v56, %v1331_v22  ;;  %v6199_v12 = vpop.f32.mrb[13].mxu0 }
 0x27b   :  { %1669 = vrot.lane.b32.xlu0 %v1661_v8, %s5547_s23  ;;  %v704_v63 = vmax.f32 %v688_v27, 0.0  ;;  %v6202_v13 = vmax.f32 %v1325_v10, %v1326_v3  ;;  %v1337_v16 = vmax.f32 %v6137_v48, %v1336_v57  ;;  %v1615_v17 = vsel %vm1581_vm12, %v6179_v54, %v1292_v49 }
 0x27c   :  { %v703_v19 = vmax.f32 %v687_v58, 0.0  ;;  %v1333_v21 = vrot.slane %v1332_v11, 1  ;;  %v1616_v25 = vsel %vm1583_vm13, %v6185_v60, %v1615_v17  ;;  %v667_v56 = vmul.f32 %v5031_v36, %v5958_v46 }
 0x27d   :  { %v912_v22 = vcombine.high %v704_v63, %v704_v63  ;;  %v919_v26 = vrot.slane %v704_v63, %v5968_v55  ;;  %v1338_v24 = vrot.slane %v1337_v16, 2  ;;  %v1617_v10 = vsel %vm1585_vm14, %v6191_v23, %v1616_v25 }
 0x27e   :  { %v895_v31 = vcombine.high %v703_v19, %v703_v19  ;;  %v902_v48 = vrot.slane %v703_v19, %v5968_v55  ;;  %v6216_v57 = vmax.f32 %v1332_v11, %v1333_v21  ;;  %v1618_v32 = vsel %vm1587_vm15, %v6156_v20, %v1617_v10 }
 0x27f   :  { %1755 = vrot.lane.b32.xlu0 %v1721_v45, %s5548_s24  ;;  %v926_v14 = vrot.slane %v912_v22, %v5968_v55  ;;  %v927_v46 = vcombine.high %v919_v26, %v919_v26  ;;  %v1370_v34 = vsel %vm1061_vm11, %v919_v26, -inf  ;;  %v1339_v35 = vmax.f32 %v1337_v16, %v1338_v24  ;;  %v5034_v29 = vpop.f32.mrb[14].mxu0  ;;  %v5519_v24 = vld [vmem:[%s7101_s2] ss:$0 sm:$0xff] }
 0x280   :  { %v1371_v37 = vrot.slane %v1370_v34, 4  ;;  %v909_v4 = vrot.slane %v895_v31, %v5968_v55  ;;  %v910_v5 = vcombine.high %v902_v48, %v902_v48  ;;  %v1342_v39 = vsel %vm1061_vm11, %v902_v48, -inf  ;;  %v638_v33 = vpop.f32.mrb[15].mxu0 }
 0x281   :  { %v928_v40 = vcombine.high %v926_v14, %v926_v14  ;;  %v1377_v41 = vsel %vm1061_vm11, %v927_v46, -inf  ;;  %v1384_v43 = vsel %vm1061_vm11, %v926_v14, -inf  ;;  %v1343_v18 = vrot.slane %v1342_v39, 4 }
 0x282   :  { %v1372_v28 = vmax.f32 %v1370_v34, %v1371_v37  ;;  %v1378_v9 = vrot.slane %v1377_v41, 4  ;;  %v1385_v15 = vrot.slane %v1384_v43, 4  ;;  %v911_v47 = vcombine.high %v909_v4, %v909_v4 }
 0x283   :  { %v6228_v49 = vsel %vm1061_vm11, %v928_v40, -inf  ;;  %v6230_v38 = vmax.f32 %v1342_v39, %v1343_v18  ;;  %v1349_v51 = vsel %vm1061_vm11, %v910_v5, -inf  ;;  %v1356_v44 = vsel %vm1061_vm11, %v909_v4, -inf }
 0x284   :  { %v1373_v52 = vrot.slane %v1372_v28, 2  ;;  %v1379_v53 = vmax.f32 %v1377_v41, %v1378_v9  ;;  %v6234_v42 = vmax.f32 %v1384_v43, %v1385_v15  ;;  %v1392_v59 = vrot.slane %v6228_v49, 4 }
 0x285   :  { %v1345_v61 = vrot.slane %v6230_v38, 2  ;;  %v1350_v62 = vrot.slane %v1349_v51, 4  ;;  %v1357_v0 = vrot.slane %v1356_v44, 4  ;;  %v1363_v6 = vsel %vm1061_vm11, %v911_v47, -inf }
 0x286   :  { %v1374_v7 = vmax.f32 %v1372_v28, %v1373_v52  ;;  %v1380_v30 = vrot.slane %v1379_v53, 2  ;;  %v1387_v2 = vrot.slane %v6234_v42, 2  ;;  %v1364_v27 = vrot.slane %v1363_v6, 4 }
 0x287   :  { %v1351_v3 = vmax.f32 %v1349_v51, %v1350_v62  ;;  %v1358_v36 = vmax.f32 %v1356_v44, %v1357_v0  ;;  %v1340_v8 = vrot.slane %v1339_v35, 1  ;;  %v1619_v45 = vsel %vm1589_vm0, %v6202_v13, %v1618_v32 }
 0x288   :  { %v1375_v58 = vrot.slane %v1374_v7, 1  ;;  %v6242_v11 = vmax.f32 %v1379_v53, %v1380_v30  ;;  %v1365_v63 = vmax.f32 %v1363_v6, %v1364_v27  ;;  %v1620_v16 = vsel %vm1591_vm2, %v6216_v57, %v1619_v45 }
 0x289   :  { %v1352_v17 = vrot.slane %v1351_v3, 2  ;;  %v1359_v19 = vrot.slane %v1358_v36, 2  ;;  %v6246_v21 = vmax.f32 %v1339_v35, %v1340_v8  ;;  %v690_v25 = vadd.f32 %v5963_v50, %v667_v56  ;;  %v5520_v50 = vld [vmem:[%s7102_s3] ss:$0 sm:$0xff] }
 0x28a   :  { %v6249_v22 = vmax.f32 %v1374_v7, %v1375_v58  ;;  %v1366_v26 = vrot.slane %v1365_v63, 2  ;;  %v666_v10 = vmul.f32 %v5519_v24, %v6199_v12  ;;  %v669_v31 = vmul.f32 %v5519_v24, %v5034_v29 }
 0x28b   :  { %v1353_v48 = vmax.f32 %v1351_v3, %v1352_v17  ;;  %v1360_v32 = vmax.f32 %v1358_v36, %v1359_v19  ;;  %v1621_v14 = vsel %vm1593_vm5, %v6246_v21, %v1620_v16  ;;  %v706_v46 = vmax.f32 %v690_v25, 0.0 }
 0x28c   :  { %v6257_v34 = vmax.f32 %v1365_v63, %v1366_v26  ;;  %1671 = vrot.lane.b32.xlu1 %v1621_v14, %s5547_s23  ;;  %1655 = vst.msk [vmem:[#allocation3 + $0x21] sm:$0xff] %vm135_vm1, %v1621_v14  ;;  %v689_v56 = vadd.f32 %v5520_v50, %v666_v10  ;;  %v692_v35 = vadd.f32 %v5520_v50, %v669_v31 }
 0x28d   :  { %v668_v12 = vmul.f32 %v5519_v24, %v638_v33  ;;  %v1354_v29 = vrot.slane %v1353_v48, 1  ;;  %v1361_v37 = vrot.slane %v1360_v32, 1  ;;  %v946_v4 = vcombine.high %v706_v46, %v706_v46  ;;  %v1664_v39 = vpop.permute.xlu1 %1663 }
 0x28e   :  { %v953_v5 = vrot.slane %v706_v46, %v5968_v55  ;;  %v1368_v40 = vrot.slane %v6257_v34, 1  ;;  %v705_v41 = vmax.f32 %v689_v56, 0.0  ;;  %v708_v43 = vmax.f32 %v692_v35, 0.0  ;;  %1687 = vst.msk [vmem:[#allocation3] sm:$0xff] %vm186_vm3, %v1664_v39 }
 0x28f   :  { %v691_v18 = vadd.f32 %v5520_v50, %v668_v12  ;;  %v6267_v28 = vmax.f32 %v1353_v48, %v1354_v29  ;;  %v6269_v9 = vmax.f32 %v1360_v32, %v1361_v37  ;;  %v960_v15 = vrot.slane %v946_v4, %v5968_v55 }
 0x290   :  { %v961_v33 = vcombine.high %v953_v5, %v953_v5  ;;  %v1426_v47 = vsel %vm1061_vm11, %v953_v5, -inf  ;;  %v929_v51 = vcombine.high %v705_v41, %v705_v41  ;;  %v936_v44 = vrot.slane %v705_v41, %v5968_v55 }
 0x291   :  { %v980_v52 = vcombine.high %v708_v43, %v708_v43  ;;  %v962_v53 = vcombine.high %v960_v15, %v960_v15  ;;  %v1427_v62 = vrot.slane %v1426_v47, 4  ;;  %v1440_v6 = vsel %vm1061_vm11, %v960_v15, -inf }
 0x292   :  { %v1433_v0 = vsel %vm1061_vm11, %v961_v33, -inf  ;;  %v1441_v30 = vrot.slane %v1440_v6, 4  ;;  %v943_v27 = vrot.slane %v929_v51, %v5968_v55  ;;  %v944_v3 = vcombine.high %v936_v44, %v936_v44 }
 0x293   :  { %v1434_v7 = vrot.slane %v1433_v0, 4  ;;  %v1428_v36 = vmax.f32 %v1426_v47, %v1427_v62  ;;  %v6278_v8 = vsel %vm1061_vm11, %v962_v53, -inf  ;;  %v1398_v45 = vsel %vm1061_vm11, %v936_v44, -inf }
 0x294   :  { %v987_v58 = vrot.slane %v708_v43, %v5968_v55  ;;  %v1442_v16 = vmax.f32 %v1440_v6, %v1441_v30  ;;  %v1448_v17 = vrot.slane %v6278_v8, 4  ;;  %v945_v19 = vcombine.high %v943_v27, %v943_v27 }
 0x295   :  { %v1435_v63 = vmax.f32 %v1433_v0, %v1434_v7  ;;  %v1429_v25 = vrot.slane %v1428_v36, 2  ;;  %v1399_v26 = vrot.slane %v1398_v45, 4  ;;  %v1405_v24 = vsel %vm1061_vm11, %v944_v3, -inf }
 0x296   :  { %v1412_v10 = vsel %vm1061_vm11, %v943_v27, -inf  ;;  %v1443_v48 = vrot.slane %v1442_v16, 2  ;;  %v1406_v32 = vrot.slane %v1405_v24, 4  ;;  %v1419_v56 = vsel %vm1061_vm11, %v945_v19, -inf }
 0x297   :  { %v1436_v31 = vrot.slane %v1435_v63, 2  ;;  %v1413_v14 = vrot.slane %v1412_v10, 4  ;;  %v1430_v46 = vmax.f32 %v1428_v36, %v1429_v25  ;;  %v6285_v50 = vmax.f32 %v1398_v45, %v1399_v26 }
 0x298   :  { %v994_v35 = vrot.slane %v980_v52, %v5968_v55  ;;  %v6291_v29 = vmax.f32 %v1442_v16, %v1443_v48  ;;  %v1407_v37 = vmax.f32 %v1405_v24, %v1406_v32  ;;  %v1420_v41 = vrot.slane %v1419_v56, 4 }
 0x299   :  { %v6289_v12 = vmax.f32 %v1435_v63, %v1436_v31  ;;  %v1414_v4 = vmax.f32 %v1412_v10, %v1413_v14  ;;  %v1431_v5 = vrot.slane %v1430_v46, 1  ;;  %v1401_v39 = vrot.slane %v6285_v50, 2 }
 0x29a   :  { %v995_v43 = vcombine.high %v987_v58, %v987_v58  ;;  %v1408_v33 = vrot.slane %v1407_v37, 2  ;;  %v996_v51 = vcombine.high %v994_v35, %v994_v35  ;;  %v1421_v53 = vmax.f32 %v1419_v56, %v1420_v41 }
 0x29b   :  { %v1438_v15 = vrot.slane %v6289_v12, 1  ;;  %v1415_v47 = vrot.slane %v1414_v4, 2  ;;  %v6295_v44 = vmax.f32 %v1430_v46, %v1431_v5  ;;  %v1482_v52 = vsel %vm1061_vm11, %v987_v58, -inf }
 0x29c   :  { %v1489_v62 = vsel %vm1061_vm11, %v995_v43, -inf  ;;  %v1409_v0 = vmax.f32 %v1407_v37, %v1408_v33  ;;  %v1483_v7 = vrot.slane %v1482_v52, 4  ;;  %v1422_v27 = vrot.slane %v1421_v53, 2 }
 0x29d   :  { %v1416_v6 = vmax.f32 %v1414_v4, %v1415_v47  ;;  %v1490_v30 = vrot.slane %v1489_v62, 4  ;;  %v1496_v3 = vsel %vm1061_vm11, %v994_v35, -inf  ;;  %v6301_v36 = vsel %vm1061_vm11, %v996_v51, -inf }
 0x29e   :  { %v707_v45 = vmax.f32 %v691_v18, 0.0  ;;  %v1410_v63 = vrot.slane %v1409_v0, 1  ;;  %v1484_v19 = vmax.f32 %v1482_v52, %v1483_v7  ;;  %v1423_v26 = vmax.f32 %v1421_v53, %v1422_v27 }
 0x29f   :  { %v1417_v16 = vrot.slane %v1416_v6, 1  ;;  %v1491_v25 = vmax.f32 %v1489_v62, %v1490_v30  ;;  %v1497_v24 = vrot.slane %v1496_v3, 4  ;;  %v1504_v58 = vrot.slane %v6301_v36, 4 }
 0x2a0   :  { %v963_v10 = vcombine.high %v707_v45, %v707_v45  ;;  %v6304_v31 = vmax.f32 %v1409_v0, %v1410_v63  ;;  %v1485_v32 = vrot.slane %v1484_v19, 2  ;;  %v1424_v46 = vrot.slane %v1423_v26, 1 }
 0x2a1   :  { %v6306_v48 = vmax.f32 %v1416_v6, %v1417_v16  ;;  %v1492_v14 = vrot.slane %v1491_v25, 2  ;;  %v6308_v56 = vmax.f32 %v1496_v3, %v1497_v24  ;;  %v970_v18 = vrot.slane %v707_v45, %v5968_v55 }
 0x2a2   :  { %v977_v35 = vrot.slane %v963_v10, %v5968_v55  ;;  %v1486_v37 = vmax.f32 %v1484_v19, %v1485_v32  ;;  %v1346_v5 = vmax.f32 %v6230_v38, %v1345_v61  ;;  %v1722_v41 = vsel %vm1581_vm12, %v6185_v60, %v6179_v54 }
 0x2a3   :  { %v6312_v4 = vmax.f32 %v1491_v25, %v1492_v14  ;;  %v6320_v43 = vmax.f32 %v1423_v26, %v1424_v46  ;;  %v1499_v33 = vrot.slane %v6308_v56, 2  ;;  %v978_v47 = vcombine.high %v970_v18, %v970_v18  ;;  %v1750_v53 = vpop.permute.xlu1 %1749 }
 0x2a4   :  { %v979_v51 = vcombine.high %v977_v35, %v977_v35  ;;  %v1487_v52 = vrot.slane %v1486_v37, 1  ;;  %v1454_v62 = vsel %vm1061_vm11, %v970_v18, -inf  ;;  %v1468_v0 = vsel %vm1061_vm11, %v977_v35, -inf  ;;  %1773 = vst.msk [vmem:[#allocation3] sm:$0xff] %vm260_vm4, %v1750_v53 }
 0x2a5   :  { %v1347_v6 = vrot.slane %v1346_v5, 1  ;;  %v1455_v38 = vrot.slane %v1454_v62, 4  ;;  %v1461_v61 = vsel %vm1061_vm11, %v978_v47, -inf  ;;  %v1469_v7 = vrot.slane %v1468_v0, 4 }
 0x2a6   :  { %v1475_v54 = vsel %vm1061_vm11, %v979_v51, -inf  ;;  %v6328_v60 = vmax.f32 %v1486_v37, %v1487_v52  ;;  %v1462_v30 = vrot.slane %v1461_v61, 4  ;;  %v1723_v16 = vsel %vm1583_vm13, %v6191_v23, %v1722_v41 }
 0x2a7   :  { %v1476_v27 = vrot.slane %v1475_v54, 4  ;;  %v1348_v3 = vmax.f32 %v1346_v5, %v1347_v6  ;;  %v1456_v45 = vmax.f32 %v1454_v62, %v1455_v38  ;;  %v1470_v63 = vmax.f32 %v1468_v0, %v1469_v7 }
 0x2a8   :  { %v1369_v19 = vmax.f32 %v6257_v34, %v1368_v40  ;;  %v1463_v25 = vmax.f32 %v1461_v61, %v1462_v30  ;;  %v1724_v24 = vsel %vm1585_vm14, %v6156_v20, %v1723_v16  ;;  %v1382_v18 = vrot.slane %v6242_v11, 1 }
 0x2a9   :  { %v1477_v26 = vmax.f32 %v1475_v54, %v1476_v27  ;;  %v1622_v10 = vsel %vm1581_vm12, %v6267_v28, %v1348_v3  ;;  %v1457_v32 = vrot.slane %v1456_v45, 2  ;;  %v1471_v14 = vrot.slane %v1470_v63, 2 }
 0x2aa   :  { %v1725_v46 = vsel %vm1587_vm15, %v6202_v13, %v1724_v24  ;;  %v1464_v23 = vrot.slane %v1463_v25, 2  ;;  %v1388_v40 = vmax.f32 %v6234_v42, %v1387_v2  ;;  %v1383_v5 = vmax.f32 %v6242_v11, %v1382_v18 }
 0x2ab   :  { %v1478_v35 = vrot.slane %v1477_v26, 2  ;;  %v1726_v34 = vsel %vm1589_vm0, %v6216_v57, %v1725_v46  ;;  %v1472_v20 = vmax.f32 %v1470_v63, %v1471_v14  ;;  %v1393_v13 = vmax.f32 %v6228_v49, %v1392_v59  ;;  %v1782_v41 = vld [vmem:[#allocation3] sm:$0xff] }
 0x2ac   :  { %v1727_v37 = vsel %vm1591_vm2, %v6246_v21, %v1726_v34  ;;  %v1465_v47 = vmax.f32 %v1463_v25, %v1464_v23  ;;  %v1389_v57 = vrot.slane %v1388_v40, 1  ;;  %5041 = vmatprep.mubr.msk.f32.mxu1 %vm1510_vm10, %v1782_v41  ;;  %v1623_v2 = vsel %vm1583_vm13, %v6269_v9, %v1622_v10 }
 0x2ad   :  { %v1479_v51 = vmax.f32 %v1477_v26, %v1478_v35  ;;  %v1728_v53 = vsel %vm1593_vm5, %v1348_v3, %v1727_v37  ;;  %v1473_v52 = vrot.slane %v1472_v20, 1  ;;  %v1394_v42 = vrot.slane %v1393_v13, 2  ;;  %v1666_v49 = vpop.permute.xlu0 %1665 }
 0x2ae   :  { %1757 = vrot.lane.b32.xlu1 %v1728_v53, %s5548_s24  ;;  %v1402_v11 = vmax.f32 %v6285_v50, %v1401_v39  ;;  %v1466_v59 = vrot.slane %v1465_v47, 1  ;;  %v1390_v62 = vmax.f32 %v1388_v40, %v1389_v57  ;;  %v1624_v0 = vsel %vm1585_vm14, %v1369_v19, %v1623_v2  ;;  %1688 = vst.msk [vmem:[#allocation3 + $0x8] sm:$0xff] %vm186_vm3, %v1666_v49 }
 0x2af   :  { %v1480_v21 = vrot.slane %v1479_v51, 1  ;;  %v1474_v6 = vmax.f32 %v1472_v20, %v1473_v52  ;;  %v1395_v38 = vmax.f32 %v1393_v13, %v1394_v42  ;;  %v1625_v61 = vsel %vm1587_vm15, %v6249_v22, %v1624_v0 }
 0x2b0   :  { %v1403_v7 = vrot.slane %v1402_v11, 1  ;;  %v1467_v54 = vmax.f32 %v1465_v47, %v1466_v59  ;;  %v1626_v30 = vsel %vm1589_vm0, %v1383_v5, %v1625_v61  ;;  %v1729_v50 = vsel %vm1581_vm12, %v6269_v9, %v6267_v28 }
 0x2b1   :  { %v1439_v39 = vmax.f32 %v6289_v12, %v1438_v15  ;;  %v1396_v27 = vrot.slane %v1395_v38, 1  ;;  %v1627_v3 = vsel %vm1591_vm2, %v1390_v62, %v1626_v30  ;;  %v1730_v16 = vsel %vm1583_vm13, %v1369_v19, %v1729_v50 }
 0x2b2   :  { %v1404_v63 = vmax.f32 %v1402_v11, %v1403_v7  ;;  %v1731_v25 = vsel %vm1585_vm14, %v6249_v22, %v1730_v16  ;;  %v1445_v26 = vrot.slane %v6291_v29, 1  ;;  %v1449_v24 = vmax.f32 %v6278_v8, %v1448_v17 }
 0x2b3   :  { %v1458_v28 = vmax.f32 %v1456_v45, %v1457_v32  ;;  %v1397_v9 = vmax.f32 %v1395_v38, %v1396_v27  ;;  %v1732_v10 = vsel %vm1587_vm15, %v1383_v5, %v1731_v25  ;;  %v1736_v15 = vsel %vm1581_vm12, %v6306_v48, %v6304_v31 }
 0x2b4   :  { %v1629_v12 = vsel %vm1581_vm12, %v6304_v31, %v1404_v63  ;;  %v1733_v19 = vsel %vm1589_vm0, %v1390_v62, %v1732_v10  ;;  %v1446_v14 = vmax.f32 %v6291_v29, %v1445_v26  ;;  %v1450_v46 = vrot.slane %v1449_v24, 2 }
 0x2b5   :  { %v1630_v22 = vsel %vm1583_vm13, %v6306_v48, %v1629_v12  ;;  %v1628_v8 = vsel %vm1593_vm5, %v1397_v9, %v1627_v3  ;;  %v1734_v17 = vsel %vm1591_vm2, %v1397_v9, %v1733_v19  ;;  %v1459_v32 = vrot.slane %v1458_v28, 1 }
 0x2b6   :  { %v1631_v45 = vsel %vm1585_vm14, %v6320_v43, %v1630_v22  ;;  %1673 = vrot.lane.b32.xlu0 %v1628_v8, %s5547_s23  ;;  %1656 = vst.msk [vmem:[#allocation3 + $0x29] sm:$0xff] %vm135_vm1, %v1628_v8  ;;  %v1735_v31 = vsel %vm1593_vm5, %v1404_v63, %v1734_v17  ;;  %v1451_v18 = vmax.f32 %v1449_v24, %v1450_v46  ;;  %v1494_v13 = vrot.slane %v6312_v4, 1 }
 0x2b7   :  { %v1632_v48 = vsel %vm1587_vm15, %v6295_v44, %v1631_v45  ;;  %v1737_v29 = vsel %vm1583_vm13, %v6320_v43, %v1736_v15  ;;  %v1460_v35 = vmax.f32 %v1458_v28, %v1459_v32  ;;  %v1481_v40 = vmax.f32 %v1479_v51, %v1480_v21 }
 0x2b8   :  { %v1633_v23 = vsel %vm1589_vm0, %v1439_v39, %v1632_v48  ;;  %v1738_v34 = vsel %vm1585_vm14, %v6295_v44, %v1737_v29  ;;  %v1452_v20 = vrot.slane %v1451_v18, 1  ;;  %v1500_v43 = vmax.f32 %v6308_v56, %v1499_v33  ;;  %v1790_v56 = vld [vmem:[%s7103_s4] sm:$0xff] }
 0x2b9   :  { %v1634_v37 = vsel %vm1591_vm2, %v1446_v14, %v1633_v23  ;;  %v1739_v5 = vsel %vm1587_vm15, %v1439_v39, %v1738_v34  ;;  %v1636_v47 = vsel %vm1581_vm12, %v1467_v54, %v1460_v35  ;;  %v1505_v44 = vmax.f32 %v6301_v36, %v1504_v58  ;;  %v1791_v36 = vld [vmem:[%s7103_s4 + $0x8] sm:$0xff]  ;;  %v6485_v29 = vld [vmem:[%s7105_s6] ss:$0 sm:$0xff] }
 0x2ba   :  { %v1740_v41 = vsel %vm1589_vm0, %v1446_v14, %v1739_v5  ;;  %1759 = vrot.lane.b32.xlu0 %v1735_v31, %s5548_s24  ;;  %v1453_v51 = vmax.f32 %v1451_v18, %v1452_v20  ;;  %v1495_v53 = vmax.f32 %v6312_v4, %v1494_v13  ;;  %v1637_v57 = vsel %vm1583_vm13, %v1474_v6, %v1636_v47  ;;  %v6480_v18 = vld [vmem:[%s7104_s5] ss:$0 sm:$0xff] }
 0x2bb   :  { %v1743_v52 = vsel %vm1581_vm12, %v1474_v6, %v1467_v54  ;;  %v1501_v42 = vrot.slane %v1500_v43, 1  ;;  %v1506_v2 = vrot.slane %v1505_v44, 2  ;;  %v1638_v11 = vsel %vm1585_vm14, %v1481_v40, %v1637_v57 }
 0x2bc   :  { %v1744_v49 = vsel %vm1583_vm13, %v1481_v40, %v1743_v52  ;;  %v1635_v58 = vsel %vm1593_vm5, %v1453_v51, %v1634_v37  ;;  %v1741_v4 = vsel %vm1591_vm2, %v1453_v51, %v1740_v41  ;;  %v1639_v33 = vsel %vm1587_vm15, %v6328_v60, %v1638_v11 }
 0x2bd   :  { %v1745_v59 = vsel %vm1585_vm14, %v6328_v60, %v1744_v49  ;;  %1675 = vrot.lane.b32.xlu1 %v1635_v58, %s5547_s23  ;;  %1657 = vst.msk [vmem:[#allocation3 + $0x31] sm:$0xff] %vm135_vm1, %v1635_v58  ;;  %v1742_v21 = vsel %vm1593_vm5, %v1460_v35, %v1741_v4  ;;  %v1502_v62 = vmax.f32 %v1500_v43, %v1501_v42  ;;  %v1792_v60 = vld [vmem:[%s7103_s4 + $0x10] sm:$0xff] }
 0x2be   :  { %v1507_v0 = vmax.f32 %v1505_v44, %v1506_v2  ;;  %v1640_v6 = vsel %vm1589_vm0, %v1495_v53, %v1639_v33  ;;  %v1746_v38 = vsel %vm1587_vm15, %v1495_v53, %v1745_v59  ;;  %v5265_v61 = vpack.c.bf16 %v1791_v36, %v1790_v56 }
 0x2bf   :  { %v1641_v54 = vsel %vm1591_vm2, %v1502_v62, %v1640_v6  ;;  %v1747_v30 = vsel %vm1589_vm0, %v1502_v62, %v1746_v38 }
 0x2c0   :  { %v1508_v7 = vrot.slane %v1507_v0, 1  ;;  %1658 = vst.msk [vmem:[#allocation3 + $0x39] sm:$0x7f] %vm1653_vm6, %v1641_v54  ;;  %5266 = vmatprep.subr.bf16.mxu1 %v5265_v61  ;;  %vm2491_vm6 = vcmask 392448  }
 0x2c1   :  { %1761 = vrot.lane.b32.xlu1 %v1742_v21, %s5548_s24  ;;  %5268 = vmatpush3.bf16.msra.mxu1 %v5265_v61 }
 0x2c2   :  { %v1509_v50 = vmax.f32 %v1507_v0, %v1508_v7  ;;  %5039 = vmatprep.subr.mxu1 %v1792_v60 }
 0x2c4   :  { %v1662_v39 = vsel %vm1593_vm5, %v1509_v50, %v1641_v54  ;;  %v1748_v27 = vsel %vm1591_vm2, %v1509_v50, %v1747_v30 }
 0x2c5   :  { %1677 = vrot.lane.b32.xlu0 %v1662_v39, %s5547_s23  ;;  %5040 = vmatpush3.msra.mxu1 %v1792_v60 }
 0x2c9   :  { %1763 = vrot.lane.b32.xlu0 %v1748_v27, %s5548_s24 }
 0x2cc   :  { %v1752_v3 = vpop.permute.xlu0 %1751 }
 0x2cd   :  { %1774 = vst.msk [vmem:[#allocation3 + $0x8] sm:$0xff] %vm260_vm4, %v1752_v3 }
 0x2d4   :  { %v1783_v63 = vld [vmem:[#allocation3 + $0x8] sm:$0xff] }
 0x2d5   :  { %5042 = vmatmul.mubr.msk.f32.vlgmr.msra.gmra.mrb[0].mxu1 %vm1510_vm10, %v1783_v63 }
 0x2d8   :  { %v1668_v16 = vpop.permute.xlu1 %1667 }
 0x2d9   :  { %1689 = vst.msk [vmem:[#allocation3 + $0x10] sm:$0xff] %vm186_vm3, %v1668_v16 }
 0x2e1   :  { %v1754_v25 = vpop.permute.xlu1 %1753 }
 0x2e2   :  { %1775 = vst.msk [vmem:[#allocation3 + $0x10] sm:$0xff] %vm260_vm4, %v1754_v25 }
 0x2e9   :  { %v1784_v26 = vld [vmem:[#allocation3 + $0x10] sm:$0xff] }
 0x2ea   :  { %5044 = vmatprep.mubr.msk.f32.mxu1 %vm1510_vm10, %v1784_v26 }
 0x2ed   :  { %v1670_v24 = vpop.permute.xlu0 %1669 }
 0x2ee   :  { %1690 = vst.msk [vmem:[#allocation3 + $0x18] sm:$0xff] %vm186_vm3, %v1670_v24 }
 0x2f1   :  { %v1756_v28 = vpop.permute.xlu0 %1755 }
 0x2f2   :  { %1777 = vst.msk [vmem:[#allocation3 + $0x18] sm:$0x7f] %vm1776_vm7, %v1756_v28 }
 0x2f9   :  { %v1785_v9 = vld [vmem:[#allocation3 + $0x18] sm:$0xff] }
 0x2fa   :  { %5045 = vmatmul.mubr.msk.f32.gmra.mrb[2].mxu1 %vm1510_vm10, %v1785_v9 }
 0x2fe   :  { %v1672_v10 = vpop.permute.xlu1 %1671 }
 0x2ff   :  { %1691 = vst.msk [vmem:[#allocation3 + $0x20] sm:$0xff] %vm186_vm3, %v1672_v10 }
 0x320   :  { %v1758_v12 = vpop.permute.xlu1 %1757 }
 0x321   :  { %1778 = vst.msk [vmem:[#allocation3 + $0x20] sm:$0xff] %vm260_vm4, %v1758_v12 }
 0x328   :  { %v1786_v15 = vld [vmem:[#allocation3 + $0x20] sm:$0xff]  ;;  %v1674_v19 = vpop.permute.xlu0 %1673 }
 0x329   :  { %5047 = vmatprep.mubr.msk.f32.mxu1 %vm1510_vm10, %v1786_v15  ;;  %1692 = vst.msk [vmem:[#allocation3 + $0x28] sm:$0xff] %vm186_vm3, %v1674_v19 }
 0x32c   :  { %v1760_v22 = vpop.permute.xlu0 %1759 }
 0x32d   :  { %1779 = vst.msk [vmem:[#allocation3 + $0x28] sm:$0xff] %vm260_vm4, %v1760_v22 }
 0x32f   :  { %v1676_v14 = vpop.permute.xlu1 %1675 }
 0x330   :  { %1693 = vst.msk [vmem:[#allocation3 + $0x30] sm:$0xff] %vm186_vm3, %v1676_v14 }
 0x333   :  { %v1762_v46 = vpop.permute.xlu1 %1761 }
 0x334   :  { %v1787_v8 = vld [vmem:[#allocation3 + $0x28] sm:$0xff]  ;;  %1780 = vst.msk [vmem:[#allocation3 + $0x30] sm:$0xff] %vm260_vm4, %v1762_v46  ;;  %vm2426_vm4 = vcmask 130048  }
 0x335   :  { %5048 = vmatmul.mubr.msk.f32.gmra.mrb[4].mxu1 %vm1510_vm10, %v1787_v8 }
 0x337   :  { %v1678_v17 = vpop.permute.xlu0 %1677 }
 0x338   :  { %1694 = vst.msk [vmem:[#allocation3 + $0x38] sm:$0xff] %vm186_vm3, %v1678_v17  ;;  %vm2136_vm3 = vcmask 123904  }
 0x33b   :  { %v1764_v45 = vpop.permute.xlu0 %1763  ;;  %v1788_v32 = vld [vmem:[#allocation3 + $0x30] sm:$0xff] }
 0x33c   :  { %1781 = vst.msk [vmem:[#allocation3 + $0x38] sm:$0x7f] %vm1776_vm7, %v1764_v45  ;;  %5050 = vmatprep.mubr.msk.f32.mxu1 %vm1510_vm10, %v1788_v32  ;;  %vm2493_vm7 = vcmask 391424  }
 0x343   :  { %v1789_v31 = vld [vmem:[#allocation3 + $0x38] sm:$0xff] }
 0x344   :  { %5051 = vmatmul.mubr.msk.f32.gmra.mrb[6].mxu1 %vm1510_vm10, %v1789_v31  ;;  %vm2448_vm10 = vcmask 261248  }
 0x3a8   :  { %v5043_v48 = vpop.f32.mrb[0].mxu1 }
 0x3a9   :  { %v1930_v23 = vmul.f32 %v5043_v48, %v6480_v18  ;;  %v1883_v35 = vpop.f32.mrb[1].mxu1 }
 0x3aa   :  { %v1929_v34 = vmul.f32 %v6480_v18, %v1883_v35 }
 0x3ab   :  { %v1945_v40 = vadd.f32 %v6485_v29, %v1930_v23 }
 0x3ac   :  { %v1944_v20 = vadd.f32 %v6485_v29, %v1929_v34 }
 0x3ad   :  { %v1953_v37 = vmax.f32 %v1945_v40, 0.0 }
 0x3ae   :  { %v1952_v5 = vmax.f32 %v1944_v20, 0.0 }
 0x3af   :  { %v1985_v13 = vcombine.high %v1953_v37, %v1953_v37  ;;  %v1992_v41 = vrot.slane %v1953_v37, %v5968_v55 }
 0x3b0   :  { %v1968_v47 = vcombine.high %v1952_v5, %v1952_v5  ;;  %v1975_v43 = vrot.slane %v1952_v5, %v5968_v55 }
 0x3b1   :  { %v1999_v44 = vrot.slane %v1985_v13, %v5968_v55  ;;  %v2000_v51 = vcombine.high %v1992_v41, %v1992_v41  ;;  %v2165_v53 = vsel %vm2136_vm3, %v1992_v41, -inf }
 0x3b2   :  { %v2166_v57 = vrot.slane %v2165_v53, 4  ;;  %v1982_v52 = vrot.slane %v1968_v47, %v5968_v55  ;;  %v1983_v42 = vcombine.high %v1975_v43, %v1975_v43  ;;  %v2137_v2 = vsel %vm2136_vm3, %v1975_v43, -inf }
 0x3b3   :  { %v2001_v11 = vcombine.high %v1999_v44, %v1999_v44  ;;  %v2172_v49 = vsel %vm2136_vm3, %v2000_v51, -inf  ;;  %v2179_v56 = vsel %vm2136_vm3, %v1999_v44, -inf  ;;  %v2138_v36 = vrot.slane %v2137_v2, 4 }
 0x3b4   :  { %v2167_v58 = vmax.f32 %v2165_v53, %v2166_v57  ;;  %v2173_v4 = vrot.slane %v2172_v49, 4  ;;  %v2180_v33 = vrot.slane %v2179_v56, 4  ;;  %v1984_v59 = vcombine.high %v1982_v52, %v1982_v52 }
 0x3b5   :  { %v2186_v21 = vsel %vm2136_vm3, %v2001_v11, -inf  ;;  %v2139_v62 = vmax.f32 %v2137_v2, %v2138_v36  ;;  %v2144_v0 = vsel %vm2136_vm3, %v1983_v42, -inf  ;;  %v2151_v6 = vsel %vm2136_vm3, %v1982_v52, -inf }
 0x3b6   :  { %v2168_v38 = vrot.slane %v2167_v58, 2  ;;  %v2174_v61 = vmax.f32 %v2172_v49, %v2173_v4  ;;  %v2181_v7 = vmax.f32 %v2179_v56, %v2180_v33  ;;  %v2187_v54 = vrot.slane %v2186_v21, 4 }
 0x3b7   :  { %v2140_v30 = vrot.slane %v2139_v62, 2  ;;  %v2145_v60 = vrot.slane %v2144_v0, 4  ;;  %v2152_v50 = vrot.slane %v2151_v6, 4  ;;  %v2158_v39 = vsel %vm2136_vm3, %v1984_v59, -inf }
 0x3b8   :  { %v2175_v27 = vrot.slane %v2174_v61, 2  ;;  %v2182_v3 = vrot.slane %v2181_v7, 2  ;;  %v2159_v63 = vrot.slane %v2158_v39, 4  ;;  %v2188_v24 = vmax.f32 %v2186_v21, %v2187_v54 }
 0x3b9   :  { %v2141_v16 = vmax.f32 %v2139_v62, %v2140_v30  ;;  %v2146_v25 = vmax.f32 %v2144_v0, %v2145_v60  ;;  %v2153_v26 = vmax.f32 %v2151_v6, %v2152_v50  ;;  %v2169_v9 = vmax.f32 %v2167_v58, %v2168_v38 }
 0x3ba   :  { %v2160_v28 = vmax.f32 %v2158_v39, %v2159_v63  ;;  %v2189_v15 = vrot.slane %v2188_v24, 2  ;;  %v2176_v19 = vmax.f32 %v2174_v61, %v2175_v27  ;;  %v2183_v14 = vmax.f32 %v2181_v7, %v2182_v3 }
 0x3bb   :  { %v2147_v10 = vrot.slane %v2146_v25, 2  ;;  %v2154_v12 = vrot.slane %v2153_v26, 2  ;;  %v2142_v46 = vrot.slane %v2141_v16, 1  ;;  %v2170_v31 = vrot.slane %v2169_v9, 1 }
 0x3bc   :  { %v2161_v22 = vrot.slane %v2160_v28, 2  ;;  %v2190_v32 = vmax.f32 %v2188_v24, %v2189_v15  ;;  %v2177_v35 = vrot.slane %v2176_v19, 1  ;;  %v2184_v5 = vrot.slane %v2183_v14, 1 }
 0x3bd   :  { %v2148_v8 = vmax.f32 %v2146_v25, %v2147_v10  ;;  %v2155_v17 = vmax.f32 %v2153_v26, %v2154_v12  ;;  %v2143_v40 = vmax.f32 %v2141_v16, %v2142_v46  ;;  %v2171_v47 = vmax.f32 %v2169_v9, %v2170_v31 }
 0x3be   :  { %v2162_v45 = vmax.f32 %v2160_v28, %v2161_v22  ;;  %v2191_v41 = vrot.slane %v2190_v32, 1  ;;  %v2178_v51 = vmax.f32 %v2176_v19, %v2177_v35  ;;  %v2185_v52 = vmax.f32 %v2183_v14, %v2184_v5 }
 0x3bf   :  { %v2149_v48 = vrot.slane %v2148_v8, 1  ;;  %v2156_v23 = vrot.slane %v2155_v17, 1 }
 0x3c0   :  { %v2163_v34 = vrot.slane %v2162_v45, 1  ;;  %v2192_v11 = vmax.f32 %v2190_v32, %v2191_v41 }
 0x3c1   :  { %v2150_v20 = vmax.f32 %v2148_v8, %v2149_v48  ;;  %v2157_v37 = vmax.f32 %v2155_v17, %v2156_v23 }
 0x3c2   :  { %v2164_v13 = vmax.f32 %v2162_v45, %v2163_v34 }
 0x3c3   :  { %v2396_v43 = vsel %vm1581_vm12, %v2150_v20, %v2143_v40  ;;  %v2453_v44 = vsel %vm1581_vm12, %v2157_v37, %v2150_v20 }
 0x3c4   :  { %v2397_v53 = vsel %vm1583_vm13, %v2157_v37, %v2396_v43  ;;  %v2454_v57 = vsel %vm1583_vm13, %v2164_v13, %v2453_v44 }
 0x3c5   :  { %v2398_v42 = vsel %vm1585_vm14, %v2164_v13, %v2397_v53  ;;  %v2455_v2 = vsel %vm1585_vm14, %v2171_v47, %v2454_v57 }
 0x3c6   :  { %v2399_v49 = vsel %vm1587_vm15, %v2171_v47, %v2398_v42  ;;  %v2456_v56 = vsel %vm1587_vm15, %v2178_v51, %v2455_v2 }
 0x3c7   :  { %v2400_v36 = vsel %vm1589_vm0, %v2178_v51, %v2399_v49  ;;  %v2457_v58 = vsel %vm1589_vm0, %v2185_v52, %v2456_v56 }
 0x3c8   :  { %v2401_v4 = vsel %vm1591_vm2, %v2185_v52, %v2400_v36  ;;  %v6515_v33 = vsel %vm1591_vm2, %v2192_v11, %v2457_v58 }
 0x3c9   :  { %v2402_v59 = vsel %vm1593_vm5, %v2192_v11, %v2401_v4 }
 0x3ca   :  { %2436 = vrot.lane.b32.xlu1 %v2402_v59, %s5548_s24  ;;  %2427 = vst.msk [vmem:[#allocation4 + $0x1] sm:$0xff] %vm2426_vm4, %v2402_v59  ;;  %v2501_v59 = vld [vmem:[%s7106_s7] sm:$0xff] }
 0x3cd   :  { %v5046_v21 = vpop.f32.mrb[2].mxu1 }
 0x3ce   :  { %v1932_v62 = vmul.f32 %v5046_v21, %v6480_v18  ;;  %v1893_v0 = vpop.f32.mrb[3].mxu1  ;;  %v2502_v21 = vld [vmem:[%s7106_s7 + $0x8] sm:$0xff] }
 0x3cf   :  { %v1931_v6 = vmul.f32 %v6480_v18, %v1893_v0 }
 0x3d0   :  { %v1947_v38 = vadd.f32 %v6485_v29, %v1932_v62 }
 0x3d1   :  { %v1946_v61 = vadd.f32 %v6485_v29, %v1931_v6  ;;  %v5269_v6 = vpack.c.bf16 %v2502_v21, %v2501_v59 }
 0x3d2   :  { %v1955_v7 = vmax.f32 %v1947_v38, 0.0 }
 0x3d3   :  { %v1954_v54 = vmax.f32 %v1946_v61, 0.0  ;;  %5270 = vmatprep.subr.bf16.mxu1 %v5269_v6 }
 0x3d4   :  { %v2019_v30 = vcombine.high %v1955_v7, %v1955_v7  ;;  %v2026_v60 = vrot.slane %v1955_v7, %v5968_v55  ;;  %5272 = vmatpush3.bf16.msra.mxu1 %v5269_v6 }
 0x3d5   :  { %v2002_v50 = vcombine.high %v1954_v54, %v1954_v54  ;;  %v2009_v39 = vrot.slane %v1954_v54, %v5968_v55 }
 0x3d6   :  { %v2033_v27 = vrot.slane %v2019_v30, %v5968_v55  ;;  %v2034_v3 = vcombine.high %v2026_v60, %v2026_v60  ;;  %v2221_v63 = vsel %vm2136_vm3, %v2026_v60, -inf }
 0x3d7   :  { %v2222_v16 = vrot.slane %v2221_v63, 4  ;;  %v2016_v25 = vrot.slane %v2002_v50, %v5968_v55  ;;  %v2017_v26 = vcombine.high %v2009_v39, %v2009_v39  ;;  %v2193_v24 = vsel %vm2136_vm3, %v2009_v39, -inf }
 0x3d8   :  { %v2035_v28 = vcombine.high %v2033_v27, %v2033_v27  ;;  %v2228_v9 = vsel %vm2136_vm3, %v2034_v3, -inf  ;;  %v2235_v10 = vsel %vm2136_vm3, %v2033_v27, -inf  ;;  %v2194_v12 = vrot.slane %v2193_v24, 4  ;;  %v2503_v3 = vld [vmem:[%s7106_s7 + $0x10] sm:$0xff] }
 0x3d9   :  { %v2223_v15 = vmax.f32 %v2221_v63, %v2222_v16  ;;  %v2229_v19 = vrot.slane %v2228_v9, 4  ;;  %v2236_v22 = vrot.slane %v2235_v10, 4  ;;  %v2018_v14 = vcombine.high %v2016_v25, %v2016_v25  ;;  %v2504_v63 = vld [vmem:[%s7106_s7 + $0x18] sm:$0xff] }
 0x3da   :  { %v2242_v46 = vsel %vm2136_vm3, %v2035_v28, -inf  ;;  %v2195_v8 = vmax.f32 %v2193_v24, %v2194_v12  ;;  %v2200_v17 = vsel %vm2136_vm3, %v2017_v26, -inf  ;;  %v2207_v45 = vsel %vm2136_vm3, %v2016_v25, -inf  ;;  %v2506_v24 = vld [vmem:[%s7106_s7 + $0x28] sm:$0xff] }
 0x3db   :  { %v2224_v32 = vrot.slane %v2223_v15, 2  ;;  %v2230_v31 = vmax.f32 %v2228_v9, %v2229_v19  ;;  %v2237_v48 = vmax.f32 %v2235_v10, %v2236_v22  ;;  %v2243_v23 = vrot.slane %v2242_v46, 4 }
 0x3dc   :  { %v2196_v35 = vrot.slane %v2195_v8, 2  ;;  %v2201_v34 = vrot.slane %v2200_v17, 4  ;;  %v2208_v40 = vrot.slane %v2207_v45, 4  ;;  %v2214_v20 = vsel %vm2136_vm3, %v2018_v14, -inf }
 0x3dd   :  { %v2231_v37 = vrot.slane %v2230_v31, 2  ;;  %v2238_v5 = vrot.slane %v2237_v48, 2  ;;  %v2215_v13 = vrot.slane %v2214_v20, 4  ;;  %v2244_v44 = vmax.f32 %v2242_v46, %v2243_v23 }
 0x3de   :  { %v2202_v41 = vmax.f32 %v2200_v17, %v2201_v34  ;;  %v2209_v47 = vmax.f32 %v2207_v45, %v2208_v40  ;;  %v2197_v43 = vmax.f32 %v2195_v8, %v2196_v35  ;;  %v2225_v51 = vmax.f32 %v2223_v15, %v2224_v32 }
 0x3df   :  { %v2216_v53 = vmax.f32 %v2214_v20, %v2215_v13  ;;  %v2245_v2 = vrot.slane %v2244_v44, 2  ;;  %v2232_v11 = vmax.f32 %v2230_v31, %v2231_v37  ;;  %v2239_v4 = vmax.f32 %v2237_v48, %v2238_v5 }
 0x3e0   :  { %v2203_v57 = vrot.slane %v2202_v41, 2  ;;  %v2210_v52 = vrot.slane %v2209_v47, 2  ;;  %v2198_v42 = vrot.slane %v2197_v43, 1  ;;  %v2226_v38 = vrot.slane %v2225_v51, 1 }
 0x3e1   :  { %v2217_v49 = vrot.slane %v2216_v53, 2  ;;  %v2246_v0 = vmax.f32 %v2244_v44, %v2245_v2  ;;  %v2233_v60 = vrot.slane %v2232_v11, 1  ;;  %v2240_v27 = vrot.slane %v2239_v4, 1 }
 0x3e2   :  { %v2204_v56 = vmax.f32 %v2202_v41, %v2203_v57  ;;  %v2211_v36 = vmax.f32 %v2209_v47, %v2210_v52  ;;  %v2199_v58 = vmax.f32 %v2197_v43, %v2198_v42  ;;  %v5273_v26 = vpack.c.bf16 %v2504_v63, %v2503_v3 }
 0x3e3   :  { %v2218_v62 = vmax.f32 %v2216_v53, %v2217_v49  ;;  %v2247_v25 = vrot.slane %v2246_v0, 1  ;;  %v2227_v28 = vmax.f32 %v2225_v51, %v2226_v38  ;;  %v2234_v15 = vmax.f32 %v2232_v11, %v2233_v60 }
 0x3e4   :  { %v2205_v61 = vrot.slane %v2204_v56, 1  ;;  %v2212_v7 = vrot.slane %v2211_v36, 1  ;;  %v2459_v54 = vsel %vm1593_vm5, %v2199_v58, %v6515_v33  ;;  %v2505_v33 = vld [vmem:[%s7106_s7 + $0x20] sm:$0xff]  ;;  %5274 = vmatprep.subr.bf16.mxu1 %v5273_v26  ;;  %v2241_v14 = vmax.f32 %v2239_v4, %v2240_v27 }
 0x3e5   :  { %v2219_v30 = vrot.slane %v2218_v62, 1  ;;  %2479 = vrot.lane.b32.xlu1 %v2459_v54, %s5546_s22  ;;  %v5277_v12 = vpack.c.bf16 %v2506_v24, %v2505_v33  ;;  %5276 = vmatpush3.bf16.msra.mxu1 %v5273_v26  ;;  %v2248_v17 = vmax.f32 %v2246_v0, %v2247_v25 }
 0x3e6   :  { %v2206_v50 = vmax.f32 %v2204_v56, %v2205_v61  ;;  %v2213_v39 = vmax.f32 %v2211_v36, %v2212_v7 }
 0x3e7   :  { %v2220_v16 = vmax.f32 %v2218_v62, %v2219_v30  ;;  %5278 = vmatprep.subr.bf16.mxu1 %v5277_v12 }
 0x3e8   :  { %v2403_v9 = vsel %vm1581_vm12, %v2206_v50, %v2199_v58  ;;  %v2460_v10 = vsel %vm1581_vm12, %v2213_v39, %v2206_v50 }
 0x3e9   :  { %v2404_v19 = vsel %vm1583_vm13, %v2213_v39, %v2403_v9  ;;  %v2461_v22 = vsel %vm1583_vm13, %v2220_v16, %v2460_v10  ;;  %5280 = vmatpush3.bf16.msra.mxu1 %v5277_v12 }
 0x3ea   :  { %v2405_v46 = vsel %vm1585_vm14, %v2220_v16, %v2404_v19  ;;  %v2462_v8 = vsel %vm1585_vm14, %v2227_v28, %v2461_v22  ;;  %5071 = vmatprep.subr.mxu1 %v5545_v1 }
 0x3eb   :  { %v2406_v45 = vsel %vm1587_vm15, %v2227_v28, %v2405_v46  ;;  %v2463_v32 = vsel %vm1587_vm15, %v2234_v15, %v2462_v8 }
 0x3ec   :  { %v2407_v31 = vsel %vm1589_vm0, %v2234_v15, %v2406_v45  ;;  %v2464_v48 = vsel %vm1589_vm0, %v2241_v14, %v2463_v32 }
 0x3ed   :  { %v2408_v23 = vsel %vm1591_vm2, %v2241_v14, %v2407_v31  ;;  %v2465_v35 = vsel %vm1591_vm2, %v2248_v17, %v2464_v48 }
 0x3ee   :  { %v2434_v34 = vsel %vm1593_vm5, %v2248_v17, %v2408_v23  ;;  %2429 = vst.msk [vmem:[#allocation4 + $0x9] sm:$0x7f] %vm2428_vm9, %v2408_v23 }
 0x3ef   :  { %2438 = vrot.lane.b32.xlu0 %v2434_v34, %s5548_s24 }
 0x3f3   :  { %2481 = vrot.lane.b32.xlu0 %v2465_v35, %s5546_s22 }
 0x408   :  { %v5049_v40 = vpop.f32.mrb[4].mxu1 }
 0x409   :  { %v1934_v20 = vmul.f32 %v5049_v40, %v6480_v18  ;;  %v1903_v37 = vpop.f32.mrb[5].mxu1 }
 0x40a   :  { %v1933_v5 = vmul.f32 %v6480_v18, %v1903_v37 }
 0x40b   :  { %v1949_v13 = vadd.f32 %v6485_v29, %v1934_v20 }
 0x40c   :  { %v1948_v41 = vadd.f32 %v6485_v29, %v1933_v5 }
 0x40d   :  { %v1957_v47 = vmax.f32 %v1949_v13, 0.0 }
 0x40e   :  { %v1956_v43 = vmax.f32 %v1948_v41, 0.0 }
 0x40f   :  { %v2053_v44 = vcombine.high %v1957_v47, %v1957_v47  ;;  %v2060_v51 = vrot.slane %v1957_v47, %v5968_v55 }
 0x410   :  { %v2036_v53 = vcombine.high %v1956_v43, %v1956_v43  ;;  %v2043_v57 = vrot.slane %v1956_v43, %v5968_v55 }
 0x411   :  { %v2067_v52 = vrot.slane %v2053_v44, %v5968_v55  ;;  %v2068_v42 = vcombine.high %v2060_v51, %v2060_v51  ;;  %v2277_v2 = vsel %vm2136_vm3, %v2060_v51, -inf }
 0x412   :  { %v2278_v11 = vrot.slane %v2277_v2, 4  ;;  %v2050_v49 = vrot.slane %v2036_v53, %v5968_v55  ;;  %v2051_v56 = vcombine.high %v2043_v57, %v2043_v57  ;;  %v2249_v36 = vsel %vm2136_vm3, %v2043_v57, -inf }
 0x413   :  { %v2069_v58 = vcombine.high %v2067_v52, %v2067_v52  ;;  %v2284_v4 = vsel %vm2136_vm3, %v2068_v42, -inf  ;;  %v2291_v59 = vsel %vm2136_vm3, %v2067_v52, -inf  ;;  %v2250_v21 = vrot.slane %v2249_v36, 4 }
 0x414   :  { %v2279_v62 = vmax.f32 %v2277_v2, %v2278_v11  ;;  %v2285_v0 = vrot.slane %v2284_v4, 4  ;;  %v2292_v6 = vrot.slane %v2291_v59, 4  ;;  %v2052_v38 = vcombine.high %v2050_v49, %v2050_v49 }
 0x415   :  { %v2251_v61 = vmax.f32 %v2249_v36, %v2250_v21  ;;  %v2256_v7 = vsel %vm2136_vm3, %v2051_v56, -inf  ;;  %v2263_v54 = vsel %vm2136_vm3, %v2050_v49, -inf  ;;  %v2298_v39 = vsel %vm2136_vm3, %v2069_v58, -inf }
 0x416   :  { %v2280_v30 = vrot.slane %v2279_v62, 2  ;;  %v2286_v60 = vmax.f32 %v2284_v4, %v2285_v0  ;;  %v2293_v50 = vmax.f32 %v2291_v59, %v2292_v6  ;;  %v2257_v63 = vrot.slane %v2256_v7, 4 }
 0x417   :  { %v5052_v27 = vpop.f32.mrb[6].mxu1  ;;  %v2252_v3 = vrot.slane %v2251_v61, 2  ;;  %v2264_v33 = vrot.slane %v2263_v54, 4  ;;  %v2270_v16 = vsel %vm2136_vm3, %v2052_v38, -inf  ;;  %v2299_v34 = vrot.slane %v2298_v39, 4 }
 0x418   :  { %v1913_v25 = vpop.f32.mrb[7].mxu1  ;;  %v2281_v26 = vmax.f32 %v2279_v62, %v2280_v30  ;;  %v2287_v24 = vrot.slane %v2286_v60, 2  ;;  %v2294_v28 = vrot.slane %v2293_v50, 2  ;;  %v2271_v9 = vrot.slane %v2270_v16, 4 }
 0x419   :  { %v2253_v10 = vmax.f32 %v2251_v61, %v2252_v3  ;;  %v2258_v12 = vmax.f32 %v2256_v7, %v2257_v63  ;;  %v2265_v15 = vmax.f32 %v2263_v54, %v2264_v33  ;;  %v1936_v19 = vmul.f32 %v5052_v27, %v6480_v18 }
 0x41a   :  { %v2282_v22 = vrot.slane %v2281_v26, 1  ;;  %v2288_v14 = vmax.f32 %v2286_v60, %v2287_v24  ;;  %v2295_v46 = vmax.f32 %v2293_v50, %v2294_v28  ;;  %v2272_v8 = vmax.f32 %v2270_v16, %v2271_v9 }
 0x41b   :  { %v2259_v17 = vrot.slane %v2258_v12, 2  ;;  %v2266_v45 = vrot.slane %v2265_v15, 2  ;;  %v1951_v32 = vadd.f32 %v6485_v29, %v1936_v19  ;;  %v2254_v48 = vrot.slane %v2253_v10, 1 }
 0x41c   :  { %v2289_v31 = vrot.slane %v2288_v14, 1  ;;  %v2273_v23 = vrot.slane %v2272_v8, 2  ;;  %v1935_v35 = vmul.f32 %v6480_v18, %v1913_v25  ;;  %v6593_v5 = vmax.f32 %v2281_v26, %v2282_v22 }
 0x41d   :  { %v2260_v40 = vmax.f32 %v2258_v12, %v2259_v17  ;;  %v2267_v20 = vmax.f32 %v2265_v15, %v2266_v45  ;;  %v1959_v37 = vmax.f32 %v1951_v32, 0.0  ;;  %v2296_v47 = vrot.slane %v2295_v46, 1 }
 0x41e   :  { %v2274_v13 = vmax.f32 %v2272_v8, %v2273_v23  ;;  %v1950_v41 = vadd.f32 %v6485_v29, %v1935_v35  ;;  %v2255_v57 = vmax.f32 %v2253_v10, %v2254_v48  ;;  %v6597_v2 = vmax.f32 %v2288_v14, %v2289_v31 }
 0x41f   :  { %v2261_v43 = vrot.slane %v2260_v40, 1  ;;  %v2268_v44 = vrot.slane %v2267_v20, 1  ;;  %v2087_v51 = vcombine.high %v1959_v37, %v1959_v37  ;;  %v2094_v53 = vrot.slane %v1959_v37, %v5968_v55 }
 0x420   :  { %v2275_v52 = vrot.slane %v2274_v13, 1  ;;  %v1958_v42 = vmax.f32 %v1950_v41, 0.0  ;;  %v6600_v49 = vmax.f32 %v2295_v46, %v2296_v47  ;;  %v2300_v56 = vmax.f32 %v2298_v39, %v2299_v34 }
 0x421   :  { %v2101_v18 = vrot.slane %v2087_v51, %v5968_v55  ;;  %v2102_v11 = vcombine.high %v2094_v53, %v2094_v53  ;;  %v2262_v36 = vmax.f32 %v2260_v40, %v2261_v43  ;;  %v2333_v29 = vsel %vm2136_vm3, %v2094_v53, -inf }
 0x422   :  { %v2070_v58 = vcombine.high %v1958_v42, %v1958_v42  ;;  %v2077_v4 = vrot.slane %v1958_v42, %v5968_v55  ;;  %v2269_v59 = vmax.f32 %v2267_v20, %v2268_v44  ;;  %v2334_v62 = vrot.slane %v2333_v29, 4 }
 0x423   :  { %v2103_v21 = vcombine.high %v2101_v18, %v2101_v18  ;;  %v2340_v0 = vsel %vm2136_vm3, %v2102_v11, -inf  ;;  %v2347_v38 = vsel %vm2136_vm3, %v2101_v18, -inf  ;;  %v2276_v54 = vmax.f32 %v2274_v13, %v2275_v52 }
 0x424   :  { %v2341_v6 = vrot.slane %v2340_v0, 4  ;;  %v2084_v61 = vrot.slane %v2070_v58, %v5968_v55  ;;  %v2085_v7 = vcombine.high %v2077_v4, %v2077_v4  ;;  %v2335_v30 = vmax.f32 %v2333_v29, %v2334_v62 }
 0x425   :  { %v2348_v60 = vrot.slane %v2347_v38, 4  ;;  %v2305_v50 = vsel %vm2136_vm3, %v2077_v4, -inf  ;;  %v2354_v27 = vsel %vm2136_vm3, %v2103_v21, -inf  ;;  %v2409_v24 = vsel %vm1581_vm12, %v2262_v36, %v2255_v57 }
 0x426   :  { %v2342_v39 = vmax.f32 %v2340_v0, %v2341_v6  ;;  %v2086_v3 = vcombine.high %v2084_v61, %v2084_v61  ;;  %v2306_v63 = vrot.slane %v2305_v50, 4  ;;  %v2336_v33 = vrot.slane %v2335_v30, 2 }
 0x427   :  { %v2349_v16 = vmax.f32 %v2347_v38, %v2348_v60  ;;  %v2312_v25 = vsel %vm2136_vm3, %v2085_v7, -inf  ;;  %v2319_v26 = vsel %vm2136_vm3, %v2084_v61, -inf  ;;  %v2355_v15 = vrot.slane %v2354_v27, 4 }
 0x428   :  { %v2307_v28 = vmax.f32 %v2305_v50, %v2306_v63  ;;  %v2313_v9 = vrot.slane %v2312_v25, 4  ;;  %v2320_v10 = vrot.slane %v2319_v26, 4  ;;  %v2343_v12 = vrot.slane %v2342_v39, 2 }
 0x429   :  { %v2326_v19 = vsel %vm2136_vm3, %v2086_v3, -inf  ;;  %v2301_v22 = vrot.slane %v2300_v56, 2  ;;  %v2337_v14 = vmax.f32 %v2335_v30, %v2336_v33  ;;  %v2350_v45 = vrot.slane %v2349_v16, 2 }
 0x42a   :  { %v2308_v46 = vrot.slane %v2307_v28, 2  ;;  %v2314_v8 = vmax.f32 %v2312_v25, %v2313_v9  ;;  %v2321_v17 = vmax.f32 %v2319_v26, %v2320_v10  ;;  %v2327_v32 = vrot.slane %v2326_v19, 4 }
 0x42b   :  { %v2302_v31 = vmax.f32 %v2300_v56, %v2301_v22  ;;  %v2410_v48 = vsel %vm1583_vm13, %v2269_v59, %v2409_v24  ;;  %v2344_v20 = vmax.f32 %v2342_v39, %v2343_v12  ;;  %v2466_v42 = vsel %vm1581_vm12, %v2269_v59, %v2262_v36 }
 0x42c   :  { %v2315_v23 = vrot.slane %v2314_v8, 2  ;;  %v2322_v35 = vrot.slane %v2321_v17, 2  ;;  %v2411_v34 = vsel %vm1585_vm14, %v2276_v54, %v2410_v48  ;;  %v2309_v40 = vmax.f32 %v2307_v28, %v2308_v46 }
 0x42d   :  { %v2328_v37 = vmax.f32 %v2326_v19, %v2327_v32  ;;  %v2303_v13 = vrot.slane %v2302_v31, 1  ;;  %v2412_v41 = vsel %vm1587_vm15, %v6593_v5, %v2411_v34  ;;  %v2338_v18 = vrot.slane %v2337_v14, 1 }
 0x42e   :  { %v2316_v47 = vmax.f32 %v2314_v8, %v2315_v23  ;;  %v2323_v43 = vmax.f32 %v2321_v17, %v2322_v35  ;;  %v2413_v44 = vsel %vm1589_vm0, %v6597_v2, %v2412_v41  ;;  %v2310_v51 = vrot.slane %v2309_v40, 1  ;;  %v6669_v41 = vld [vmem:[%s7107_s8] ss:$0 sm:$0xff] }
 0x42f   :  { %v2329_v53 = vrot.slane %v2328_v37, 2  ;;  %v2304_v57 = vmax.f32 %v2302_v31, %v2303_v13  ;;  %v2414_v52 = vsel %vm1591_vm2, %v6600_v49, %v2413_v44  ;;  %v2467_v29 = vsel %vm1583_vm13, %v2276_v54, %v2466_v42  ;;  %v6662_v13 = vld [vmem:[%s7109_s10] sm:$0xff] }
 0x430   :  { %v2317_v11 = vrot.slane %v2316_v47, 1  ;;  %v2324_v56 = vrot.slane %v2323_v43, 1  ;;  %v2311_v21 = vmax.f32 %v2309_v40, %v2310_v51  ;;  %v2468_v62 = vsel %vm1585_vm14, %v6593_v5, %v2467_v29 }
 0x431   :  { %v2330_v58 = vmax.f32 %v2328_v37, %v2329_v53  ;;  %v2415_v4 = vsel %vm1593_vm5, %v2304_v57, %v2414_v52  ;;  %v2469_v38 = vsel %vm1587_vm15, %v6597_v2, %v2468_v62  ;;  %v2351_v36 = vmax.f32 %v2349_v16, %v2350_v45 }
 0x432   :  { %v2318_v0 = vmax.f32 %v2316_v47, %v2317_v11  ;;  %v2325_v6 = vmax.f32 %v2323_v43, %v2324_v56  ;;  %2440 = vrot.lane.b32.xlu1 %v2415_v4, %s5548_s24  ;;  %2430 = vst.msk [vmem:[#allocation4 + $0x11] sm:$0xff] %vm2426_vm4, %v2415_v4  ;;  %v2470_v61 = vsel %vm1589_vm0, %v6600_v49, %v2469_v38  ;;  %v2345_v7 = vrot.slane %v2344_v20, 1  ;;  %v6674_v43 = vld [vmem:[%s7108_s9] ss:$0 sm:$0xff] }
 0x433   :  { %v2331_v59 = vrot.slane %v2330_v58, 1  ;;  %v2356_v54 = vmax.f32 %v2354_v27, %v2355_v15  ;;  %v2471_v30 = vsel %vm1591_vm2, %v2304_v57, %v2470_v61  ;;  %v2352_v60 = vrot.slane %v2351_v36, 1 }
 0x434   :  { %v2416_v5 = vsel %vm1581_vm12, %v2318_v0, %v2311_v21  ;;  %v2473_v50 = vsel %vm1581_vm12, %v2325_v6, %v2318_v0  ;;  %v2472_v39 = vsel %vm1593_vm5, %v2311_v21, %v2471_v30  ;;  %v2339_v33 = vmax.f32 %v2337_v14, %v2338_v18 }
 0x435   :  { %v2332_v3 = vmax.f32 %v2330_v58, %v2331_v59  ;;  %v2357_v2 = vrot.slane %v2356_v54, 2  ;;  %v2417_v63 = vsel %vm1583_vm13, %v2325_v6, %v2416_v5  ;;  %v2346_v16 = vmax.f32 %v2344_v20, %v2345_v7 }
 0x436   :  { %2483 = vrot.lane.b32.xlu1 %v2472_v39, %s5546_s22  ;;  %v2353_v26 = vmax.f32 %v2351_v36, %v2352_v60 }
 0x437   :  { %v2358_v49 = vmax.f32 %v2356_v54, %v2357_v2  ;;  %v2418_v27 = vsel %vm1585_vm14, %v2332_v3, %v2417_v63  ;;  %v2474_v25 = vsel %vm1583_vm13, %v2332_v3, %v2473_v50 }
 0x438   :  { %v2419_v24 = vsel %vm1587_vm15, %v2339_v33, %v2418_v27  ;;  %v2475_v28 = vsel %vm1585_vm14, %v2339_v33, %v2474_v25 }
 0x439   :  { %v2359_v9 = vrot.slane %v2358_v49, 1  ;;  %v2420_v10 = vsel %vm1589_vm0, %v2346_v16, %v2419_v24  ;;  %v2476_v12 = vsel %vm1587_vm15, %v2346_v16, %v2475_v28 }
 0x43a   :  { %v2421_v15 = vsel %vm1591_vm2, %v2353_v26, %v2420_v10  ;;  %v2477_v19 = vsel %vm1589_vm0, %v2353_v26, %v2476_v12 }
 0x43b   :  { %v2360_v22 = vmax.f32 %v2358_v49, %v2359_v9  ;;  %2431 = vst.msk [vmem:[#allocation4 + $0x19] sm:$0x7f] %vm2428_vm9, %v2421_v15 }
 0x43c   :  { %v2437_v14 = vpop.permute.xlu1 %2436 }
 0x43d   :  { %v2435_v46 = vsel %vm1593_vm5, %v2360_v22, %v2421_v15  ;;  %v2478_v8 = vsel %vm1591_vm2, %v2360_v22, %v2477_v19  ;;  %2449 = vst.msk [vmem:[#allocation4] sm:$0xff] %vm2448_vm10, %v2437_v14 }
 0x43e   :  { %2442 = vrot.lane.b32.xlu0 %v2435_v46, %s5548_s24 }
 0x442   :  { %2485 = vrot.lane.b32.xlu0 %v2478_v8, %s5546_s22 }
 0x457   :  { %v2480_v17 = vpop.permute.xlu1 %2479 }
 0x458   :  { %2492 = vst.msk [vmem:[#allocation4] sm:$0xff] %vm2491_vm6, %v2480_v17 }
 0x45f   :  { %v2497_v45 = vld [vmem:[#allocation4] sm:$0xff] }
 0x460   :  { %5065 = vmatprep.mubr.msk.f32.mxu1 %vm2361_vm8, %v2497_v45 }
 0x461   :  { %v2439_v32 = vpop.permute.xlu0 %2438 }
 0x462   :  { %2450 = vst.msk [vmem:[#allocation4 + $0x8] sm:$0xff] %vm2448_vm10, %v2439_v32 }
 0x465   :  { %v2482_v31 = vpop.permute.xlu0 %2481 }
 0x466   :  { %2494 = vst.msk [vmem:[#allocation4 + $0x8] sm:$0x7f] %vm2493_vm7, %v2482_v31 }
 0x46d   :  { %v2498_v48 = vld [vmem:[#allocation4 + $0x8] sm:$0xff] }
 0x46e   :  { %5066 = vmatmul.mubr.msk.f32.vlgmr.msra.gmra.mrb[8].mxu1 %vm2361_vm8, %v2498_v48 }
 0x46f   :  { %5072 = vmatpush3.msra.mxu1 %v6662_v13 }
 0x470   :  { %5076 = vmatprep.subr.mxu1 %v5545_v1 }
 0x4a4   :  { %v2441_v23 = vpop.permute.xlu1 %2440 }
 0x4a5   :  { %2451 = vst.msk [vmem:[#allocation4 + $0x10] sm:$0xff] %vm2448_vm10, %v2441_v23 }
 0x4a8   :  { %v2484_v35 = vpop.permute.xlu1 %2483 }
 0x4a9   :  { %2495 = vst.msk [vmem:[#allocation4 + $0x10] sm:$0xff] %vm2491_vm6, %v2484_v35 }
 0x4b0   :  { %v2443_v34 = vpop.permute.xlu0 %2442  ;;  %v2499_v40 = vld [vmem:[#allocation4 + $0x10] sm:$0xff] }
 0x4b1   :  { %2452 = vst.msk [vmem:[#allocation4 + $0x18] sm:$0xff] %vm2448_vm10, %v2443_v34  ;;  %5068 = vmatprep.mubr.msk.f32.mxu1 %vm2361_vm8, %v2499_v40 }
 0x4b4   :  { %v2486_v20 = vpop.permute.xlu0 %2485 }
 0x4b5   :  { %2496 = vst.msk [vmem:[#allocation4 + $0x18] sm:$0x7f] %vm2493_vm7, %v2486_v20 }
 0x4bc   :  { %v2500_v37 = vld [vmem:[#allocation4 + $0x18] sm:$0xff] }
 0x4bd   :  { %5069 = vmatmul.mubr.msk.f32.gmra.mrb[10].mxu1 %vm2361_vm8, %v2500_v37  ;;  %vm5551_vm8 = vmmov 0  }
 0x4be   :  { %5073 = vmatprep.mubr.msk.f32.mxu1 %vm5551_vm8, %v5545_v1  ;;  %5089 = vmatprep.mubr.msk.f32.mxu0 %vm5551_vm8, %v5545_v1 }
 0x541   :  { %v5067_v47 = vpop.f32.mrb[8].mxu1 }
 0x542   :  { %v2612_v44 = vmul.f32 %v5067_v47, %v6669_v41  ;;  %v2585_v51 = vpop.f32.mrb[9].mxu1 }
 0x543   :  { %v2611_v53 = vmul.f32 %v6669_v41, %v2585_v51 }
 0x544   :  { %v2623_v57 = vadd.f32 %v6674_v43, %v2612_v44 }
 0x545   :  { %v2622_v52 = vadd.f32 %v6674_v43, %v2611_v53 }
 0x546   :  { %v2627_v42 = vmax.f32 %v2623_v57, 0.0 }
 0x547   :  { %v2626_v18 = vmax.f32 %v2622_v52, 0.0 }
 0x548   :  { %v2651_v11 = vcombine.high %v2627_v42, %v2627_v42  ;;  %v2658_v56 = vrot.slane %v2627_v42, %v5968_v55 }
 0x549   :  { %v2634_v29 = vcombine.high %v2626_v18, %v2626_v18  ;;  %v2641_v58 = vrot.slane %v2626_v18, %v5968_v55 }
 0x54a   :  { %v2665_v4 = vrot.slane %v2651_v11, %v5968_v55  ;;  %v2666_v21 = vcombine.high %v2658_v56, %v2658_v56  ;;  %v2746_v62 = vsel %vm1061_vm11, %v2658_v56, -inf }
 0x54b   :  { %v2747_v0 = vrot.slane %v2746_v62, 4  ;;  %v2648_v6 = vrot.slane %v2634_v29, %v5968_v55  ;;  %v2649_v38 = vcombine.high %v2641_v58, %v2641_v58  ;;  %v2718_v36 = vsel %vm1061_vm11, %v2641_v58, -inf }
 0x54c   :  { %v2667_v59 = vcombine.high %v2665_v4, %v2665_v4  ;;  %v2753_v61 = vsel %vm1061_vm11, %v2666_v21, -inf  ;;  %v2760_v7 = vsel %vm1061_vm11, %v2665_v4, -inf  ;;  %v2719_v54 = vrot.slane %v2718_v36, 4 }
 0x54d   :  { %v2748_v30 = vmax.f32 %v2746_v62, %v2747_v0  ;;  %v2754_v5 = vrot.slane %v2753_v61, 4  ;;  %v2761_v60 = vrot.slane %v2760_v7, 4  ;;  %v2650_v50 = vcombine.high %v2648_v6, %v2648_v6 }
 0x54e   :  { %v2767_v39 = vsel %vm1061_vm11, %v2667_v59, -inf  ;;  %v2720_v3 = vmax.f32 %v2718_v36, %v2719_v54  ;;  %v2725_v2 = vsel %vm1061_vm11, %v2649_v38, -inf  ;;  %v2732_v63 = vsel %vm1061_vm11, %v2648_v6, -inf  ;;  %v3093_v54 = vld [vmem:[%s7110_s11] sm:$0xff] }
 0x54f   :  { %v2755_v33 = vmax.f32 %v2753_v61, %v2754_v5  ;;  %v2762_v16 = vmax.f32 %v2760_v7, %v2761_v60  ;;  %v2768_v49 = vrot.slane %v2767_v39, 4  ;;  %v2726_v25 = vrot.slane %v2725_v2, 4  ;;  %v3095_v5 = vld [vmem:[%s7110_s11 + $0x10] sm:$0xff] }
 0x550   :  { %v2721_v27 = vrot.slane %v2720_v3, 2  ;;  %v2733_v26 = vrot.slane %v2732_v63, 4  ;;  %v2739_v24 = vsel %vm1061_vm11, %v2650_v50, -inf  ;;  %v2749_v28 = vrot.slane %v2748_v30, 2 }
 0x551   :  { %v2756_v9 = vrot.slane %v2755_v33, 2  ;;  %v2740_v10 = vrot.slane %v2739_v24, 4  ;;  %v2727_v15 = vmax.f32 %v2725_v2, %v2726_v25  ;;  %v2769_v22 = vmax.f32 %v2767_v39, %v2768_v49  ;;  %v3096_v39 = vld [vmem:[%s7110_s11 + $0x18] sm:$0xff] }
 0x552   :  { %v2722_v12 = vmax.f32 %v2720_v3, %v2721_v27  ;;  %v2734_v19 = vmax.f32 %v2732_v63, %v2733_v26  ;;  %v2763_v14 = vrot.slane %v2762_v16, 2  ;;  %v2750_v32 = vmax.f32 %v2748_v30, %v2749_v28  ;;  %v3094_v30 = vld [vmem:[%s7110_s11 + $0x8] sm:$0xff] }
 0x553   :  { %v2741_v46 = vmax.f32 %v2739_v24, %v2740_v10  ;;  %v2728_v8 = vrot.slane %v2727_v15, 2  ;;  %v2770_v45 = vrot.slane %v2769_v22, 2  ;;  %v2757_v48 = vmax.f32 %v2755_v33, %v2756_v9 }
 0x554   :  { %v2735_v17 = vrot.slane %v2734_v19, 2  ;;  %v2723_v23 = vrot.slane %v2722_v12, 1  ;;  %v2764_v20 = vmax.f32 %v2762_v16, %v2763_v14  ;;  %v2751_v51 = vrot.slane %v2750_v32, 1 }
 0x555   :  { %v2742_v31 = vrot.slane %v2741_v46, 2  ;;  %v2729_v35 = vmax.f32 %v2727_v15, %v2728_v8  ;;  %v2771_v44 = vmax.f32 %v2769_v22, %v2770_v45  ;;  %v2758_v18 = vrot.slane %v2757_v48, 1 }
 0x556   :  { %v2736_v34 = vmax.f32 %v2734_v19, %v2735_v17  ;;  %v2724_v57 = vmax.f32 %v2722_v12, %v2723_v23  ;;  %v2765_v56 = vrot.slane %v2764_v20, 1  ;;  %v2752_v4 = vmax.f32 %v2750_v32, %v2751_v51 }
 0x557   :  { %v2743_v40 = vmax.f32 %v2741_v46, %v2742_v31  ;;  %v2730_v37 = vrot.slane %v2729_v35, 1  ;;  %v2772_v29 = vrot.slane %v2771_v44, 1  ;;  %v2759_v62 = vmax.f32 %v2757_v48, %v2758_v18 }
 0x558   :  { %v2737_v47 = vrot.slane %v2736_v34, 1  ;;  %v2766_v6 = vmax.f32 %v2764_v20, %v2765_v56  ;;  %v5552_v60 = vmov 0.0|0.0   ;;  %v6713_v50 = vpack.c.bf16 %v3094_v30, %v3093_v54 }
 0x559   :  { %v2744_v53 = vrot.slane %v2743_v40, 1  ;;  %v2731_v52 = vmax.f32 %v2729_v35, %v2730_v37  ;;  %v2773_v36 = vmax.f32 %v2771_v44, %v2772_v29  ;;  %5281 = vmatprep.subr.bf16.mxu0 %v5552_v60  ;;  %v6719_v3 = vpack.c.bf16 %v3096_v39, %v3095_v5 }
 0x55a   :  { %v2738_v42 = vmax.f32 %v2736_v34, %v2737_v47  ;;  %5283 = vmatpush3.bf16.msra.mxu0 %v6713_v50 }
 0x55b   :  { %v2745_v11 = vmax.f32 %v2743_v40, %v2744_v53  ;;  %v2838_v58 = vsel %vm1581_vm12, %v2731_v52, %v2724_v57  ;;  %5284 = vmatprep.subr.bf16.mxu0 %v5552_v60 }
 0x55c   :  { %v2839_v21 = vsel %vm1583_vm13, %v2738_v42, %v2838_v58 }
 0x55d   :  { %v2840_v0 = vsel %vm1585_vm14, %v2745_v11, %v2839_v21 }
 0x55e   :  { %v2841_v38 = vsel %vm1587_vm15, %v2752_v4, %v2840_v0  ;;  %5286 = vmatpush3.bf16.msra.mxu0 %v6719_v3 }
 0x55f   :  { %v2842_v59 = vsel %vm1589_vm0, %v2759_v62, %v2841_v38  ;;  %5293 = vmatprep.subr.bf16.mxu0 %v5552_v60 }
 0x560   :  { %v2843_v61 = vsel %vm1591_vm2, %v2766_v6, %v2842_v59 }
 0x561   :  { %v2844_v7 = vsel %vm1593_vm5, %v2773_v36, %v2843_v61  ;;  %5090 = vmatmul.mubr.f32.vlgmr.msra.gmra.mrb[16].mxu0 %v5545_v1 }
 0x562   :  { %2846 = vxpose.xlu1.b32.start.end [1/1] (short) (narrow) %v2844_v7, 8  ;;  %5111 = vmatprep.mubr.msk.f32.mxu0 %vm5551_vm8, %v5545_v1 }
 0x590   :  { %v5070_v2 = vpop.f32.mrb[10].mxu1 }
 0x591   :  { %v2614_v63 = vmul.f32 %v5070_v2, %v6669_v41  ;;  %v2595_v33 = vpop.f32.mrb[11].mxu1 }
 0x592   :  { %v2613_v16 = vmul.f32 %v6669_v41, %v2595_v33 }
 0x593   :  { %v2625_v49 = vadd.f32 %v6674_v43, %v2614_v63 }
 0x594   :  { %v2624_v27 = vadd.f32 %v6674_v43, %v2613_v16 }
 0x595   :  { %v2629_v25 = vmax.f32 %v2625_v49, 0.0 }
 0x596   :  { %v2628_v26 = vmax.f32 %v2624_v27, 0.0 }
 0x597   :  { %v2685_v24 = vcombine.high %v2629_v25, %v2629_v25  ;;  %v2692_v28 = vrot.slane %v2629_v25, %v5968_v55 }
 0x598   :  { %v2668_v9 = vcombine.high %v2628_v26, %v2628_v26  ;;  %v2675_v10 = vrot.slane %v2628_v26, %v5968_v55 }
 0x599   :  { %v2699_v12 = vrot.slane %v2685_v24, %v5968_v55  ;;  %v2700_v15 = vcombine.high %v2692_v28, %v2692_v28  ;;  %v2802_v19 = vsel %vm1061_vm11, %v2692_v28, -inf }
 0x59a   :  { %v2803_v22 = vrot.slane %v2802_v19, 4  ;;  %v2682_v41 = vrot.slane %v2668_v9, %v5968_v55  ;;  %v2683_v14 = vcombine.high %v2675_v10, %v2675_v10  ;;  %v2774_v46 = vsel %vm1061_vm11, %v2675_v10, -inf }
 0x59b   :  { %v2701_v43 = vcombine.high %v2699_v12, %v2699_v12  ;;  %v2809_v8 = vsel %vm1061_vm11, %v2700_v15, -inf  ;;  %v2816_v17 = vsel %vm1061_vm11, %v2699_v12, -inf  ;;  %v2775_v45 = vrot.slane %v2774_v46, 4 }
 0x59c   :  { %v2804_v32 = vmax.f32 %v2802_v19, %v2803_v22  ;;  %v2810_v31 = vrot.slane %v2809_v8, 4  ;;  %v2817_v48 = vrot.slane %v2816_v17, 4  ;;  %v2684_v23 = vcombine.high %v2682_v41, %v2682_v41 }
 0x59d   :  { %v2823_v35 = vsel %vm1061_vm11, %v2701_v43, -inf  ;;  %v2776_v34 = vmax.f32 %v2774_v46, %v2775_v45  ;;  %v2781_v40 = vsel %vm1061_vm11, %v2683_v14, -inf  ;;  %v2788_v55 = vsel %vm1061_vm11, %v2682_v41, -inf }
 0x59e   :  { %v2811_v20 = vmax.f32 %v2809_v8, %v2810_v31  ;;  %v2818_v37 = vmax.f32 %v2816_v17, %v2817_v48  ;;  %v2824_v47 = vrot.slane %v2823_v35, 4  ;;  %v2782_v51 = vrot.slane %v2781_v40, 4  ;;  %v4839_v48 = vld [vmem:[%s7111_s12] ss:$0 sm:$0xff] }
 0x59f   :  { %v2777_v44 = vrot.slane %v2776_v34, 2  ;;  %v2789_v53 = vrot.slane %v2788_v55, 4  ;;  %v2795_v57 = vsel %vm1061_vm11, %v2684_v23, -inf  ;;  %v2805_v52 = vrot.slane %v2804_v32, 2 }
 0x5a0   :  { %v2812_v42 = vrot.slane %v2811_v20, 2  ;;  %v2796_v18 = vrot.slane %v2795_v57, 4  ;;  %v2783_v56 = vmax.f32 %v2781_v40, %v2782_v51  ;;  %v2825_v58 = vmax.f32 %v2823_v35, %v2824_v47 }
 0x5a1   :  { %v2778_v11 = vmax.f32 %v2776_v34, %v2777_v44  ;;  %v2790_v29 = vmax.f32 %v2788_v55, %v2789_v53  ;;  %v2819_v4 = vrot.slane %v2818_v37, 2  ;;  %v2806_v38 = vmax.f32 %v2804_v32, %v2805_v52 }
 0x5a2   :  { %v2797_v21 = vmax.f32 %v2795_v57, %v2796_v18  ;;  %v2784_v62 = vrot.slane %v2783_v56, 2  ;;  %v2826_v6 = vrot.slane %v2825_v58, 2  ;;  %v2813_v59 = vmax.f32 %v2811_v20, %v2812_v42 }
 0x5a3   :  { %v2791_v0 = vrot.slane %v2790_v29, 2  ;;  %v2779_v61 = vrot.slane %v2778_v11, 1  ;;  %v2820_v5 = vmax.f32 %v2818_v37, %v2819_v4  ;;  %v2807_v33 = vrot.slane %v2806_v38, 1 }
 0x5a4   :  { %v2798_v36 = vrot.slane %v2797_v21, 2  ;;  %v2785_v7 = vmax.f32 %v2783_v56, %v2784_v62  ;;  %v2827_v63 = vmax.f32 %v2825_v58, %v2826_v6  ;;  %v2814_v26 = vrot.slane %v2813_v59, 1 }
 0x5a5   :  { %v2792_v54 = vmax.f32 %v2790_v29, %v2791_v0  ;;  %v2780_v49 = vmax.f32 %v2778_v11, %v2779_v61  ;;  %v2821_v28 = vrot.slane %v2820_v5, 1  ;;  %v2808_v12 = vmax.f32 %v2806_v38, %v2807_v33 }
 0x5a6   :  { %v2799_v30 = vmax.f32 %v2797_v21, %v2798_v36  ;;  %v2786_v39 = vrot.slane %v2785_v7, 1  ;;  %v2828_v9 = vrot.slane %v2827_v63, 1  ;;  %v2815_v19 = vmax.f32 %v2813_v59, %v2814_v26  ;;  %v3226_v26 = vld [vmem:[%s7112_s13 + $0x8] sm:$0xff] }
 0x5a7   :  { %v2793_v2 = vrot.slane %v2792_v54, 1  ;;  %v2822_v41 = vmax.f32 %v2820_v5, %v2821_v28  ;;  %v3227_v28 = vld [vmem:[%s7112_s13 + $0x10] sm:$0xff]  ;;  %vm4777_vm11 = vcmask 25600  }
 0x5a8   :  { %v2800_v16 = vrot.slane %v2799_v30, 1  ;;  %v2787_v27 = vmax.f32 %v2785_v7, %v2786_v39  ;;  %v2829_v46 = vmax.f32 %v2827_v63, %v2828_v9  ;;  %v3228_v9 = vld [vmem:[%s7112_s13 + $0x18] sm:$0xff] }
 0x5a9   :  { %v2794_v25 = vmax.f32 %v2792_v54, %v2793_v2 }
 0x5aa   :  { %v2801_v24 = vmax.f32 %v2799_v30, %v2800_v16  ;;  %v2968_v10 = vsel %vm1581_vm12, %v2787_v27, %v2780_v49 }
 0x5ab   :  { %v2969_v15 = vsel %vm1583_vm13, %v2794_v25, %v2968_v10  ;;  %v3225_v25 = vld [vmem:[%s7112_s13] sm:$0xff] }
 0x5ac   :  { %v2970_v22 = vsel %vm1585_vm14, %v2801_v24, %v2969_v15  ;;  %v5300_v24 = vpack.c.bf16 %v3226_v26, %v3225_v25 }
 0x5ad   :  { %v2971_v14 = vsel %vm1587_vm15, %v2808_v12, %v2970_v22  ;;  %v5303_v12 = vpack.c.bf16 %v3228_v9, %v3227_v28 }
 0x5ae   :  { %v2972_v43 = vsel %vm1589_vm0, %v2815_v19, %v2971_v14 }
 0x5af   :  { %v2973_v8 = vsel %vm1591_vm2, %v2822_v41, %v2972_v43 }
 0x5b0   :  { %v2974_v17 = vsel %vm1593_vm5, %v2829_v46, %v2973_v8 }
 0x5b1   :  { %2976 = vxpose.xlu0.b32.start.end [1/1] (short) (narrow) %v2974_v17, 8 }
 0x5e2   :  { %v2862_v45 = vpop.trf.xlu1 }
 0x5e3   :  { %5074 = vmatmul.mubr.msk.f32.vlgmr.msra.gmra.mrb[12].mxu1 %vm135_vm1, %v2862_v45 }
 0x5e4   :  { %5077 = vmatpush3.msra.mxu1 %v6662_v13  ;;  %5078 = vmatprep.mubr.msk.f32.mxu1 %vm5551_vm8, %v5545_v1 }
 0x5e5   :  { %5287 = vmatprep.subr.bf16.mxu1 %v5552_v60 }
 0x631   :  { %v2992_v32 = vpop.trf.xlu0 }
 0x632   :  { %5079 = vmatmul.mubr.msk.f32.vlgmr.msra.gmra.mrb[14].mxu1 %vm135_vm1, %v2992_v32  ;;  %vm3097_vm1 = vcmask 261120  }
 0x633   :  { %5289 = vmatpush3.bf16.msra.mxu1 %v6713_v50  ;;  %5100 = vmatprep.mubr.msk.f32.mxu1 %vm5551_vm8, %v5545_v1 }
 0x634   :  { %5290 = vmatprep.subr.bf16.mxu1 %v5552_v60  ;;  %v3167_v13 = vpop.f32.mrb[16].mxu0 }
 0x635   :  { %v5091_v31 = vpop.f32.mrb[17].mxu0  ;;  %v3172_v51 = vrot.slane %v3167_v13, 1 }
 0x637   :  { %5292 = vmatpush3.bf16.msra.mxu1 %v6719_v3 }
 0x638   :  { %5299 = vmatprep.subr.bf16.mxu1 %v5552_v60 }
 0x6b6   :  { %v2955_v23 = vpop.f32.mrb[12].mxu1 }
 0x6b7   :  { %v2956_v35 = vadd.f32 %v4839_v48, %v2955_v23  ;;  %v5075_v34 = vpop.f32.mrb[13].mxu1 }
 0x6b9   :  { %2959 = vst [vmem:[#allocation5] sm:$0xff] %v2956_v35 }
 0x6c0   :  { %v3091_v40 = vld [vmem:[#allocation5] sm:$0x1]  ;;  %v3229_v15 = vld [vmem:[#allocation5 + $0x1] sm:$0x1] }
 0x6c1   :  { %v3175_v55 = vadd.f32 %v3167_v13, %v3091_v40 }
 0x6c3   :  { %5387 = vtanh.f32 %v3175_v55  ;;  %v4843_v42 = vmul.f32 -1.442695, %v3175_v55 }
 0x6cd   :  { %v5388_v20 = vpop.eup %5387 }
 0x6ce   :  { %3195 = vrot.lane.b32.xlu1 %v5388_v20, %s5553_s1 }
 0x705   :  { %v3085_v37 = vpop.f32.mrb[14].mxu1 }
 0x706   :  { %v3086_v47 = vadd.f32 %v4839_v48, %v3085_v37  ;;  %v5080_v44 = vpop.f32.mrb[15].mxu1 }
 0x708   :  { %3090 = vst [vmem:[#allocation5 + $0x8] sm:$0xff] %v3086_v47 }
 0x70f   :  { %v3092_v53 = vld [vmem:[#allocation5 + $0x8] sm:$0x1]  ;;  %v3230_v46 = vld [vmem:[#allocation5 + $0x9] sm:$0x1] }
 0x710   :  { %v3176_v57 = vadd.f32 %v3172_v51, %v3092_v53 }
 0x712   :  { %5389 = vtanh.f32 %v3176_v57  ;;  %v4844_v4 = vmul.f32 -1.442695, %v3176_v57 }
 0x713   :  { %5391 = vpow2.f32 %v4843_v42 }
 0x71c   :  { %v5390_v52 = vpop.eup %5389 }
 0x71d   :  { %3197 = vrot.lane.b32.xlu0 %v5390_v52, %s5553_s1  ;;  %v5392_v18 = vpop.eup %5391 }
 0x71e   :  { %v3183_v11 = vadd.f32 1.0, %v5392_v18 }
 0x720   :  { %5393 = vrcp.f32 %v3183_v11  ;;  %v3363_v11 = vld [vmem:[%s7112_s13 + $0x20] sm:$0xff] }
 0x721   :  { %5395 = vpow2.f32 %v4844_v4  ;;  %v3366_v4 = vld [vmem:[%s7112_s13 + $0x38] sm:$0xff] }
 0x72a   :  { %v5394_v56 = vpop.eup %5393 }
 0x72b   :  { %v5396_v21 = vpop.eup %5395  ;;  %v3191_v36 = vmul.f32 0.0, %v5394_v56 }
 0x72c   :  { %v3184_v62 = vadd.f32 1.0, %v5396_v21 }
 0x72e   :  { %5397 = vrcp.f32 %v3184_v62 }
 0x738   :  { %v5398_v0 = vpop.eup %5397 }
 0x739   :  { %v3192_v54 = vmul.f32 0.0, %v5398_v0 }
 0x740   :  { %v3196_v29 = vpop.permute.xlu1 %3195 }
 0x741   :  { %v3201_v58 = vmul.f32 %v5394_v56, %v3196_v29  ;;  %v3365_v29 = vld [vmem:[%s7112_s13 + $0x30] sm:$0xff] }
 0x742   :  { %v5297_v21 = vpack.c.bf16 %v3366_v4, %v3365_v29 }
 0x743   :  { %3205 = vrot.lane.b32.xlu0 %v3201_v58, %s5546_s22 }
 0x78f   :  { %v3198_v6 = vpop.permute.xlu0 %3197 }
 0x790   :  { %v3202_v38 = vmul.f32 %v5398_v0, %v3198_v6 }
 0x792   :  { %3207 = vrot.lane.b32.xlu1 %v3202_v38, %s5546_s22 }
 0x7b5   :  { %v3206_v59 = vpop.permute.xlu0 %3205 }
 0x7b6   :  { %v6769_v61 = vadd.f32 %v3206_v59, %v3191_v36 }
 0x7b8   :  { %5399 = vtanh.f32 %v6769_v61 }
 0x7c2   :  { %v5400_v7 = vpop.eup %5399 }
 0x7c3   :  { %3217 = vrot.lane.b32.xlu0 %v5400_v7, %s5553_s1 }
 0x804   :  { %v3208_v30 = vpop.permute.xlu1 %3207 }
 0x805   :  { %v6773_v5 = vadd.f32 %v3208_v30, %v3192_v54 }
 0x807   :  { %5401 = vtanh.f32 %v6773_v5 }
 0x811   :  { %v5402_v39 = vpop.eup %5401 }
 0x812   :  { %3219 = vrot.lane.b32.xlu1 %v5402_v39, %s5553_s1 }
 0x835   :  { %v3218_v2 = vpop.permute.xlu0 %3217 }
 0x836   :  { %v3223_v16 = vmul.f32 %v5394_v56, %v3218_v2  ;;  %v3364_v56 = vld [vmem:[%s7112_s13 + $0x28] sm:$0xff]  ;;  %v3515_v2 = vld [vmem:[#allocation5 + $0x2] sm:$0x1] }
 0x837   :  { %v5294_v58 = vpack.c.bf16 %v3364_v56, %v3363_v11  ;;  %v3724_v56 = vld [vmem:[#allocation5 + $0x3] sm:$0x1] }
 0x839   :  { %5295 = vmatpush3.bf16.msra.mxu0 %v5294_v58 }
 0x83a   :  { %5296 = vmatprep.subr.bf16.mxu0 %v5552_v60 }
 0x83d   :  { %5298 = vmatpush3.bf16.msra.mxu0 %v5297_v21 }
 0x83e   :  { %5305 = vmatprep.subr.bf16.mxu0 %v5552_v60 }
 0x884   :  { %v3220_v63 = vpop.permute.xlu1 %3219 }
 0x885   :  { %v3224_v33 = vmul.f32 %v5398_v0, %v3220_v63 }
 0x887   :  { %v3233_v49 = vrot.slane %v3224_v33, 7 }
 0x889   :  { %v3234_v27 = vsel %vm1581_vm12, %v3233_v49, %v3223_v16 }
 0x88a   :  { %3235 = vrot.lane.b32.xlu1 %v3234_v27, %s5546_s22  ;;  %v3516_v27 = vld [vmem:[#allocation5 + $0xa] sm:$0x1] }
 0x8fc   :  { %v3236_v10 = vpop.permute.xlu1 %3235 }
 0x8fd   :  { %5101 = vmatmul.mubr.msk.f32.vlgmr.msra.gmra.mrb[16].mxu1 %vm3097_vm1, %v3236_v10 }
 0x8fe   :  { %5301 = vmatpush3.bf16.msra.mxu1 %v5300_v24  ;;  %5122 = vmatprep.mubr.msk.f32.mxu1 %vm5551_vm8, %v5545_v1 }
 0x8ff   :  { %5302 = vmatprep.subr.bf16.mxu1 %v5552_v60 }
 0x902   :  { %5304 = vmatpush3.bf16.msra.mxu1 %v5303_v12 }
 0x903   :  { %5311 = vmatprep.subr.bf16.mxu1 %v5552_v60 }
 0x905   :  { %5123 = vmatmul.mubr.msk.f32.vlgmr.msra.gmra.mrb[18].mxu1 %vm3097_vm1, %v3236_v10 }
 0x906   :  { %5144 = vmatprep.mubr.msk.f32.mxu1 %vm5551_vm8, %v5545_v1 }
 0x9d0   :  { %v3305_v19 = vpop.f32.mrb[16].mxu1 }
 0x9d1   :  { %v3310_v22 = vrot.slane %v3305_v19, 1  ;;  %v3313_v41 = vadd.f32 %v3305_v19, %v3229_v15  ;;  %v5102_v14 = vpop.f32.mrb[17].mxu1 }
 0x9d3   :  { %v3314_v43 = vadd.f32 %v3310_v22, %v3230_v46  ;;  %5403 = vtanh.f32 %v3313_v41  ;;  %v4846_v13 = vmul.f32 -1.442695, %v3313_v41 }
 0x9d5   :  { %5405 = vtanh.f32 %v3314_v43  ;;  %v4847_v31 = vmul.f32 -1.442695, %v3314_v43 }
 0x9d6   :  { %5407 = vpow2.f32 %v4846_v13 }
 0x9d7   :  { %5409 = vpow2.f32 %v4847_v31 }
 0x9d8   :  { %v6799_v8 = vpop.f32.mrb[18].mxu1 }
 0x9d9   :  { %v5124_v17 = vpop.f32.mrb[19].mxu1 }
 0x9dd   :  { %v5404_v45 = vpop.eup %5403 }
 0x9de   :  { %3333 = vrot.lane.b32.xlu1 %v5404_v45, %s5553_s1 }
 0x9df   :  { %v5406_v32 = vpop.eup %5405 }
 0x9e0   :  { %3335 = vrot.lane.b32.xlu0 %v5406_v32, %s5553_s1  ;;  %v5408_v48 = vpop.eup %5407 }
 0x9e1   :  { %v5410_v23 = vpop.eup %5409  ;;  %v3321_v35 = vadd.f32 1.0, %v5408_v48 }
 0x9e2   :  { %v3322_v34 = vadd.f32 1.0, %v5410_v23  ;;  %v3641_v23 = vld [vmem:[%s7112_s13 + $0x40] sm:$0xff] }
 0x9e3   :  { %5411 = vrcp.f32 %v3321_v35  ;;  %v3642_v35 = vld [vmem:[%s7112_s13 + $0x48] sm:$0xff] }
 0x9e4   :  { %5413 = vrcp.f32 %v3322_v34  ;;  %v3643_v34 = vld [vmem:[%s7112_s13 + $0x50] sm:$0xff] }
 0x9ed   :  { %v5412_v40 = vpop.eup %5411 }
 0x9ee   :  { %v5414_v37 = vpop.eup %5413  ;;  %v3329_v51 = vmul.f32 %v5412_v40, %v6769_v61 }
 0x9ef   :  { %v3330_v52 = vmul.f32 %v5414_v37, %v6773_v5 }
 0xa50   :  { %v3334_v55 = vpop.permute.xlu1 %3333 }
 0xa51   :  { %v3339_v20 = vmul.f32 %v5412_v40, %v3334_v55  ;;  %v3644_v55 = vld [vmem:[%s7112_s13 + $0x58] sm:$0xff] }
 0xa52   :  { %v3336_v47 = vpop.permute.xlu0 %3335 }
 0xa53   :  { %3343 = vrot.lane.b32.xlu1 %v3339_v20, %s5546_s22  ;;  %v3340_v44 = vmul.f32 %v5414_v37, %v3336_v47  ;;  %v5315_v20 = vpack.c.bf16 %v3644_v55, %v3643_v34 }
 0xa55   :  { %3345 = vrot.lane.b32.xlu0 %v3340_v44, %s5546_s22 }
 0xac5   :  { %v3344_v53 = vpop.permute.xlu1 %3343 }
 0xac6   :  { %v6806_v57 = vadd.f32 %v3344_v53, %v3329_v51 }
 0xac7   :  { %v3346_v42 = vpop.permute.xlu0 %3345 }
 0xac8   :  { %5415 = vtanh.f32 %v6806_v57  ;;  %v6810_v18 = vadd.f32 %v3346_v42, %v3330_v52 }
 0xaca   :  { %5417 = vtanh.f32 %v6810_v18 }
 0xad2   :  { %v5416_v62 = vpop.eup %5415 }
 0xad3   :  { %3355 = vrot.lane.b32.xlu1 %v5416_v62, %s5553_s1 }
 0xad4   :  { %v5418_v0 = vpop.eup %5417 }
 0xad5   :  { %3357 = vrot.lane.b32.xlu0 %v5418_v0, %s5553_s1 }
 0xb45   :  { %v3356_v6 = vpop.permute.xlu1 %3355 }
 0xb46   :  { %v3361_v59 = vmul.f32 %v5412_v40, %v3356_v6  ;;  %v5312_v40 = vpack.c.bf16 %v3642_v35, %v3641_v23  ;;  %v3725_v6 = vld [vmem:[#allocation5 + $0xb] sm:$0x1]  ;;  %v3933_v35 = vld [vmem:[#allocation5 + $0x4] sm:$0x1] }
 0xb47   :  { %v3358_v38 = vpop.permute.xlu0 %3357 }
 0xb48   :  { %v3362_v36 = vmul.f32 %v5414_v37, %v3358_v38  ;;  %5313 = vmatpush3.bf16.msra.mxu1 %v5312_v40 }
 0xb49   :  { %5314 = vmatprep.subr.bf16.mxu1 %v5552_v60 }
 0xb4a   :  { %v3369_v61 = vrot.slane %v3362_v36, 7 }
 0xb4c   :  { %v3370_v7 = vsel %vm1581_vm12, %v3369_v61, %v3361_v59  ;;  %5316 = vmatpush3.bf16.msra.mxu1 %v5315_v20 }
 0xb4d   :  { %3371 = vrot.lane.b32.xlu0 %v3370_v7, %s5546_s22  ;;  %5323 = vmatprep.subr.bf16.mxu1 %v5552_v60 }
 0xbbf   :  { %v3372_v54 = vpop.permute.xlu0 %3371 }
 0xbc0   :  { %5112 = vmatmul.mubr.msk.f32.vlgmr.msra.gmra.mrb[18].mxu0 %vm3097_vm1, %v3372_v54 }
 0xbc1   :  { %5307 = vmatpush3.bf16.msra.mxu0 %v6713_v50  ;;  %5133 = vmatprep.mubr.msk.f32.mxu0 %vm5551_vm8, %v5545_v1 }
 0xbc2   :  { %5308 = vmatprep.subr.bf16.mxu0 %v5552_v60 }
 0xbc5   :  { %5310 = vmatpush3.bf16.msra.mxu0 %v6719_v3 }
 0xbc6   :  { %5317 = vmatprep.subr.bf16.mxu0 %v5552_v60 }
 0xbc8   :  { %5134 = vmatmul.mubr.msk.f32.vlgmr.msra.gmra.mrb[20].mxu0 %vm3097_vm1, %v3372_v54 }
 0xbc9   :  { %5319 = vmatpush3.bf16.msra.mxu0 %v6713_v50  ;;  %5155 = vmatprep.mubr.msk.f32.mxu0 %vm5551_vm8, %v5545_v1 }
 0xbca   :  { %5320 = vmatprep.subr.bf16.mxu0 %v5552_v60 }
 0xbcd   :  { %5322 = vmatpush3.bf16.msra.mxu0 %v6719_v3 }
 0xbce   :  { %5329 = vmatprep.subr.bf16.mxu0 %v5552_v60 }
 0xc93   :  { %v3441_v30 = vpop.f32.mrb[18].mxu0 }
 0xc94   :  { %v6846_v5 = vadd.f32 %v6799_v8, %v3441_v30  ;;  %v5113_v39 = vpop.f32.mrb[19].mxu0 }
 0xc9b   :  { %v3583_v63 = vpop.f32.mrb[20].mxu0 }
 0xc9c   :  { %v3588_v33 = vrot.slane %v3583_v63, 1  ;;  %v3591_v16 = vadd.f32 %v3583_v63, %v3515_v2  ;;  %v5135_v49 = vpop.f32.mrb[21].mxu0 }
 0xc9e   :  { %v3592_v25 = vadd.f32 %v3588_v33, %v3516_v27  ;;  %5419 = vtanh.f32 %v3591_v16  ;;  %v4851_v28 = vmul.f32 -1.442695, %v3591_v16 }
 0xca0   :  { %5421 = vtanh.f32 %v3592_v25  ;;  %v4852_v9 = vmul.f32 -1.442695, %v3592_v25 }
 0xca1   :  { %5423 = vpow2.f32 %v4851_v28 }
 0xca2   :  { %5425 = vpow2.f32 %v4852_v9 }
 0xca8   :  { %v5420_v26 = vpop.eup %5419 }
 0xca9   :  { %3611 = vrot.lane.b32.xlu0 %v5420_v26, %s5553_s1 }
 0xcaa   :  { %v5422_v24 = vpop.eup %5421 }
 0xcab   :  { %3613 = vrot.lane.b32.xlu1 %v5422_v24, %s5553_s1  ;;  %v5424_v10 = vpop.eup %5423 }
 0xcac   :  { %v5426_v12 = vpop.eup %5425  ;;  %v3599_v15 = vadd.f32 1.0, %v5424_v10 }
 0xcad   :  { %v3600_v19 = vadd.f32 1.0, %v5426_v12  ;;  %v3850_v12 = vld [vmem:[%s7112_s13 + $0x60] sm:$0xff] }
 0xcae   :  { %5427 = vrcp.f32 %v3599_v15  ;;  %v3851_v15 = vld [vmem:[%s7112_s13 + $0x68] sm:$0xff] }
 0xcaf   :  { %5429 = vrcp.f32 %v3600_v19  ;;  %v3852_v19 = vld [vmem:[%s7112_s13 + $0x70] sm:$0xff] }
 0xcb8   :  { %v5428_v22 = vpop.eup %5427 }
 0xcb9   :  { %v5430_v46 = vpop.eup %5429  ;;  %v3607_v17 = vmul.f32 %v5428_v22, %v6806_v57 }
 0xcba   :  { %v3608_v13 = vmul.f32 %v5430_v46, %v6810_v18 }
 0xd1b   :  { %v3612_v41 = vpop.permute.xlu0 %3611 }
 0xd1c   :  { %v3617_v14 = vmul.f32 %v5428_v22, %v3612_v41  ;;  %v3853_v41 = vld [vmem:[%s7112_s13 + $0x78] sm:$0xff] }
 0xd1d   :  { %v3614_v43 = vpop.permute.xlu1 %3613 }
 0xd1e   :  { %3621 = vrot.lane.b32.xlu0 %v3617_v14, %s5546_s22  ;;  %v3618_v8 = vmul.f32 %v5430_v46, %v3614_v43  ;;  %v5327_v14 = vpack.c.bf16 %v3853_v41, %v3852_v19 }
 0xd20   :  { %3623 = vrot.lane.b32.xlu1 %v3618_v8, %s5546_s22 }
 0xd90   :  { %v3622_v45 = vpop.permute.xlu0 %3621 }
 0xd91   :  { %v6853_v32 = vadd.f32 %v3622_v45, %v3607_v17 }
 0xd92   :  { %v3624_v31 = vpop.permute.xlu1 %3623 }
 0xd93   :  { %5431 = vtanh.f32 %v6853_v32  ;;  %v6857_v48 = vadd.f32 %v3624_v31, %v3608_v13 }
 0xd95   :  { %5433 = vtanh.f32 %v6857_v48 }
 0xd9d   :  { %v5432_v37 = vpop.eup %5431 }
 0xd9e   :  { %3633 = vrot.lane.b32.xlu0 %v5432_v37, %s5553_s1 }
 0xd9f   :  { %v5434_v47 = vpop.eup %5433 }
 0xda0   :  { %3635 = vrot.lane.b32.xlu1 %v5434_v47, %s5553_s1 }
 0xe10   :  { %v3634_v44 = vpop.permute.xlu0 %3633 }
 0xe11   :  { %v3639_v57 = vmul.f32 %v5428_v22, %v3634_v44  ;;  %v5324_v22 = vpack.c.bf16 %v3851_v15, %v3850_v12  ;;  %v3934_v44 = vld [vmem:[#allocation5 + $0xc] sm:$0x1]  ;;  %v4142_v15 = vld [vmem:[#allocation5 + $0x5] sm:$0x1] }
 0xe12   :  { %v3636_v51 = vpop.permute.xlu1 %3635 }
 0xe13   :  { %v3640_v53 = vmul.f32 %v5430_v46, %v3636_v51 }
 0xe15   :  { %v3647_v52 = vrot.slane %v3640_v53, 7 }
 0xe17   :  { %v3648_v42 = vsel %vm1581_vm12, %v3647_v52, %v3639_v57 }
 0xe18   :  { %3649 = vrot.lane.b32.xlu1 %v3648_v42, %s5546_s22 }
 0xe8a   :  { %v3650_v18 = vpop.permute.xlu1 %3649 }
 0xe8b   :  { %5145 = vmatmul.mubr.msk.f32.vlgmr.msra.gmra.mrb[20].mxu1 %vm3097_vm1, %v3650_v18  ;;  %5156 = vmatmul.mubr.msk.f32.vlgmr.msra.gmra.mrb[22].mxu0 %vm3097_vm1, %v3650_v18 }
 0xe8c   :  { %5331 = vmatpush3.bf16.msra.mxu0 %v6713_v50  ;;  %5166 = vmatprep.mubr.msk.f32.mxu1 %vm5551_vm8, %v5545_v1 }
 0xe8d   :  { %5332 = vmatprep.subr.bf16.mxu0 %v5552_v60  ;;  %5177 = vmatprep.mubr.msk.f32.mxu0 %vm5551_vm8, %v5545_v1 }
 0xe8e   :  { %5325 = vmatpush3.bf16.msra.mxu1 %v5324_v22 }
 0xe8f   :  { %5326 = vmatprep.subr.bf16.mxu1 %v5552_v60 }
 0xe90   :  { %5334 = vmatpush3.bf16.msra.mxu0 %v6719_v3 }
 0xe91   :  { %5341 = vmatprep.subr.bf16.mxu0 %v5552_v60 }
 0xe92   :  { %5328 = vmatpush3.bf16.msra.mxu1 %v5327_v14 }
 0xe93   :  { %5335 = vmatprep.subr.bf16.mxu1 %v5552_v60 }
 0xf5e   :  { %v3719_v11 = vpop.f32.mrb[20].mxu1  ;;  %v3792_v29 = vpop.f32.mrb[22].mxu0 }
 0xf5f   :  { %v6889_v58 = vadd.f32 %v3719_v11, %v6846_v5  ;;  %v3797_v4 = vrot.slane %v3792_v29, 1  ;;  %v3800_v21 = vadd.f32 %v3792_v29, %v3724_v56  ;;  %v5146_v62 = vpop.f32.mrb[21].mxu1  ;;  %v5157_v0 = vpop.f32.mrb[23].mxu0 }
 0xf61   :  { %v3801_v38 = vadd.f32 %v3797_v4, %v3725_v6  ;;  %5435 = vtanh.f32 %v3800_v21  ;;  %v4855_v61 = vmul.f32 -1.442695, %v3800_v21 }
 0xf63   :  { %5437 = vtanh.f32 %v3801_v38  ;;  %v4856_v7 = vmul.f32 -1.442695, %v3801_v38 }
 0xf64   :  { %5439 = vpow2.f32 %v4855_v61 }
 0xf65   :  { %5441 = vpow2.f32 %v4856_v7 }
 0xf6b   :  { %v5436_v36 = vpop.eup %5435 }
 0xf6c   :  { %3820 = vrot.lane.b32.xlu1 %v5436_v36, %s5553_s1 }
 0xf6d   :  { %v5438_v59 = vpop.eup %5437 }
 0xf6e   :  { %3822 = vrot.lane.b32.xlu0 %v5438_v59, %s5553_s1  ;;  %v5440_v54 = vpop.eup %5439 }
 0xf6f   :  { %v5442_v30 = vpop.eup %5441  ;;  %v3808_v5 = vadd.f32 1.0, %v5440_v54 }
 0xf70   :  { %v3809_v39 = vadd.f32 1.0, %v5442_v30  ;;  %v4059_v30 = vld [vmem:[%s7112_s13 + $0x80] sm:$0xff] }
 0xf71   :  { %5443 = vrcp.f32 %v3808_v5  ;;  %v4060_v5 = vld [vmem:[%s7112_s13 + $0x88] sm:$0xff] }
 0xf72   :  { %5445 = vrcp.f32 %v3809_v39  ;;  %v4061_v39 = vld [vmem:[%s7112_s13 + $0x90] sm:$0xff] }
 0xf7b   :  { %v5444_v2 = vpop.eup %5443 }
 0xf7c   :  { %v5446_v16 = vpop.eup %5445  ;;  %v3816_v25 = vmul.f32 %v5444_v2, %v6853_v32 }
 0xf7d   :  { %v3817_v28 = vmul.f32 %v5446_v16, %v6857_v48 }
 0xfde   :  { %v3821_v63 = vpop.permute.xlu1 %3820 }
 0xfdf   :  { %v3826_v33 = vmul.f32 %v5444_v2, %v3821_v63  ;;  %v4062_v63 = vld [vmem:[%s7112_s13 + $0x98] sm:$0xff] }
 0xfe0   :  { %v3823_v49 = vpop.permute.xlu0 %3822 }
 0xfe1   :  { %3830 = vrot.lane.b32.xlu1 %v3826_v33, %s5546_s22  ;;  %v3827_v27 = vmul.f32 %v5446_v16, %v3823_v49  ;;  %v5339_v33 = vpack.c.bf16 %v4062_v63, %v4061_v39 }
 0xfe3   :  { %3832 = vrot.lane.b32.xlu0 %v3827_v27, %s5546_s22 }
0x1053   :  { %v3831_v26 = vpop.permute.xlu1 %3830 }
0x1054   :  { %v6896_v24 = vadd.f32 %v3831_v26, %v3816_v25 }
0x1055   :  { %v3833_v9 = vpop.permute.xlu0 %3832 }
0x1056   :  { %5447 = vtanh.f32 %v6896_v24  ;;  %v6900_v10 = vadd.f32 %v3833_v9, %v3817_v28 }
0x1058   :  { %5449 = vtanh.f32 %v6900_v10 }
0x1060   :  { %v5448_v46 = vpop.eup %5447 }
0x1061   :  { %3842 = vrot.lane.b32.xlu1 %v5448_v46, %s5553_s1 }
0x1062   :  { %v5450_v43 = vpop.eup %5449 }
0x1063   :  { %3844 = vrot.lane.b32.xlu0 %v5450_v43, %s5553_s1 }
0x10d3   :  { %v3843_v8 = vpop.permute.xlu1 %3842 }
0x10d4   :  { %v3848_v32 = vmul.f32 %v5444_v2, %v3843_v8  ;;  %v5336_v2 = vpack.c.bf16 %v4060_v5, %v4059_v30  ;;  %v4143_v8 = vld [vmem:[#allocation5 + $0xd] sm:$0x1]  ;;  %v4351_v5 = vld [vmem:[#allocation5 + $0x6] sm:$0x1] }
0x10d5   :  { %v3845_v17 = vpop.permute.xlu0 %3844 }
0x10d6   :  { %v3849_v45 = vmul.f32 %v5446_v16, %v3845_v17 }
0x10d8   :  { %v3856_v13 = vrot.slane %v3849_v45, 7 }
0x10da   :  { %v3857_v31 = vsel %vm1581_vm12, %v3856_v13, %v3848_v32 }
0x10db   :  { %3858 = vrot.lane.b32.xlu0 %v3857_v31, %s5546_s22 }
0x114d   :  { %v3859_v48 = vpop.permute.xlu0 %3858 }
0x114e   :  { %5167 = vmatmul.mubr.msk.f32.vlgmr.msra.gmra.mrb[22].mxu1 %vm3097_vm1, %v3859_v48  ;;  %5178 = vmatmul.mubr.msk.f32.vlgmr.msra.gmra.mrb[24].mxu0 %vm3097_vm1, %v3859_v48 }
0x114f   :  { %5343 = vmatpush3.bf16.msra.mxu0 %v6713_v50  ;;  %5188 = vmatprep.mubr.msk.f32.mxu1 %vm5551_vm8, %v5545_v1 }
0x1150   :  { %5344 = vmatprep.subr.bf16.mxu0 %v5552_v60  ;;  %5199 = vmatprep.mubr.msk.f32.mxu0 %vm5551_vm8, %v5545_v1 }
0x1151   :  { %5337 = vmatpush3.bf16.msra.mxu1 %v5336_v2 }
0x1152   :  { %5338 = vmatprep.subr.bf16.mxu1 %v5552_v60 }
0x1153   :  { %5346 = vmatpush3.bf16.msra.mxu0 %v6719_v3 }
0x1154   :  { %5353 = vmatprep.subr.bf16.mxu0 %v5552_v60 }
0x1155   :  { %5340 = vmatpush3.bf16.msra.mxu1 %v5339_v33 }
0x1156   :  { %5347 = vmatprep.subr.bf16.mxu1 %v5552_v60 }
0x1221   :  { %v3928_v23 = vpop.f32.mrb[22].mxu1  ;;  %v4001_v34 = vpop.f32.mrb[24].mxu0 }
0x1222   :  { %v6932_v40 = vadd.f32 %v3928_v23, %v6889_v58  ;;  %v4006_v55 = vrot.slane %v4001_v34, 1  ;;  %v4009_v20 = vadd.f32 %v4001_v34, %v3933_v35  ;;  %v5168_v37 = vpop.f32.mrb[23].mxu1  ;;  %v5179_v47 = vpop.f32.mrb[25].mxu0 }
0x1224   :  { %v4010_v51 = vadd.f32 %v4006_v55, %v3934_v44  ;;  %5451 = vtanh.f32 %v4009_v20  ;;  %v4859_v52 = vmul.f32 -1.442695, %v4009_v20 }
0x1226   :  { %5453 = vtanh.f32 %v4010_v51  ;;  %v4860_v42 = vmul.f32 -1.442695, %v4010_v51 }
0x1227   :  { %5455 = vpow2.f32 %v4859_v52 }
0x1228   :  { %5457 = vpow2.f32 %v4860_v42 }
0x122e   :  { %v5452_v53 = vpop.eup %5451 }
0x122f   :  { %4029 = vrot.lane.b32.xlu0 %v5452_v53, %s5553_s1 }
0x1230   :  { %v5454_v57 = vpop.eup %5453 }
0x1231   :  { %4031 = vrot.lane.b32.xlu1 %v5454_v57, %s5553_s1  ;;  %v5456_v18 = vpop.eup %5455 }
0x1232   :  { %v5458_v11 = vpop.eup %5457  ;;  %v4017_v56 = vadd.f32 1.0, %v5456_v18 }
0x1233   :  { %v4018_v29 = vadd.f32 1.0, %v5458_v11  ;;  %v4268_v11 = vld [vmem:[%s7112_s13 + $0xa0] sm:$0xff] }
0x1234   :  { %5459 = vrcp.f32 %v4017_v56  ;;  %v4269_v56 = vld [vmem:[%s7112_s13 + $0xa8] sm:$0xff] }
0x1235   :  { %5461 = vrcp.f32 %v4018_v29  ;;  %v4270_v29 = vld [vmem:[%s7112_s13 + $0xb0] sm:$0xff] }
0x123e   :  { %v5460_v58 = vpop.eup %5459 }
0x123f   :  { %v5462_v62 = vpop.eup %5461  ;;  %v4025_v38 = vmul.f32 %v5460_v58, %v6896_v24 }
0x1240   :  { %v4026_v61 = vmul.f32 %v5462_v62, %v6900_v10 }
0x12a1   :  { %v4030_v4 = vpop.permute.xlu0 %4029 }
0x12a2   :  { %v4035_v21 = vmul.f32 %v5460_v58, %v4030_v4  ;;  %v4271_v4 = vld [vmem:[%s7112_s13 + $0xb8] sm:$0xff] }
0x12a3   :  { %v4032_v0 = vpop.permute.xlu1 %4031 }
0x12a4   :  { %4039 = vrot.lane.b32.xlu0 %v4035_v21, %s5546_s22  ;;  %v4036_v6 = vmul.f32 %v5462_v62, %v4032_v0  ;;  %v5351_v21 = vpack.c.bf16 %v4271_v4, %v4270_v29 }
0x12a6   :  { %4041 = vrot.lane.b32.xlu1 %v4036_v6, %s5546_s22 }
0x1316   :  { %v4040_v36 = vpop.permute.xlu0 %4039 }
0x1317   :  { %v6939_v59 = vadd.f32 %v4040_v36, %v4025_v38 }
0x1318   :  { %v4042_v7 = vpop.permute.xlu1 %4041 }
0x1319   :  { %5463 = vtanh.f32 %v6939_v59  ;;  %v6943_v54 = vadd.f32 %v4042_v7, %v4026_v61 }
0x131b   :  { %5465 = vtanh.f32 %v6943_v54 }
0x1323   :  { %v5464_v16 = vpop.eup %5463 }
0x1324   :  { %4051 = vrot.lane.b32.xlu0 %v5464_v16, %s5553_s1 }
0x1325   :  { %v5466_v49 = vpop.eup %5465 }
0x1326   :  { %4053 = vrot.lane.b32.xlu1 %v5466_v49, %s5553_s1  ;;  %v4352_v49 = vld [vmem:[#allocation5 + $0xe] sm:$0x1] }
0x1396   :  { %v4052_v27 = vpop.permute.xlu0 %4051 }
0x1397   :  { %v4057_v24 = vmul.f32 %v5460_v58, %v4052_v27  ;;  %v5348_v58 = vpack.c.bf16 %v4269_v56, %v4268_v11 }
0x1398   :  { %v4054_v25 = vpop.permute.xlu1 %4053 }
0x1399   :  { %v4058_v26 = vmul.f32 %v5462_v62, %v4054_v25 }
0x139b   :  { %v4065_v28 = vrot.slane %v4058_v26, 7 }
0x139d   :  { %v4066_v9 = vsel %vm1581_vm12, %v4065_v28, %v4057_v24 }
0x139e   :  { %4067 = vrot.lane.b32.xlu1 %v4066_v9, %s5546_s22 }
0x1410   :  { %v4068_v10 = vpop.permute.xlu1 %4067 }
0x1411   :  { %5189 = vmatmul.mubr.msk.f32.vlgmr.msra.gmra.mrb[24].mxu1 %vm3097_vm1, %v4068_v10  ;;  %5200 = vmatmul.mubr.msk.f32.vlgmr.msra.gmra.mrb[26].mxu0 %vm3097_vm1, %v4068_v10 }
0x1412   :  { %5355 = vmatpush3.bf16.msra.mxu0 %v6713_v50  ;;  %5210 = vmatprep.mubr.msk.f32.mxu1 %vm5551_vm8, %v5545_v1 }
0x1413   :  { %5356 = vmatprep.subr.bf16.mxu0 %v5552_v60  ;;  %5221 = vmatprep.mubr.msk.f32.mxu0 %vm5551_vm8, %v5545_v1 }
0x1414   :  { %5349 = vmatpush3.bf16.msra.mxu1 %v5348_v58 }
0x1415   :  { %5350 = vmatprep.subr.bf16.mxu1 %v5552_v60 }
0x1416   :  { %5358 = vmatpush3.bf16.msra.mxu0 %v6719_v3 }
0x1417   :  { %5365 = vmatprep.subr.bf16.mxu0 %v5552_v60 }
0x1418   :  { %5352 = vmatpush3.bf16.msra.mxu1 %v5351_v21 }
0x1419   :  { %5359 = vmatprep.subr.bf16.mxu1 %v5552_v60 }
0x14e4   :  { %v4137_v12 = vpop.f32.mrb[24].mxu1  ;;  %v4210_v19 = vpop.f32.mrb[26].mxu0 }
0x14e5   :  { %v6975_v22 = vadd.f32 %v4137_v12, %v6932_v40  ;;  %v4215_v41 = vrot.slane %v4210_v19, 1  ;;  %v4218_v14 = vadd.f32 %v4210_v19, %v4142_v15  ;;  %v5190_v46 = vpop.f32.mrb[25].mxu1  ;;  %v5201_v43 = vpop.f32.mrb[27].mxu0 }
0x14e7   :  { %v4219_v17 = vadd.f32 %v4215_v41, %v4143_v8  ;;  %5467 = vtanh.f32 %v4218_v14  ;;  %v4863_v13 = vmul.f32 -1.442695, %v4218_v14 }
0x14e9   :  { %5469 = vtanh.f32 %v4219_v17  ;;  %v4864_v31 = vmul.f32 -1.442695, %v4219_v17 }
0x14ea   :  { %5471 = vpow2.f32 %v4863_v13 }
0x14eb   :  { %5473 = vpow2.f32 %v4864_v31  ;;  %v4477_v31 = vld [vmem:[%s7112_s13 + $0xc0] sm:$0xff] }
0x14f1   :  { %v5468_v45 = vpop.eup %5467 }
0x14f2   :  { %4238 = vrot.lane.b32.xlu1 %v5468_v45, %s5553_s1 }
0x14f3   :  { %v5470_v32 = vpop.eup %5469 }
0x14f4   :  { %4240 = vrot.lane.b32.xlu0 %v5470_v32, %s5553_s1  ;;  %v5472_v48 = vpop.eup %5471 }
0x14f5   :  { %v5474_v23 = vpop.eup %5473  ;;  %v4226_v35 = vadd.f32 1.0, %v5472_v48  ;;  %v4478_v48 = vld [vmem:[%s7112_s13 + $0xc8] sm:$0xff] }
0x14f6   :  { %v4227_v34 = vadd.f32 1.0, %v5474_v23  ;;  %v4479_v23 = vld [vmem:[%s7112_s13 + $0xd0] sm:$0xff] }
0x14f7   :  { %5475 = vrcp.f32 %v4226_v35  ;;  %v5360_v35 = vpack.c.bf16 %v4478_v48, %v4477_v31 }
0x14f8   :  { %5477 = vrcp.f32 %v4227_v34  ;;  %v4480_v34 = vld [vmem:[%s7112_s13 + $0xd8] sm:$0xff] }
0x1501   :  { %v5476_v40 = vpop.eup %5475 }
0x1502   :  { %v5478_v37 = vpop.eup %5477  ;;  %v4234_v51 = vmul.f32 %v5476_v40, %v6939_v59 }
0x1503   :  { %v4235_v52 = vmul.f32 %v5478_v37, %v6943_v54 }
0x1564   :  { %v4239_v55 = vpop.permute.xlu1 %4238 }
0x1565   :  { %v4244_v20 = vmul.f32 %v5476_v40, %v4239_v55 }
0x1566   :  { %v4241_v47 = vpop.permute.xlu0 %4240 }
0x1567   :  { %4248 = vrot.lane.b32.xlu1 %v4244_v20, %s5546_s22  ;;  %v4245_v44 = vmul.f32 %v5478_v37, %v4241_v47 }
0x1569   :  { %4250 = vrot.lane.b32.xlu0 %v4245_v44, %s5546_s22 }
0x15d9   :  { %v4249_v53 = vpop.permute.xlu1 %4248 }
0x15da   :  { %v6982_v57 = vadd.f32 %v4249_v53, %v4234_v51 }
0x15db   :  { %v4251_v42 = vpop.permute.xlu0 %4250 }
0x15dc   :  { %5479 = vtanh.f32 %v6982_v57  ;;  %v6986_v18 = vadd.f32 %v4251_v42, %v4235_v52 }
0x15de   :  { %5481 = vtanh.f32 %v6986_v18 }
0x15e6   :  { %v5480_v62 = vpop.eup %5479 }
0x15e7   :  { %4260 = vrot.lane.b32.xlu1 %v5480_v62, %s5553_s1  ;;  %v4561_v62 = vld [vmem:[#allocation5 + $0xf] sm:$0x1] }
0x15e8   :  { %v5482_v0 = vpop.eup %5481 }
0x15e9   :  { %4262 = vrot.lane.b32.xlu0 %v5482_v0, %s5553_s1 }
0x1659   :  { %v4261_v6 = vpop.permute.xlu1 %4260 }
0x165a   :  { %v4266_v59 = vmul.f32 %v5476_v40, %v4261_v6  ;;  %v5363_v40 = vpack.c.bf16 %v4480_v34, %v4479_v23 }
0x165b   :  { %v4263_v38 = vpop.permute.xlu0 %4262 }
0x165c   :  { %v4267_v36 = vmul.f32 %v5478_v37, %v4263_v38 }
0x165e   :  { %v4274_v61 = vrot.slane %v4267_v36, 7 }
0x1660   :  { %v4275_v7 = vsel %vm1581_vm12, %v4274_v61, %v4266_v59 }
0x1661   :  { %4276 = vrot.lane.b32.xlu0 %v4275_v7, %s5546_s22 }
0x16d3   :  { %v4277_v54 = vpop.permute.xlu0 %4276 }
0x16d4   :  { %5211 = vmatmul.mubr.msk.f32.vlgmr.msra.gmra.mrb[26].mxu1 %vm3097_vm1, %v4277_v54  ;;  %5222 = vmatmul.mubr.msk.f32.vlgmr.msra.gmra.mrb[28].mxu0 %vm3097_vm1, %v4277_v54 }
0x16d5   :  { %5367 = vmatpush3.bf16.msra.mxu0 %v6713_v50  ;;  %5232 = vmatprep.mubr.msk.f32.mxu1 %vm5551_vm8, %v5545_v1 }
0x16d6   :  { %5368 = vmatprep.subr.bf16.mxu0 %v5552_v60  ;;  %5243 = vmatprep.mubr.msk.f32.mxu0 %vm5551_vm8, %v5545_v1 }
0x16d7   :  { %5361 = vmatpush3.bf16.msra.mxu1 %v5360_v35 }
0x16d8   :  { %5362 = vmatprep.subr.bf16.mxu1 %v5552_v60 }
0x16d9   :  { %5370 = vmatpush3.bf16.msra.mxu0 %v6719_v3 }
0x16db   :  { %5364 = vmatpush3.bf16.msra.mxu1 %v5363_v40 }
0x16dc   :  { %5371 = vmatprep.subr.bf16.mxu1 %v5552_v60 }
0x17a7   :  { %v4346_v30 = vpop.f32.mrb[26].mxu1  ;;  %v4419_v39 = vpop.f32.mrb[28].mxu0 }
0x17a8   :  { %v7017_v2 = vadd.f32 %v4346_v30, %v6975_v22  ;;  %v4424_v63 = vrot.slane %v4419_v39, 1  ;;  %v4427_v33 = vadd.f32 %v4419_v39, %v4351_v5  ;;  %v5212_v16 = vpop.f32.mrb[27].mxu1  ;;  %v5223_v50 = vpop.f32.mrb[29].mxu0 }
0x17aa   :  { %v4428_v27 = vadd.f32 %v4424_v63, %v4352_v49  ;;  %5483 = vtanh.f32 %v4427_v33  ;;  %v4867_v3 = vmul.f32 -1.442695, %v4427_v33 }
0x17ac   :  { %5485 = vtanh.f32 %v4428_v27  ;;  %v4868_v24 = vmul.f32 -1.442695, %v4428_v27 }
0x17ad   :  { %5487 = vpow2.f32 %v4867_v3  ;;  %v4686_v3 = vld [vmem:[%s7112_s13 + $0xe0] sm:$0xff] }
0x17ae   :  { %5489 = vpow2.f32 %v4868_v24  ;;  %v4687_v24 = vld [vmem:[%s7112_s13 + $0xe8] sm:$0xff] }
0x17b4   :  { %v5484_v25 = vpop.eup %5483 }
0x17b5   :  { %4447 = vrot.lane.b32.xlu0 %v5484_v25, %s5553_s1 }
0x17b6   :  { %v5486_v26 = vpop.eup %5485 }
0x17b7   :  { %4449 = vrot.lane.b32.xlu1 %v5486_v26, %s5553_s1  ;;  %v5488_v28 = vpop.eup %5487 }
0x17b8   :  { %v5490_v9 = vpop.eup %5489  ;;  %v4435_v10 = vadd.f32 1.0, %v5488_v28  ;;  %v4688_v28 = vld [vmem:[%s7112_s13 + $0xf0] sm:$0xff] }
0x17b9   :  { %v4436_v12 = vadd.f32 1.0, %v5490_v9  ;;  %v5372_v9 = vpack.c.bf16 %v4687_v24, %v4686_v3 }
0x17ba   :  { %5491 = vrcp.f32 %v4435_v10  ;;  %v4689_v10 = vld [vmem:[%s7112_s13 + $0xf8] sm:$0xff] }
0x17bb   :  { %5493 = vrcp.f32 %v4436_v12  ;;  %v5375_v12 = vpack.c.bf16 %v4689_v10, %v4688_v28 }
0x17c4   :  { %v5492_v15 = vpop.eup %5491 }
0x17c5   :  { %v5494_v41 = vpop.eup %5493  ;;  %v4443_v43 = vmul.f32 %v5492_v15, %v6982_v57 }
0x17c6   :  { %v4444_v45 = vmul.f32 %v5494_v41, %v6986_v18  ;;  %v4560_v18 = vld [vmem:[#allocation5 + $0x7] sm:$0x1] }
0x1827   :  { %v4448_v19 = vpop.permute.xlu0 %4447 }
0x1828   :  { %v4453_v22 = vmul.f32 %v5492_v15, %v4448_v19 }
0x1829   :  { %v4450_v14 = vpop.permute.xlu1 %4449 }
0x182a   :  { %4457 = vrot.lane.b32.xlu0 %v4453_v22, %s5546_s22  ;;  %v4454_v46 = vmul.f32 %v5494_v41, %v4450_v14 }
0x182c   :  { %4459 = vrot.lane.b32.xlu1 %v4454_v46, %s5546_s22 }
0x189c   :  { %v4458_v8 = vpop.permute.xlu0 %4457 }
0x189d   :  { %v7024_v17 = vadd.f32 %v4458_v8, %v4443_v43 }
0x189e   :  { %v4460_v32 = vpop.permute.xlu1 %4459 }
0x189f   :  { %5495 = vtanh.f32 %v7024_v17  ;;  %v7028_v13 = vadd.f32 %v4460_v32, %v4444_v45 }
0x18a1   :  { %5497 = vtanh.f32 %v7028_v13 }
0x18a9   :  { %v5496_v55 = vpop.eup %5495 }
0x18aa   :  { %4469 = vrot.lane.b32.xlu0 %v5496_v55, %s5553_s1 }
0x18ab   :  { %v5498_v20 = vpop.eup %5497 }
0x18ac   :  { %4471 = vrot.lane.b32.xlu1 %v5498_v20, %s5553_s1 }
0x191c   :  { %v4470_v37 = vpop.permute.xlu0 %4469 }
0x191d   :  { %v4475_v51 = vmul.f32 %v5492_v15, %v4470_v37 }
0x191e   :  { %v4472_v47 = vpop.permute.xlu1 %4471 }
0x191f   :  { %v4476_v44 = vmul.f32 %v5494_v41, %v4472_v47 }
0x1921   :  { %v4483_v53 = vrot.slane %v4476_v44, 7 }
0x1923   :  { %v4484_v57 = vsel %vm1581_vm12, %v4483_v53, %v4475_v51 }
0x1924   :  { %4485 = vrot.lane.b32.xlu1 %v4484_v57, %s5546_s22 }
0x1996   :  { %v4486_v52 = vpop.permute.xlu1 %4485 }
0x1997   :  { %5233 = vmatmul.mubr.msk.f32.vlgmr.msra.gmra.mrb[28].mxu1 %vm3097_vm1, %v4486_v52  ;;  %5244 = vmatmul.mubr.msk.f32.vlgmr.msra.gmra.mrb[30].mxu0 %vm3097_vm1, %v4486_v52 }
0x1998   :  { %5254 = vmatprep.mubr.msk.f32.mxu1 %vm5551_vm8, %v5545_v1  ;;  %5373 = vmatpush3.bf16.msra.mxu1 %v5372_v9 }
0x1999   :  { %5374 = vmatprep.subr.bf16.mxu1 %v5552_v60  ;;  %v4874_v60 = vld [vmem:[%s7113_s14] ss:$0 sm:$0xff] }
0x199c   :  { %5376 = vmatpush3.bf16.msra.mxu1 %v5375_v12 }
0x1a6a   :  { %v4555_v42 = vpop.f32.mrb[28].mxu1  ;;  %v4628_v11 = vpop.f32.mrb[30].mxu0 }
0x1a6b   :  { %v7054_v56 = vadd.f32 %v4555_v42, %v7017_v2  ;;  %v4633_v29 = vrot.slane %v4628_v11, 1  ;;  %v4636_v58 = vadd.f32 %v4628_v11, %v4560_v18  ;;  %v5234_v4 = vpop.f32.mrb[29].mxu1  ;;  %v5245_v21 = vpop.f32.mrb[31].mxu0 }
0x1a6d   :  { %v4637_v0 = vadd.f32 %v4633_v29, %v4561_v62  ;;  %5499 = vtanh.f32 %v4636_v58  ;;  %v4871_v1 = vmul.f32 -1.442695, %v4636_v58 }
0x1a6f   :  { %5501 = vtanh.f32 %v4637_v0  ;;  %v4872_v36 = vmul.f32 -1.442695, %v4637_v0 }
0x1a70   :  { %5503 = vpow2.f32 %v4871_v1 }
0x1a71   :  { %5505 = vpow2.f32 %v4872_v36 }
0x1a77   :  { %v5500_v6 = vpop.eup %5499 }
0x1a78   :  { %4656 = vrot.lane.b32.xlu1 %v5500_v6, %s5553_s1 }
0x1a79   :  { %v5502_v38 = vpop.eup %5501 }
0x1a7a   :  { %4658 = vrot.lane.b32.xlu0 %v5502_v38, %s5553_s1  ;;  %v5504_v59 = vpop.eup %5503 }
0x1a7b   :  { %v5506_v61 = vpop.eup %5505  ;;  %v4644_v7 = vadd.f32 1.0, %v5504_v59 }
0x1a7c   :  { %v4645_v54 = vadd.f32 1.0, %v5506_v61 }
0x1a7d   :  { %5507 = vrcp.f32 %v4644_v7 }
0x1a7e   :  { %5509 = vrcp.f32 %v4645_v54 }
0x1a87   :  { %v5508_v30 = vpop.eup %5507 }
0x1a88   :  { %v5510_v2 = vpop.eup %5509  ;;  %v4652_v16 = vmul.f32 %v5508_v30, %v7024_v17 }
0x1a89   :  { %v4653_v27 = vmul.f32 %v5510_v2, %v7028_v13 }
0x1aea   :  { %v4657_v5 = vpop.permute.xlu1 %4656 }
0x1aeb   :  { %v4662_v39 = vmul.f32 %v5508_v30, %v4657_v5 }
0x1aec   :  { %v4659_v63 = vpop.permute.xlu0 %4658 }
0x1aed   :  { %4666 = vrot.lane.b32.xlu1 %v4662_v39, %s5546_s22  ;;  %v4663_v33 = vmul.f32 %v5510_v2, %v4659_v63 }
0x1aef   :  { %4668 = vrot.lane.b32.xlu0 %v4663_v33, %s5546_s22 }
0x1b5f   :  { %v4667_v50 = vpop.permute.xlu1 %4666 }
0x1b60   :  { %v4672_v49 = vadd.f32 %v4667_v50, %v4652_v16 }
0x1b61   :  { %v4669_v25 = vpop.permute.xlu0 %4668 }
0x1b62   :  { %5511 = vtanh.f32 %v4672_v49  ;;  %v4673_v26 = vadd.f32 %v4669_v25, %v4653_v27 }
0x1b64   :  { %5513 = vtanh.f32 %v4673_v26 }
0x1b6c   :  { %v5512_v15 = vpop.eup %5511 }
0x1b6d   :  { %4678 = vrot.lane.b32.xlu1 %v5512_v15, %s5553_s1 }
0x1b6e   :  { %v5514_v19 = vpop.eup %5513 }
0x1b6f   :  { %4680 = vrot.lane.b32.xlu0 %v5514_v19, %s5553_s1 }
0x1bdf   :  { %v4679_v22 = vpop.permute.xlu1 %4678 }
0x1be0   :  { %v4684_v46 = vmul.f32 %v5508_v30, %v4679_v22 }
0x1be1   :  { %v4681_v41 = vpop.permute.xlu0 %4680 }
0x1be2   :  { %v4685_v14 = vmul.f32 %v5510_v2, %v4681_v41 }
0x1be4   :  { %v4692_v43 = vrot.slane %v4685_v14, 7 }
0x1be6   :  { %v4693_v8 = vsel %vm1581_vm12, %v4692_v43, %v4684_v46 }
0x1be7   :  { %4694 = vrot.lane.b32.xlu0 %v4693_v8, %s5546_s22  ;;  %s5554_s22 = smov [#allocation6]  }
0x1be8   :  { %s4796_s14 = sshll.u32 %s5554_s22, 4  ;;  %s4797_s14 = int_to_ptr.vmem [resolvable:$true] %s4796_s14 }
0x1be9   :  { %s5521_s1 = scalar_lea.vmem %s4797_s14, 32  ;;  %p5526_p1 = scmp.lt.s32.totalorder %s4797_s14, %s4797_s14 }
0x1bea   :  { %p5522_p0 = scmp.ne.s32.totalorder %s4797_s14, %s5521_s1  ;;  %p5527_p2 = scmp.lt.s32.totalorder %s5521_s1, %s5521_s1 }
0x1bec   :  { %p5528_p3 = por %p5527_p2, %p5526_p1 }
0x1bee   :  { %p5529_p4 = pnand %p5528_p3, %p5522_p0 }
0x1c59   :  { %v4695_v17 = vpop.permute.xlu0 %4694 }
0x1c5a   :  { %5255 = vmatmul.mubr.msk.f32.vlgmr.msra.gmra.mrb[30].mxu1 %vm3097_vm1, %v4695_v17 }
0x1d2d   :  { %v4764_v45 = vpop.f32.mrb[30].mxu1 }
0x1d2e   :  { %v4768_v32 = vadd.f32 %v4764_v45, %v7054_v56  ;;  %v5256_v13 = vpop.f32.mrb[31].mxu1 }
0x1d30   :  { %v4776_v31 = vadd.f32 %v4874_v60, %v4768_v32 }
0x1d32   :  { %v4778_v48 = vsel %vm4777_vm11, %v4776_v31, -inf }
0x1d33   :  { %4779 = vmax.xlane.f32.xlu1 %v4778_v48 }
0x1dc0   :  { %v4780_v23 = vpop.xlane.xlu1 %4779 }
0x1dc1   :  { %v4781_v35 = vsub.f32 %v4776_v31, %v4780_v23 }
0x1dc3   :  { %v4782_v34 = vmul.f32 1.442695, %v4781_v35 }
0x1dc5   :  { %5515 = vpow2.f32 %v4782_v34 }
0x1dcf   :  { %v5516_v40 = vpop.eup %5515 }
0x1dd0   :  { %v4784_v55 = vsel %vm4777_vm11, %v5516_v40, 0.0 }
0x1dd1   :  { %4785 = vadd.xlane.f32.xlu0 %v4784_v55 }
0x1e5e   :  { %v4786_v20 = vpop.xlane.xlu0 %4785 }
0x1e5f   :  { %5517 = vrcp.f32 %v4786_v20 }
0x1e69   :  { %v5518_v37 = vpop.eup %5517 }
0x1e6a   :  { %v4788_v47 = vmul.f32 %v5518_v37, %v5516_v40 }
0x1e6c   :  { %4789 = vst.msk [vmem:[#allocation6] sm:$0x3] %vm4777_vm11, %v4788_v47 }
0x1e6d   :  { %5532 = shalt.err (!%p5529_p4)
}
0x1e6e   :  { %s5533_s17 = scalar_lea.hbm %s7114_s15, 32 }
0x1e6f   :  { %p5534_p5 = scmp.ne.s32.totalorder %s7114_s15, %s5533_s17  ;;  %p5537_p6 = scmp.lt.u32.totalorder %s5533_s17, %s7114_s15 }
0x1e71   :  { %p5539_p7 = pnand %p5537_p6, %p5534_p5 }
0x1e73   :  { %5542 = shalt.err (!%p5539_p7)
}
0x1e74   :  { %4799 = dma.vmem_to_hbm [thread:$0]  %s4797_s14, 32, %s7114_s15, [#allocation7]  }
0x1e75   :  { %5543 = dma.done.wait [#allocation7], 32  }
0x1e76   :  { %5544 = vsyncadd [#allocation7], 4294967264 }
0x1e77   :  { %4803 = vsyncpa [#allocation7], 1 }

</bundles_post_ra>
